<compile_context>
chip_gen: v6e
topology: v6e:2x2x1
jax: 0.10.0
libtpu: 0.0.40
codegen_flags: <defaults>
</compile_context>

<pallas_src>
import functools

import jax
import jax.numpy as jnp
from jax import lax
from jax.experimental import pallas as pl
from jax.experimental.pallas import tpu as pltpu


# ----------------------------------------------------------------------------
# Kernel
# ----------------------------------------------------------------------------
def _gru2_step(h1, h2, w2i, w2h, b2x, b2hn):
    """One step of the second GRU (input = h1, state = h2). Per-gate weights.

    gx_* already include bias_ih (+ bias_hh for r/z); the n-gate hh bias is
    added to gh_n before the reset-gate multiply (PyTorch semantics).
    """
    w2ir, w2iz, w2in = w2i
    w2hr, w2hz, w2hn = w2h
    b2xr, b2xz, b2xn = b2x
    gx_r = jnp.dot(h1, w2ir, preferred_element_type=jnp.float32) + b2xr
    gx_z = jnp.dot(h1, w2iz, preferred_element_type=jnp.float32) + b2xz
    gx_n = jnp.dot(h1, w2in, preferred_element_type=jnp.float32) + b2xn
    gh_r = jnp.dot(h2, w2hr, preferred_element_type=jnp.float32)
    gh_z = jnp.dot(h2, w2hz, preferred_element_type=jnp.float32)
    gh_n = jnp.dot(h2, w2hn, preferred_element_type=jnp.float32) + b2hn
    r = jax.nn.sigmoid(gx_r + gh_r)
    z = jax.nn.sigmoid(gx_z + gh_z)
    n = jnp.tanh(gx_n + r * gh_n)
    return (1.0 - z) * n + z * h2


def encoder_kernel(
        # hoisted layer-1 input projections (per gate), time-major chunks
        gx1r_ref, gx1z_ref, gx1n_ref,
        # layer-1 recurrent weights (per gate) + n-gate hh bias
        w1hr_ref, w1hz_ref, w1hn_ref, b1hn_ref,
        # layer-2 input weights (per gate) + folded input biases
        w2ir_ref, w2iz_ref, w2in_ref,
        # layer-2 recurrent weights (per gate)
        w2hr_ref, w2hz_ref, w2hn_ref,
        b2xr_ref, b2xz_ref, b2xn_ref, b2hn_ref,
        # output
        out_ref,
        # scratch (persistent recurrent state, per batch block)
        h1_ref, h2_ref,
        *, seq_len, t_chunk, unroll):
    c = pl.program_id(1)                      # time-chunk index ("arbitrary")

    @pl.when(c == 0)
    def _init():
        h1_ref[...] = jnp.zeros_like(h1_ref)
        h2_ref[...] = jnp.zeros_like(h2_ref)

    # Constant-index weights: load once per chunk (hoisted out of the loop).
    w1hr = w1hr_ref[...]
    w1hz = w1hz_ref[...]
    w1hn = w1hn_ref[...]
    b1hn = b1hn_ref[...]
    w2i = (w2ir_ref[...], w2iz_ref[...], w2in_ref[...])
    w2h = (w2hr_ref[...], w2hz_ref[...], w2hn_ref[...])
    b2x = (b2xr_ref[...], b2xz_ref[...], b2xn_ref[...])
    b2hn = b2hn_ref[...]

    def step(i, carry):
        h1, h2 = carry
        t = c * t_chunk + i                   # global timestep

        # ---- layer 2, skewed by one step: h2(t-1) from (h2(t-2), h1(t-1)).
        # Independent of the layer-1 update below, so the two dependency
        # chains interleave on the MXU/EUP instead of running back-to-back.
        h2_new = _gru2_step(h1, h2, w2i, w2h, b2x, b2hn)

        # ---- layer 1: h1(t) from (h1(t-1), gx1(t)); x-projection hoisted.
        gh_r = jnp.dot(h1, w1hr, preferred_element_type=jnp.float32)
        gh_z = jnp.dot(h1, w1hz, preferred_element_type=jnp.float32)
        gh_n = jnp.dot(h1, w1hn, preferred_element_type=jnp.float32) + b1hn
        r1 = jax.nn.sigmoid(gx1r_ref[i] + gh_r)
        z1 = jax.nn.sigmoid(gx1z_ref[i] + gh_z)
        n1 = jnp.tanh(gx1n_ref[i] + r1 * gh_n)
        h1_new = (1.0 - z1) * n1 + z1 * h1

        # Masks: layer 1 advances only on real timesteps; the skewed layer 2
        # starts at t=1 (h2(-1) must stay 0) and also skips the padded tail.
        valid1 = t < seq_len
        valid2 = jnp.logical_and(t > 0, valid1)
        h1 = jnp.where(valid1, h1_new, h1)
        h2 = jnp.where(valid2, h2_new, h2)
        return h1, h2

    h1, h2 = lax.fori_loop(0, t_chunk, step, (h1_ref[...], h2_ref[...]),
                           unroll=unroll)
    h1_ref[...] = h1
    h2_ref[...] = h2

    @pl.when(c == pl.num_programs(1) - 1)
    def _finalize():
        # Skew catch-up: h2(T-1) = GRU2(h2(T-2), h1(T-1)).
        out_ref[...] = _gru2_step(h1, h2, w2i, w2h, b2x, b2hn)


# ----------------------------------------------------------------------------
# Wrapper
# ----------------------------------------------------------------------------
@jax.jit
def encoder_forward(x_btd, kp):
    """x_btd: (B, T, input_size) float32 (PyTorch batch_first convention).

    Returns the final hidden state of the second GRU, shaped (1, B, code_size),
    matching PyTorch's `state` output for a 1-layer unidirectional GRU.
    """
    B, T, _ = x_btd.shape
    H = kp["w1h"][0].shape[0]
    C = kp["w2h"][0].shape[0]

    # ---- hoisted layer-1 input projection: one big GEMM per gate ----------
    # (B*T, I) @ (I, H) fills the MXU instead of per-step (B, I) slivers; the
    # output is produced directly in time-major layout so the recurrent kernel
    # indexes the leading (time) axis of each streamed chunk.
    gx1 = [jnp.einsum("bti,ih->tbh", x_btd, wi) + bx
           for wi, bx in zip(kp["w1i"], kp["b1x"])]

    # ---- tiling ------------------------------------------------------------
    # Batch axis: "parallel" grid dim (sharded across v7x's 2 TensorCores when
    # B is large enough; a single block — i.e. a no-op — otherwise).
    B_blk = B // 2 if (B % 16 == 0) else B
    n_b = B // B_blk

    # Time axis: chunked + in-kernel fori_loop. Budget the streamed gx1 chunk
    # (3 gates, fp32, double-buffered) to ~4 MiB so weights + state scratch +
    # pipeline buffers stay well inside the default scoped VMEM on all of
    # v5e / v6e / v7x (v7x has only 64 MiB physical VMEM).
    per_step_bytes = 3 * B_blk * H * 4 * 2
    t_chunk = int(max(1, min(T, (4 << 20) // per_step_bytes, 512)))
    n_chunks = -(-T // t_chunk)
    T_pad = n_chunks * t_chunk
    if T_pad != T:
        gx1 = [jnp.pad(g, ((0, T_pad - T), (0, 0), (0, 0))) for g in gx1]

    unroll = True if t_chunk <= 16 else 8

    chunk_spec = pl.BlockSpec((t_chunk, B_blk, H), lambda b, c: (c, b, 0))
    full = lambda a: pl.BlockSpec(a.shape, lambda b, c: (0,) * a.ndim)

    w1h, w2i, w2h, b2x = kp["w1h"], kp["w2i"], kp["w2h"], kp["b2x"]

    kernel = functools.partial(encoder_kernel, seq_len=T,
                               t_chunk=t_chunk, unroll=unroll)

    out = pl.pallas_call(
        kernel,
        out_shape=jax.ShapeDtypeStruct((B, C), jnp.float32),
        grid_spec=pltpu.PrefetchScalarGridSpec(
            num_scalar_prefetch=0,
            grid=(n_b, n_chunks),
            in_specs=[
                chunk_spec, chunk_spec, chunk_spec,
                full(w1h[0]), full(w1h[1]), full(w1h[2]), full(kp["b1hn"]),
                full(w2i[0]), full(w2i[1]), full(w2i[2]),
                full(w2h[0]), full(w2h[1]), full(w2h[2]),
                full(b2x[0]), full(b2x[1]), full(b2x[2]), full(kp["b2hn"]),
            ],
            out_specs=pl.BlockSpec((B_blk, C), lambda b, c: (b, 0)),
            scratch_shapes=[
                pltpu.VMEM((B_blk, H), jnp.float32),   # h1 state
                pltpu.VMEM((B_blk, C), jnp.float32),   # h2 state
            ],
        ),
        compiler_params=pltpu.CompilerParams(
            dimension_semantics=("parallel", "arbitrary")),
    )(gx1[0], gx1[1], gx1[2],
      w1h[0], w1h[1], w1h[2], kp["b1hn"],
      w2i[0], w2i[1], w2i[2],
      w2h[0], w2h[1], w2h[2],
      b2x[0], b2x[1], b2x[2], kp["b2hn"])

    return out[None, :, :]                               # (1, B, code_size)


# ----------------------------------------------------------------------------
# Parameters: PyTorch nn.GRU layout + conversion to kernel (per-gate) layout
# ----------------------------------------------------------------------------
def init_torch_params(key, input_size, hidden_size, code_size):
    """PyTorch nn.GRU layout: weight_ih (3n, in), weight_hh (3n, n), biases
    (3n,); gate order (r, z, n); init U(-1/sqrt(n), 1/sqrt(n))."""
    ks = jax.random.split(key, 8)
    s1 = hidden_size ** -0.5
    s2 = code_size ** -0.5
    u = lambda k, shape, s: jax.random.uniform(k, shape, jnp.float32, -s, s)
    return {
        "w_ih1": u(ks[0], (3 * hidden_size, input_size), s1),
        "w_hh1": u(ks[1], (3 * hidden_size, hidden_size), s1),
        "b_ih1": u(ks[2], (3 * hidden_size,), s1),
        "b_hh1": u(ks[3], (3 * hidden_size,), s1),
        "w_ih2": u(ks[4], (3 * code_size, hidden_size), s2),
        "w_hh2": u(ks[5], (3 * code_size, code_size), s2),
        "b_ih2": u(ks[6], (3 * code_size,), s2),
        "b_hh2": u(ks[7], (3 * code_size,), s2),
    }


def prepare_params(tp):
    """Split PyTorch (3n, k) weights into per-gate (k, n) matrices (lane-0
    aligned gates) and fold bias_ih + bias_hh for the r/z gates."""
    def split_w(w):
        n = w.shape[0] // 3
        return w[:n].T, w[n:2 * n].T, w[2 * n:].T
    def split_b(b):
        n = b.shape[0] // 3
        return b[:n], b[n:2 * n], b[2 * n:]
    row = lambda v: v[None, :]

    w1i = split_w(tp["w_ih1"]); w1h = split_w(tp["w_hh1"])
    b1i = split_b(tp["b_ih1"]); b1h = split_b(tp["b_hh1"])
    w2i = split_w(tp["w_ih2"]); w2h = split_w(tp["w_hh2"])
    b2i = split_b(tp["b_ih2"]); b2h = split_b(tp["b_hh2"])

    return {
        "w1i": w1i,                                            # (I, H) x3
        "b1x": (row(b1i[0] + b1h[0]), row(b1i[1] + b1h[1]), row(b1i[2])),
        "w1h": w1h,                                            # (H, H) x3
        "b1hn": row(b1h[2]),                                   # (1, H)
        "w2i": w2i,                                            # (H, C) x3
        "b2x": (row(b2i[0] + b2h[0]), row(b2i[1] + b2h[1]), row(b2i[2])),
        "w2h": w2h,                                            # (C, C) x3
        "b2hn": row(b2h[2]),                                   # (1, C)
    }


# ----------------------------------------------------------------------------
# Pure-JAX reference (PyTorch math with the original concatenated layout)
# ----------------------------------------------------------------------------
def reference_forward(x_btd, tp):
    B, T, _ = x_btd.shape
    H = tp["w_hh1"].shape[1]
    C = tp["w_hh2"].shape[1]

    def cell(x, h, w_ih, w_hh, b_ih, b_hh):
        n = h.shape[1]
        gx = x @ w_ih.T + b_ih
        gh = h @ w_hh.T + b_hh
        r = jax.nn.sigmoid(gx[:, :n] + gh[:, :n])
        z = jax.nn.sigmoid(gx[:, n:2 * n] + gh[:, n:2 * n])
        nn_ = jnp.tanh(gx[:, 2 * n:] + r * gh[:, 2 * n:])
        return (1.0 - z) * nn_ + z * h

    h1 = jnp.zeros((B, H), jnp.float32)
    h2 = jnp.zeros((B, C), jnp.float32)
    for t in range(T):
        h1 = cell(x_btd[:, t, :], h1,
                  tp["w_ih1"], tp["w_hh1"], tp["b_ih1"], tp["b_hh1"])
        # dropout: identity in eval mode
        h2 = cell(h1, h2,
                  tp["w_ih2"], tp["w_hh2"], tp["b_ih2"], tp["b_hh2"])
    return h2[None, :, :]


if __name__ == "__main__":
    # Small shapes implied by the module: (batch, seq, input_size)
    B, T, INPUT, HIDDEN, CODE = 2, 8, 16, 32, 16

    key = jax.random.PRNGKey(0)
    k_x, k_p = jax.random.split(key)
    x = jax.random.normal(k_x, (B, T, INPUT), jnp.float32)
    torch_params = init_torch_params(k_p, INPUT, HIDDEN, CODE)
    kernel_params = prepare_params(torch_params)

    state = encoder_forward(x, kernel_params)
    state = jax.block_until_ready(state)

    ref = reference_forward(x, torch_params)
    assert state.shape == (1, B, CODE), state.shape
    max_err = float(jnp.max(jnp.abs(state - ref)))
    assert jnp.allclose(state, ref, atol=1e-4, rtol=1e-3), max_err

    print("KERNEL_OK")
</pallas_src>

<mosaic_0001>
module attributes {stable_mosaic.version = 11 : i64} {
  func.func @encoder_kernel(%arg0: i32, %arg1: i32, %arg2: memref<8x2x32xf32, #tpu.memory_space<vmem>>, %arg3: memref<8x2x32xf32, #tpu.memory_space<vmem>>, %arg4: memref<8x2x32xf32, #tpu.memory_space<vmem>>, %arg5: memref<32x32xf32, #tpu.memory_space<vmem>>, %arg6: memref<32x32xf32, #tpu.memory_space<vmem>>, %arg7: memref<32x32xf32, #tpu.memory_space<vmem>>, %arg8: memref<1x32xf32, #tpu.memory_space<vmem>>, %arg9: memref<32x16xf32, #tpu.memory_space<vmem>>, %arg10: memref<32x16xf32, #tpu.memory_space<vmem>>, %arg11: memref<32x16xf32, #tpu.memory_space<vmem>>, %arg12: memref<16x16xf32, #tpu.memory_space<vmem>>, %arg13: memref<16x16xf32, #tpu.memory_space<vmem>>, %arg14: memref<16x16xf32, #tpu.memory_space<vmem>>, %arg15: memref<1x16xf32, #tpu.memory_space<vmem>>, %arg16: memref<1x16xf32, #tpu.memory_space<vmem>>, %arg17: memref<1x16xf32, #tpu.memory_space<vmem>>, %arg18: memref<1x16xf32, #tpu.memory_space<vmem>>, %arg19: memref<2x16xf32, #tpu.memory_space<vmem>>, %arg20: memref<2x32xf32, #tpu.memory_space<vmem>>, %arg21: memref<2x16xf32, #tpu.memory_space<vmem>>) attributes {dimension_semantics = [#tpu.dimension_semantics<parallel>, #tpu.dimension_semantics<arbitrary>], iteration_bounds = array<i64: 1, 1>, scalar_prefetch = 0 : i64, scratch_operands = 2 : i64, tpu.core_type = #tpu.core_type<tc>, window_params = [{transform_indices = @transform_0, window_bounds = array<i64: 8, 2, 32>}, {transform_indices = @transform_1, window_bounds = array<i64: 8, 2, 32>}, {transform_indices = @transform_2, window_bounds = array<i64: 8, 2, 32>}, {pipeline_mode = #tpu.pipeline_mode<synchronous>, transform_indices = @transform_3, window_bounds = array<i64: 32, 32>}, {pipeline_mode = #tpu.pipeline_mode<synchronous>, transform_indices = @transform_4, window_bounds = array<i64: 32, 32>}, {pipeline_mode = #tpu.pipeline_mode<synchronous>, transform_indices = @transform_5, window_bounds = array<i64: 32, 32>}, {pipeline_mode = #tpu.pipeline_mode<synchronous>, transform_indices = @transform_6, window_bounds = array<i64: 1, 32>}, {pipeline_mode = #tpu.pipeline_mode<synchronous>, transform_indices = @transform_7, window_bounds = array<i64: 32, 16>}, {pipeline_mode = #tpu.pipeline_mode<synchronous>, transform_indices = @transform_8, window_bounds = array<i64: 32, 16>}, {pipeline_mode = #tpu.pipeline_mode<synchronous>, transform_indices = @transform_9, window_bounds = array<i64: 32, 16>}, {pipeline_mode = #tpu.pipeline_mode<synchronous>, transform_indices = @transform_10, window_bounds = array<i64: 16, 16>}, {pipeline_mode = #tpu.pipeline_mode<synchronous>, transform_indices = @transform_11, window_bounds = array<i64: 16, 16>}, {pipeline_mode = #tpu.pipeline_mode<synchronous>, transform_indices = @transform_12, window_bounds = array<i64: 16, 16>}, {pipeline_mode = #tpu.pipeline_mode<synchronous>, transform_indices = @transform_13, window_bounds = array<i64: 1, 16>}, {pipeline_mode = #tpu.pipeline_mode<synchronous>, transform_indices = @transform_14, window_bounds = array<i64: 1, 16>}, {pipeline_mode = #tpu.pipeline_mode<synchronous>, transform_indices = @transform_15, window_bounds = array<i64: 1, 16>}, {pipeline_mode = #tpu.pipeline_mode<synchronous>, transform_indices = @transform_16, window_bounds = array<i64: 1, 16>}, {transform_indices = @transform_17, window_bounds = array<i64: 2, 16>}]} {
    %c0_i32 = arith.constant 0 : i32
    %0 = arith.cmpi eq, %arg1, %c0_i32 : i32
    %1 = arith.extui %0 : i1 to i32
    %c0_i32_0 = arith.constant 0 : i32
    %2 = arith.cmpi ne, %1, %c0_i32_0 : i32
    scf.if %2 {
      %cst_230 = arith.constant 0.000000e+00 : f32
      %624 = vector.broadcast %cst_230 : f32 to vector<2x32xf32>
      %c0_231 = arith.constant 0 : index
      %c0_232 = arith.constant 0 : index
      %625 = vector.load %arg20[%c0_231, %c0_232] : memref<2x32xf32, #tpu.memory_space<vmem>>, vector<2x32xf32>
      tpu.vector_store %arg20[%c0_231, %c0_232], %624 {strides = array<i32>} : memref<2x32xf32, #tpu.memory_space<vmem>>, vector<2x32xf32>,
      %cst_233 = arith.constant 0.000000e+00 : f32
      %626 = vector.broadcast %cst_233 : f32 to vector<2x16xf32>
      %c0_234 = arith.constant 0 : index
      %c0_235 = arith.constant 0 : index
      %627 = vector.load %arg21[%c0_234, %c0_235] : memref<2x16xf32, #tpu.memory_space<vmem>>, vector<2x16xf32>
      tpu.vector_store %arg21[%c0_234, %c0_235], %626 {strides = array<i32>} : memref<2x16xf32, #tpu.memory_space<vmem>>, vector<2x16xf32>,
    } else {
    }
    %c0 = arith.constant 0 : index
    %c0_1 = arith.constant 0 : index
    %3 = vector.load %arg5[%c0, %c0_1] : memref<32x32xf32, #tpu.memory_space<vmem>>, vector<32x32xf32>
    %c0_2 = arith.constant 0 : index
    %c0_3 = arith.constant 0 : index
    %4 = vector.load %arg6[%c0_2, %c0_3] : memref<32x32xf32, #tpu.memory_space<vmem>>, vector<32x32xf32>
    %c0_4 = arith.constant 0 : index
    %c0_5 = arith.constant 0 : index
    %5 = vector.load %arg7[%c0_4, %c0_5] : memref<32x32xf32, #tpu.memory_space<vmem>>, vector<32x32xf32>
    %c0_6 = arith.constant 0 : index
    %c0_7 = arith.constant 0 : index
    %6 = vector.load %arg8[%c0_6, %c0_7] : memref<1x32xf32, #tpu.memory_space<vmem>>, vector<1x32xf32>
    %c0_8 = arith.constant 0 : index
    %c0_9 = arith.constant 0 : index
    %7 = vector.load %arg9[%c0_8, %c0_9] : memref<32x16xf32, #tpu.memory_space<vmem>>, vector<32x16xf32>
    %c0_10 = arith.constant 0 : index
    %c0_11 = arith.constant 0 : index
    %8 = vector.load %arg10[%c0_10, %c0_11] : memref<32x16xf32, #tpu.memory_space<vmem>>, vector<32x16xf32>
    %c0_12 = arith.constant 0 : index
    %c0_13 = arith.constant 0 : index
    %9 = vector.load %arg11[%c0_12, %c0_13] : memref<32x16xf32, #tpu.memory_space<vmem>>, vector<32x16xf32>
    %c0_14 = arith.constant 0 : index
    %c0_15 = arith.constant 0 : index
    %10 = vector.load %arg12[%c0_14, %c0_15] : memref<16x16xf32, #tpu.memory_space<vmem>>, vector<16x16xf32>
    %c0_16 = arith.constant 0 : index
    %c0_17 = arith.constant 0 : index
    %11 = vector.load %arg13[%c0_16, %c0_17] : memref<16x16xf32, #tpu.memory_space<vmem>>, vector<16x16xf32>
    %c0_18 = arith.constant 0 : index
    %c0_19 = arith.constant 0 : index
    %12 = vector.load %arg14[%c0_18, %c0_19] : memref<16x16xf32, #tpu.memory_space<vmem>>, vector<16x16xf32>
    %c0_20 = arith.constant 0 : index
    %c0_21 = arith.constant 0 : index
    %13 = vector.load %arg15[%c0_20, %c0_21] : memref<1x16xf32, #tpu.memory_space<vmem>>, vector<1x16xf32>
    %c0_22 = arith.constant 0 : index
    %c0_23 = arith.constant 0 : index
    %14 = vector.load %arg16[%c0_22, %c0_23] : memref<1x16xf32, #tpu.memory_space<vmem>>, vector<1x16xf32>
    %c0_24 = arith.constant 0 : index
    %c0_25 = arith.constant 0 : index
    %15 = vector.load %arg17[%c0_24, %c0_25] : memref<1x16xf32, #tpu.memory_space<vmem>>, vector<1x16xf32>
    %c0_26 = arith.constant 0 : index
    %c0_27 = arith.constant 0 : index
    %16 = vector.load %arg18[%c0_26, %c0_27] : memref<1x16xf32, #tpu.memory_space<vmem>>, vector<1x16xf32>
    %c0_28 = arith.constant 0 : index
    %c0_29 = arith.constant 0 : index
    %17 = vector.load %arg20[%c0_28, %c0_29] : memref<2x32xf32, #tpu.memory_space<vmem>>, vector<2x32xf32>
    %c0_30 = arith.constant 0 : index
    %c0_31 = arith.constant 0 : index
    %18 = vector.load %arg21[%c0_30, %c0_31] : memref<2x16xf32, #tpu.memory_space<vmem>>, vector<2x16xf32>
    %c0_i32_32 = arith.constant 0 : i32
    %c8_i32 = arith.constant 8 : i32
    %19 = arith.muli %arg1, %c8_i32 : i32
    %20 = arith.addi %19, %c0_i32_32 : i32
    %cst = arith.constant dense<0.000000e+00> : vector<2x16xf32>
    %21 = tpu.matmul %17, %7, %cst {dimension_numbers = #tpu.dot_dimension_numbers<[1], [0], [0], [1], [0, 0, 1, 1], [], []>} : vector<2x32xf32>, vector<32x16xf32>, vector<2x16xf32> -> vector<2x16xf32>
    %22 = vector.broadcast %13 : vector<1x16xf32> to vector<2x16xf32>
    %23 = arith.addf %21, %22 : vector<2x16xf32>
    %cst_33 = arith.constant dense<0.000000e+00> : vector<2x16xf32>
    %24 = tpu.matmul %17, %8, %cst_33 {dimension_numbers = #tpu.dot_dimension_numbers<[1], [0], [0], [1], [0, 0, 1, 1], [], []>} : vector<2x32xf32>, vector<32x16xf32>, vector<2x16xf32> -> vector<2x16xf32>
    %25 = vector.broadcast %14 : vector<1x16xf32> to vector<2x16xf32>
    %26 = arith.addf %24, %25 : vector<2x16xf32>
    %cst_34 = arith.constant dense<0.000000e+00> : vector<2x16xf32>
    %27 = tpu.matmul %17, %9, %cst_34 {dimension_numbers = #tpu.dot_dimension_numbers<[1], [0], [0], [1], [0, 0, 1, 1], [], []>} : vector<2x32xf32>, vector<32x16xf32>, vector<2x16xf32> -> vector<2x16xf32>
    %28 = vector.broadcast %15 : vector<1x16xf32> to vector<2x16xf32>
    %29 = arith.addf %27, %28 : vector<2x16xf32>
    %cst_35 = arith.constant dense<0.000000e+00> : vector<2x16xf32>
    %30 = tpu.matmul %18, %10, %cst_35 {dimension_numbers = #tpu.dot_dimension_numbers<[1], [0], [0], [1], [0, 0, 1, 1], [], []>} : vector<2x16xf32>, vector<16x16xf32>, vector<2x16xf32> -> vector<2x16xf32>
    %cst_36 = arith.constant dense<0.000000e+00> : vector<2x16xf32>
    %31 = tpu.matmul %18, %11, %cst_36 {dimension_numbers = #tpu.dot_dimension_numbers<[1], [0], [0], [1], [0, 0, 1, 1], [], []>} : vector<2x16xf32>, vector<16x16xf32>, vector<2x16xf32> -> vector<2x16xf32>
    %cst_37 = arith.constant dense<0.000000e+00> : vector<2x16xf32>
    %32 = tpu.matmul %18, %12, %cst_37 {dimension_numbers = #tpu.dot_dimension_numbers<[1], [0], [0], [1], [0, 0, 1, 1], [], []>} : vector<2x16xf32>, vector<16x16xf32>, vector<2x16xf32> -> vector<2x16xf32>
    %33 = vector.broadcast %16 : vector<1x16xf32> to vector<2x16xf32>
    %34 = arith.addf %32, %33 : vector<2x16xf32>
    %35 = arith.addf %23, %30 : vector<2x16xf32>
    %36 = arith.negf %35 : vector<2x16xf32>
    %37 = math.exp %36 : vector<2x16xf32>
    %cst_38 = arith.constant 1.000000e+00 : f32
    %38 = vector.broadcast %cst_38 : f32 to vector<2x16xf32>
    %39 = arith.addf %38, %37 : vector<2x16xf32>
    %40 = arith.divf %38, %39 : vector<2x16xf32>
    %41 = arith.addf %26, %31 : vector<2x16xf32>
    %42 = arith.negf %41 : vector<2x16xf32>
    %43 = math.exp %42 : vector<2x16xf32>
    %cst_39 = arith.constant 1.000000e+00 : f32
    %44 = vector.broadcast %cst_39 : f32 to vector<2x16xf32>
    %45 = arith.addf %44, %43 : vector<2x16xf32>
    %46 = arith.divf %44, %45 : vector<2x16xf32>
    %47 = arith.mulf %40, %34 : vector<2x16xf32>
    %48 = arith.addf %29, %47 : vector<2x16xf32>
    %49 = math.tanh %48 : vector<2x16xf32>
    %cst_40 = arith.constant 1.000000e+00 : f32
    %50 = vector.broadcast %cst_40 : f32 to vector<2x16xf32>
    %51 = arith.subf %50, %46 : vector<2x16xf32>
    %52 = arith.mulf %51, %49 : vector<2x16xf32>
    %53 = arith.mulf %46, %18 : vector<2x16xf32>
    %54 = arith.addf %52, %53 : vector<2x16xf32>
    %cst_41 = arith.constant dense<0.000000e+00> : vector<2x32xf32>
    %55 = tpu.matmul %17, %3, %cst_41 {dimension_numbers = #tpu.dot_dimension_numbers<[1], [0], [0], [1], [0, 0, 1, 1], [], []>} : vector<2x32xf32>, vector<32x32xf32>, vector<2x32xf32> -> vector<2x32xf32>
    %cst_42 = arith.constant dense<0.000000e+00> : vector<2x32xf32>
    %56 = tpu.matmul %17, %4, %cst_42 {dimension_numbers = #tpu.dot_dimension_numbers<[1], [0], [0], [1], [0, 0, 1, 1], [], []>} : vector<2x32xf32>, vector<32x32xf32>, vector<2x32xf32> -> vector<2x32xf32>
    %cst_43 = arith.constant dense<0.000000e+00> : vector<2x32xf32>
    %57 = tpu.matmul %17, %5, %cst_43 {dimension_numbers = #tpu.dot_dimension_numbers<[1], [0], [0], [1], [0, 0, 1, 1], [], []>} : vector<2x32xf32>, vector<32x32xf32>, vector<2x32xf32> -> vector<2x32xf32>
    %58 = vector.broadcast %6 : vector<1x32xf32> to vector<2x32xf32>
    %59 = arith.addf %57, %58 : vector<2x32xf32>
    %60 = arith.index_cast %c0_i32_32 : i32 to index
    %c0_44 = arith.constant 0 : index
    %c0_45 = arith.constant 0 : index
    %61 = vector.load %arg2[%60, %c0_44, %c0_45] : memref<8x2x32xf32, #tpu.memory_space<vmem>>, vector<1x2x32xf32>
    %62 = vector.shape_cast %61 : vector<1x2x32xf32> to vector<2x32xf32>
    %63 = arith.addf %62, %55 : vector<2x32xf32>
    %64 = arith.negf %63 : vector<2x32xf32>
    %65 = math.exp %64 : vector<2x32xf32>
    %cst_46 = arith.constant 1.000000e+00 : f32
    %66 = vector.broadcast %cst_46 : f32 to vector<2x32xf32>
    %67 = arith.addf %66, %65 : vector<2x32xf32>
    %68 = arith.divf %66, %67 : vector<2x32xf32>
    %69 = arith.index_cast %c0_i32_32 : i32 to index
    %c0_47 = arith.constant 0 : index
    %c0_48 = arith.constant 0 : index
    %70 = vector.load %arg3[%69, %c0_47, %c0_48] : memref<8x2x32xf32, #tpu.memory_space<vmem>>, vector<1x2x32xf32>
    %71 = vector.shape_cast %70 : vector<1x2x32xf32> to vector<2x32xf32>
    %72 = arith.addf %71, %56 : vector<2x32xf32>
    %73 = arith.negf %72 : vector<2x32xf32>
    %74 = math.exp %73 : vector<2x32xf32>
    %cst_49 = arith.constant 1.000000e+00 : f32
    %75 = vector.broadcast %cst_49 : f32 to vector<2x32xf32>
    %76 = arith.addf %75, %74 : vector<2x32xf32>
    %77 = arith.divf %75, %76 : vector<2x32xf32>
    %78 = arith.index_cast %c0_i32_32 : i32 to index
    %c0_50 = arith.constant 0 : index
    %c0_51 = arith.constant 0 : index
    %79 = vector.load %arg4[%78, %c0_50, %c0_51] : memref<8x2x32xf32, #tpu.memory_space<vmem>>, vector<1x2x32xf32>
    %80 = vector.shape_cast %79 : vector<1x2x32xf32> to vector<2x32xf32>
    %81 = arith.mulf %68, %59 : vector<2x32xf32>
    %82 = arith.addf %80, %81 : vector<2x32xf32>
    %83 = math.tanh %82 : vector<2x32xf32>
    %cst_52 = arith.constant 1.000000e+00 : f32
    %84 = vector.broadcast %cst_52 : f32 to vector<2x32xf32>
    %85 = arith.subf %84, %77 : vector<2x32xf32>
    %86 = arith.mulf %85, %83 : vector<2x32xf32>
    %87 = arith.mulf %77, %17 : vector<2x32xf32>
    %88 = arith.addf %86, %87 : vector<2x32xf32>
    %c8_i32_53 = arith.constant 8 : i32
    %89 = arith.cmpi slt, %20, %c8_i32_53 : i32
    %c0_i32_54 = arith.constant 0 : i32
    %90 = arith.cmpi sgt, %20, %c0_i32_54 : i32
    %91 = arith.andi %90, %89 : i1
    %92 = arith.select %89, %88, %17 : vector<2x32xf32>
    %93 = arith.select %91, %54, %18 : vector<2x16xf32>
    %c1_i32 = arith.constant 1 : i32
    %c8_i32_55 = arith.constant 8 : i32
    %94 = arith.muli %arg1, %c8_i32_55 : i32
    %95 = arith.addi %94, %c1_i32 : i32
    %cst_56 = arith.constant dense<0.000000e+00> : vector<2x16xf32>
    %96 = tpu.matmul %92, %7, %cst_56 {dimension_numbers = #tpu.dot_dimension_numbers<[1], [0], [0], [1], [0, 0, 1, 1], [], []>} : vector<2x32xf32>, vector<32x16xf32>, vector<2x16xf32> -> vector<2x16xf32>
    %97 = vector.broadcast %13 : vector<1x16xf32> to vector<2x16xf32>
    %98 = arith.addf %96, %97 : vector<2x16xf32>
    %cst_57 = arith.constant dense<0.000000e+00> : vector<2x16xf32>
    %99 = tpu.matmul %92, %8, %cst_57 {dimension_numbers = #tpu.dot_dimension_numbers<[1], [0], [0], [1], [0, 0, 1, 1], [], []>} : vector<2x32xf32>, vector<32x16xf32>, vector<2x16xf32> -> vector<2x16xf32>
    %100 = vector.broadcast %14 : vector<1x16xf32> to vector<2x16xf32>
    %101 = arith.addf %99, %100 : vector<2x16xf32>
    %cst_58 = arith.constant dense<0.000000e+00> : vector<2x16xf32>
    %102 = tpu.matmul %92, %9, %cst_58 {dimension_numbers = #tpu.dot_dimension_numbers<[1], [0], [0], [1], [0, 0, 1, 1], [], []>} : vector<2x32xf32>, vector<32x16xf32>, vector<2x16xf32> -> vector<2x16xf32>
    %103 = vector.broadcast %15 : vector<1x16xf32> to vector<2x16xf32>
    %104 = arith.addf %102, %103 : vector<2x16xf32>
    %cst_59 = arith.constant dense<0.000000e+00> : vector<2x16xf32>
    %105 = tpu.matmul %93, %10, %cst_59 {dimension_numbers = #tpu.dot_dimension_numbers<[1], [0], [0], [1], [0, 0, 1, 1], [], []>} : vector<2x16xf32>, vector<16x16xf32>, vector<2x16xf32> -> vector<2x16xf32>
    %cst_60 = arith.constant dense<0.000000e+00> : vector<2x16xf32>
    %106 = tpu.matmul %93, %11, %cst_60 {dimension_numbers = #tpu.dot_dimension_numbers<[1], [0], [0], [1], [0, 0, 1, 1], [], []>} : vector<2x16xf32>, vector<16x16xf32>, vector<2x16xf32> -> vector<2x16xf32>
    %cst_61 = arith.constant dense<0.000000e+00> : vector<2x16xf32>
    %107 = tpu.matmul %93, %12, %cst_61 {dimension_numbers = #tpu.dot_dimension_numbers<[1], [0], [0], [1], [0, 0, 1, 1], [], []>} : vector<2x16xf32>, vector<16x16xf32>, vector<2x16xf32> -> vector<2x16xf32>
    %108 = vector.broadcast %16 : vector<1x16xf32> to vector<2x16xf32>
    %109 = arith.addf %107, %108 : vector<2x16xf32>
    %110 = arith.addf %98, %105 : vector<2x16xf32>
    %111 = arith.negf %110 : vector<2x16xf32>
    %112 = math.exp %111 : vector<2x16xf32>
    %cst_62 = arith.constant 1.000000e+00 : f32
    %113 = vector.broadcast %cst_62 : f32 to vector<2x16xf32>
    %114 = arith.addf %113, %112 : vector<2x16xf32>
    %115 = arith.divf %113, %114 : vector<2x16xf32>
    %116 = arith.addf %101, %106 : vector<2x16xf32>
    %117 = arith.negf %116 : vector<2x16xf32>
    %118 = math.exp %117 : vector<2x16xf32>
    %cst_63 = arith.constant 1.000000e+00 : f32
    %119 = vector.broadcast %cst_63 : f32 to vector<2x16xf32>
    %120 = arith.addf %119, %118 : vector<2x16xf32>
    %121 = arith.divf %119, %120 : vector<2x16xf32>
    %122 = arith.mulf %115, %109 : vector<2x16xf32>
    %123 = arith.addf %104, %122 : vector<2x16xf32>
    %124 = math.tanh %123 : vector<2x16xf32>
    %cst_64 = arith.constant 1.000000e+00 : f32
    %125 = vector.broadcast %cst_64 : f32 to vector<2x16xf32>
    %126 = arith.subf %125, %121 : vector<2x16xf32>
    %127 = arith.mulf %126, %124 : vector<2x16xf32>
    %128 = arith.mulf %121, %93 : vector<2x16xf32>
    %129 = arith.addf %127, %128 : vector<2x16xf32>
    %cst_65 = arith.constant dense<0.000000e+00> : vector<2x32xf32>
    %130 = tpu.matmul %92, %3, %cst_65 {dimension_numbers = #tpu.dot_dimension_numbers<[1], [0], [0], [1], [0, 0, 1, 1], [], []>} : vector<2x32xf32>, vector<32x32xf32>, vector<2x32xf32> -> vector<2x32xf32>
    %cst_66 = arith.constant dense<0.000000e+00> : vector<2x32xf32>
    %131 = tpu.matmul %92, %4, %cst_66 {dimension_numbers = #tpu.dot_dimension_numbers<[1], [0], [0], [1], [0, 0, 1, 1], [], []>} : vector<2x32xf32>, vector<32x32xf32>, vector<2x32xf32> -> vector<2x32xf32>
    %cst_67 = arith.constant dense<0.000000e+00> : vector<2x32xf32>
    %132 = tpu.matmul %92, %5, %cst_67 {dimension_numbers = #tpu.dot_dimension_numbers<[1], [0], [0], [1], [0, 0, 1, 1], [], []>} : vector<2x32xf32>, vector<32x32xf32>, vector<2x32xf32> -> vector<2x32xf32>
    %133 = vector.broadcast %6 : vector<1x32xf32> to vector<2x32xf32>
    %134 = arith.addf %132, %133 : vector<2x32xf32>
    %135 = arith.index_cast %c1_i32 : i32 to index
    %c0_68 = arith.constant 0 : index
    %c0_69 = arith.constant 0 : index
    %136 = vector.load %arg2[%135, %c0_68, %c0_69] : memref<8x2x32xf32, #tpu.memory_space<vmem>>, vector<1x2x32xf32>
    %137 = vector.shape_cast %136 : vector<1x2x32xf32> to vector<2x32xf32>
    %138 = arith.addf %137, %130 : vector<2x32xf32>
    %139 = arith.negf %138 : vector<2x32xf32>
    %140 = math.exp %139 : vector<2x32xf32>
    %cst_70 = arith.constant 1.000000e+00 : f32
    %141 = vector.broadcast %cst_70 : f32 to vector<2x32xf32>
    %142 = arith.addf %141, %140 : vector<2x32xf32>
    %143 = arith.divf %141, %142 : vector<2x32xf32>
    %144 = arith.index_cast %c1_i32 : i32 to index
    %c0_71 = arith.constant 0 : index
    %c0_72 = arith.constant 0 : index
    %145 = vector.load %arg3[%144, %c0_71, %c0_72] : memref<8x2x32xf32, #tpu.memory_space<vmem>>, vector<1x2x32xf32>
    %146 = vector.shape_cast %145 : vector<1x2x32xf32> to vector<2x32xf32>
    %147 = arith.addf %146, %131 : vector<2x32xf32>
    %148 = arith.negf %147 : vector<2x32xf32>
    %149 = math.exp %148 : vector<2x32xf32>
    %cst_73 = arith.constant 1.000000e+00 : f32
    %150 = vector.broadcast %cst_73 : f32 to vector<2x32xf32>
    %151 = arith.addf %150, %149 : vector<2x32xf32>
    %152 = arith.divf %150, %151 : vector<2x32xf32>
    %153 = arith.index_cast %c1_i32 : i32 to index
    %c0_74 = arith.constant 0 : index
    %c0_75 = arith.constant 0 : index
    %154 = vector.load %arg4[%153, %c0_74, %c0_75] : memref<8x2x32xf32, #tpu.memory_space<vmem>>, vector<1x2x32xf32>
    %155 = vector.shape_cast %154 : vector<1x2x32xf32> to vector<2x32xf32>
    %156 = arith.mulf %143, %134 : vector<2x32xf32>
    %157 = arith.addf %155, %156 : vector<2x32xf32>
    %158 = math.tanh %157 : vector<2x32xf32>
    %cst_76 = arith.constant 1.000000e+00 : f32
    %159 = vector.broadcast %cst_76 : f32 to vector<2x32xf32>
    %160 = arith.subf %159, %152 : vector<2x32xf32>
    %161 = arith.mulf %160, %158 : vector<2x32xf32>
    %162 = arith.mulf %152, %92 : vector<2x32xf32>
    %163 = arith.addf %161, %162 : vector<2x32xf32>
    %c8_i32_77 = arith.constant 8 : i32
    %164 = arith.cmpi slt, %95, %c8_i32_77 : i32
    %c0_i32_78 = arith.constant 0 : i32
    %165 = arith.cmpi sgt, %95, %c0_i32_78 : i32
    %166 = arith.andi %165, %164 : i1
    %167 = arith.select %164, %163, %92 : vector<2x32xf32>
    %168 = arith.select %166, %129, %93 : vector<2x16xf32>
    %c2_i32 = arith.constant 2 : i32
    %c8_i32_79 = arith.constant 8 : i32
    %169 = arith.muli %arg1, %c8_i32_79 : i32
    %170 = arith.addi %169, %c2_i32 : i32
    %cst_80 = arith.constant dense<0.000000e+00> : vector<2x16xf32>
    %171 = tpu.matmul %167, %7, %cst_80 {dimension_numbers = #tpu.dot_dimension_numbers<[1], [0], [0], [1], [0, 0, 1, 1], [], []>} : vector<2x32xf32>, vector<32x16xf32>, vector<2x16xf32> -> vector<2x16xf32>
    %172 = vector.broadcast %13 : vector<1x16xf32> to vector<2x16xf32>
    %173 = arith.addf %171, %172 : vector<2x16xf32>
    %cst_81 = arith.constant dense<0.000000e+00> : vector<2x16xf32>
    %174 = tpu.matmul %167, %8, %cst_81 {dimension_numbers = #tpu.dot_dimension_numbers<[1], [0], [0], [1], [0, 0, 1, 1], [], []>} : vector<2x32xf32>, vector<32x16xf32>, vector<2x16xf32> -> vector<2x16xf32>
    %175 = vector.broadcast %14 : vector<1x16xf32> to vector<2x16xf32>
    %176 = arith.addf %174, %175 : vector<2x16xf32>
    %cst_82 = arith.constant dense<0.000000e+00> : vector<2x16xf32>
    %177 = tpu.matmul %167, %9, %cst_82 {dimension_numbers = #tpu.dot_dimension_numbers<[1], [0], [0], [1], [0, 0, 1, 1], [], []>} : vector<2x32xf32>, vector<32x16xf32>, vector<2x16xf32> -> vector<2x16xf32>
    %178 = vector.broadcast %15 : vector<1x16xf32> to vector<2x16xf32>
    %179 = arith.addf %177, %178 : vector<2x16xf32>
    %cst_83 = arith.constant dense<0.000000e+00> : vector<2x16xf32>
    %180 = tpu.matmul %168, %10, %cst_83 {dimension_numbers = #tpu.dot_dimension_numbers<[1], [0], [0], [1], [0, 0, 1, 1], [], []>} : vector<2x16xf32>, vector<16x16xf32>, vector<2x16xf32> -> vector<2x16xf32>
    %cst_84 = arith.constant dense<0.000000e+00> : vector<2x16xf32>
    %181 = tpu.matmul %168, %11, %cst_84 {dimension_numbers = #tpu.dot_dimension_numbers<[1], [0], [0], [1], [0, 0, 1, 1], [], []>} : vector<2x16xf32>, vector<16x16xf32>, vector<2x16xf32> -> vector<2x16xf32>
    %cst_85 = arith.constant dense<0.000000e+00> : vector<2x16xf32>
    %182 = tpu.matmul %168, %12, %cst_85 {dimension_numbers = #tpu.dot_dimension_numbers<[1], [0], [0], [1], [0, 0, 1, 1], [], []>} : vector<2x16xf32>, vector<16x16xf32>, vector<2x16xf32> -> vector<2x16xf32>
    %183 = vector.broadcast %16 : vector<1x16xf32> to vector<2x16xf32>
    %184 = arith.addf %182, %183 : vector<2x16xf32>
    %185 = arith.addf %173, %180 : vector<2x16xf32>
    %186 = arith.negf %185 : vector<2x16xf32>
    %187 = math.exp %186 : vector<2x16xf32>
    %cst_86 = arith.constant 1.000000e+00 : f32
    %188 = vector.broadcast %cst_86 : f32 to vector<2x16xf32>
    %189 = arith.addf %188, %187 : vector<2x16xf32>
    %190 = arith.divf %188, %189 : vector<2x16xf32>
    %191 = arith.addf %176, %181 : vector<2x16xf32>
    %192 = arith.negf %191 : vector<2x16xf32>
    %193 = math.exp %192 : vector<2x16xf32>
    %cst_87 = arith.constant 1.000000e+00 : f32
    %194 = vector.broadcast %cst_87 : f32 to vector<2x16xf32>
    %195 = arith.addf %194, %193 : vector<2x16xf32>
    %196 = arith.divf %194, %195 : vector<2x16xf32>
    %197 = arith.mulf %190, %184 : vector<2x16xf32>
    %198 = arith.addf %179, %197 : vector<2x16xf32>
    %199 = math.tanh %198 : vector<2x16xf32>
    %cst_88 = arith.constant 1.000000e+00 : f32
    %200 = vector.broadcast %cst_88 : f32 to vector<2x16xf32>
    %201 = arith.subf %200, %196 : vector<2x16xf32>
    %202 = arith.mulf %201, %199 : vector<2x16xf32>
    %203 = arith.mulf %196, %168 : vector<2x16xf32>
    %204 = arith.addf %202, %203 : vector<2x16xf32>
    %cst_89 = arith.constant dense<0.000000e+00> : vector<2x32xf32>
    %205 = tpu.matmul %167, %3, %cst_89 {dimension_numbers = #tpu.dot_dimension_numbers<[1], [0], [0], [1], [0, 0, 1, 1], [], []>} : vector<2x32xf32>, vector<32x32xf32>, vector<2x32xf32> -> vector<2x32xf32>
    %cst_90 = arith.constant dense<0.000000e+00> : vector<2x32xf32>
    %206 = tpu.matmul %167, %4, %cst_90 {dimension_numbers = #tpu.dot_dimension_numbers<[1], [0], [0], [1], [0, 0, 1, 1], [], []>} : vector<2x32xf32>, vector<32x32xf32>, vector<2x32xf32> -> vector<2x32xf32>
    %cst_91 = arith.constant dense<0.000000e+00> : vector<2x32xf32>
    %207 = tpu.matmul %167, %5, %cst_91 {dimension_numbers = #tpu.dot_dimension_numbers<[1], [0], [0], [1], [0, 0, 1, 1], [], []>} : vector<2x32xf32>, vector<32x32xf32>, vector<2x32xf32> -> vector<2x32xf32>
    %208 = vector.broadcast %6 : vector<1x32xf32> to vector<2x32xf32>
    %209 = arith.addf %207, %208 : vector<2x32xf32>
    %210 = arith.index_cast %c2_i32 : i32 to index
    %c0_92 = arith.constant 0 : index
    %c0_93 = arith.constant 0 : index
    %211 = vector.load %arg2[%210, %c0_92, %c0_93] : memref<8x2x32xf32, #tpu.memory_space<vmem>>, vector<1x2x32xf32>
    %212 = vector.shape_cast %211 : vector<1x2x32xf32> to vector<2x32xf32>
    %213 = arith.addf %212, %205 : vector<2x32xf32>
    %214 = arith.negf %213 : vector<2x32xf32>
    %215 = math.exp %214 : vector<2x32xf32>
    %cst_94 = arith.constant 1.000000e+00 : f32
    %216 = vector.broadcast %cst_94 : f32 to vector<2x32xf32>
    %217 = arith.addf %216, %215 : vector<2x32xf32>
    %218 = arith.divf %216, %217 : vector<2x32xf32>
    %219 = arith.index_cast %c2_i32 : i32 to index
    %c0_95 = arith.constant 0 : index
    %c0_96 = arith.constant 0 : index
    %220 = vector.load %arg3[%219, %c0_95, %c0_96] : memref<8x2x32xf32, #tpu.memory_space<vmem>>, vector<1x2x32xf32>
    %221 = vector.shape_cast %220 : vector<1x2x32xf32> to vector<2x32xf32>
    %222 = arith.addf %221, %206 : vector<2x32xf32>
    %223 = arith.negf %222 : vector<2x32xf32>
    %224 = math.exp %223 : vector<2x32xf32>
    %cst_97 = arith.constant 1.000000e+00 : f32
    %225 = vector.broadcast %cst_97 : f32 to vector<2x32xf32>
    %226 = arith.addf %225, %224 : vector<2x32xf32>
    %227 = arith.divf %225, %226 : vector<2x32xf32>
    %228 = arith.index_cast %c2_i32 : i32 to index
    %c0_98 = arith.constant 0 : index
    %c0_99 = arith.constant 0 : index
    %229 = vector.load %arg4[%228, %c0_98, %c0_99] : memref<8x2x32xf32, #tpu.memory_space<vmem>>, vector<1x2x32xf32>
    %230 = vector.shape_cast %229 : vector<1x2x32xf32> to vector<2x32xf32>
    %231 = arith.mulf %218, %209 : vector<2x32xf32>
    %232 = arith.addf %230, %231 : vector<2x32xf32>
    %233 = math.tanh %232 : vector<2x32xf32>
    %cst_100 = arith.constant 1.000000e+00 : f32
    %234 = vector.broadcast %cst_100 : f32 to vector<2x32xf32>
    %235 = arith.subf %234, %227 : vector<2x32xf32>
    %236 = arith.mulf %235, %233 : vector<2x32xf32>
    %237 = arith.mulf %227, %167 : vector<2x32xf32>
    %238 = arith.addf %236, %237 : vector<2x32xf32>
    %c8_i32_101 = arith.constant 8 : i32
    %239 = arith.cmpi slt, %170, %c8_i32_101 : i32
    %c0_i32_102 = arith.constant 0 : i32
    %240 = arith.cmpi sgt, %170, %c0_i32_102 : i32
    %241 = arith.andi %240, %239 : i1
    %242 = arith.select %239, %238, %167 : vector<2x32xf32>
    %243 = arith.select %241, %204, %168 : vector<2x16xf32>
    %c3_i32 = arith.constant 3 : i32
    %c8_i32_103 = arith.constant 8 : i32
    %244 = arith.muli %arg1, %c8_i32_103 : i32
    %245 = arith.addi %244, %c3_i32 : i32
    %cst_104 = arith.constant dense<0.000000e+00> : vector<2x16xf32>
    %246 = tpu.matmul %242, %7, %cst_104 {dimension_numbers = #tpu.dot_dimension_numbers<[1], [0], [0], [1], [0, 0, 1, 1], [], []>} : vector<2x32xf32>, vector<32x16xf32>, vector<2x16xf32> -> vector<2x16xf32>
    %247 = vector.broadcast %13 : vector<1x16xf32> to vector<2x16xf32>
    %248 = arith.addf %246, %247 : vector<2x16xf32>
    %cst_105 = arith.constant dense<0.000000e+00> : vector<2x16xf32>
    %249 = tpu.matmul %242, %8, %cst_105 {dimension_numbers = #tpu.dot_dimension_numbers<[1], [0], [0], [1], [0, 0, 1, 1], [], []>} : vector<2x32xf32>, vector<32x16xf32>, vector<2x16xf32> -> vector<2x16xf32>
    %250 = vector.broadcast %14 : vector<1x16xf32> to vector<2x16xf32>
    %251 = arith.addf %249, %250 : vector<2x16xf32>
    %cst_106 = arith.constant dense<0.000000e+00> : vector<2x16xf32>
    %252 = tpu.matmul %242, %9, %cst_106 {dimension_numbers = #tpu.dot_dimension_numbers<[1], [0], [0], [1], [0, 0, 1, 1], [], []>} : vector<2x32xf32>, vector<32x16xf32>, vector<2x16xf32> -> vector<2x16xf32>
    %253 = vector.broadcast %15 : vector<1x16xf32> to vector<2x16xf32>
    %254 = arith.addf %252, %253 : vector<2x16xf32>
    %cst_107 = arith.constant dense<0.000000e+00> : vector<2x16xf32>
    %255 = tpu.matmul %243, %10, %cst_107 {dimension_numbers = #tpu.dot_dimension_numbers<[1], [0], [0], [1], [0, 0, 1, 1], [], []>} : vector<2x16xf32>, vector<16x16xf32>, vector<2x16xf32> -> vector<2x16xf32>
    %cst_108 = arith.constant dense<0.000000e+00> : vector<2x16xf32>
    %256 = tpu.matmul %243, %11, %cst_108 {dimension_numbers = #tpu.dot_dimension_numbers<[1], [0], [0], [1], [0, 0, 1, 1], [], []>} : vector<2x16xf32>, vector<16x16xf32>, vector<2x16xf32> -> vector<2x16xf32>
    %cst_109 = arith.constant dense<0.000000e+00> : vector<2x16xf32>
    %257 = tpu.matmul %243, %12, %cst_109 {dimension_numbers = #tpu.dot_dimension_numbers<[1], [0], [0], [1], [0, 0, 1, 1], [], []>} : vector<2x16xf32>, vector<16x16xf32>, vector<2x16xf32> -> vector<2x16xf32>
    %258 = vector.broadcast %16 : vector<1x16xf32> to vector<2x16xf32>
    %259 = arith.addf %257, %258 : vector<2x16xf32>
    %260 = arith.addf %248, %255 : vector<2x16xf32>
    %261 = arith.negf %260 : vector<2x16xf32>
    %262 = math.exp %261 : vector<2x16xf32>
    %cst_110 = arith.constant 1.000000e+00 : f32
    %263 = vector.broadcast %cst_110 : f32 to vector<2x16xf32>
    %264 = arith.addf %263, %262 : vector<2x16xf32>
    %265 = arith.divf %263, %264 : vector<2x16xf32>
    %266 = arith.addf %251, %256 : vector<2x16xf32>
    %267 = arith.negf %266 : vector<2x16xf32>
    %268 = math.exp %267 : vector<2x16xf32>
    %cst_111 = arith.constant 1.000000e+00 : f32
    %269 = vector.broadcast %cst_111 : f32 to vector<2x16xf32>
    %270 = arith.addf %269, %268 : vector<2x16xf32>
    %271 = arith.divf %269, %270 : vector<2x16xf32>
    %272 = arith.mulf %265, %259 : vector<2x16xf32>
    %273 = arith.addf %254, %272 : vector<2x16xf32>
    %274 = math.tanh %273 : vector<2x16xf32>
    %cst_112 = arith.constant 1.000000e+00 : f32
    %275 = vector.broadcast %cst_112 : f32 to vector<2x16xf32>
    %276 = arith.subf %275, %271 : vector<2x16xf32>
    %277 = arith.mulf %276, %274 : vector<2x16xf32>
    %278 = arith.mulf %271, %243 : vector<2x16xf32>
    %279 = arith.addf %277, %278 : vector<2x16xf32>
    %cst_113 = arith.constant dense<0.000000e+00> : vector<2x32xf32>
    %280 = tpu.matmul %242, %3, %cst_113 {dimension_numbers = #tpu.dot_dimension_numbers<[1], [0], [0], [1], [0, 0, 1, 1], [], []>} : vector<2x32xf32>, vector<32x32xf32>, vector<2x32xf32> -> vector<2x32xf32>
    %cst_114 = arith.constant dense<0.000000e+00> : vector<2x32xf32>
    %281 = tpu.matmul %242, %4, %cst_114 {dimension_numbers = #tpu.dot_dimension_numbers<[1], [0], [0], [1], [0, 0, 1, 1], [], []>} : vector<2x32xf32>, vector<32x32xf32>, vector<2x32xf32> -> vector<2x32xf32>
    %cst_115 = arith.constant dense<0.000000e+00> : vector<2x32xf32>
    %282 = tpu.matmul %242, %5, %cst_115 {dimension_numbers = #tpu.dot_dimension_numbers<[1], [0], [0], [1], [0, 0, 1, 1], [], []>} : vector<2x32xf32>, vector<32x32xf32>, vector<2x32xf32> -> vector<2x32xf32>
    %283 = vector.broadcast %6 : vector<1x32xf32> to vector<2x32xf32>
    %284 = arith.addf %282, %283 : vector<2x32xf32>
    %285 = arith.index_cast %c3_i32 : i32 to index
    %c0_116 = arith.constant 0 : index
    %c0_117 = arith.constant 0 : index
    %286 = vector.load %arg2[%285, %c0_116, %c0_117] : memref<8x2x32xf32, #tpu.memory_space<vmem>>, vector<1x2x32xf32>
    %287 = vector.shape_cast %286 : vector<1x2x32xf32> to vector<2x32xf32>
    %288 = arith.addf %287, %280 : vector<2x32xf32>
    %289 = arith.negf %288 : vector<2x32xf32>
    %290 = math.exp %289 : vector<2x32xf32>
    %cst_118 = arith.constant 1.000000e+00 : f32
    %291 = vector.broadcast %cst_118 : f32 to vector<2x32xf32>
    %292 = arith.addf %291, %290 : vector<2x32xf32>
    %293 = arith.divf %291, %292 : vector<2x32xf32>
    %294 = arith.index_cast %c3_i32 : i32 to index
    %c0_119 = arith.constant 0 : index
    %c0_120 = arith.constant 0 : index
    %295 = vector.load %arg3[%294, %c0_119, %c0_120] : memref<8x2x32xf32, #tpu.memory_space<vmem>>, vector<1x2x32xf32>
    %296 = vector.shape_cast %295 : vector<1x2x32xf32> to vector<2x32xf32>
    %297 = arith.addf %296, %281 : vector<2x32xf32>
    %298 = arith.negf %297 : vector<2x32xf32>
    %299 = math.exp %298 : vector<2x32xf32>
    %cst_121 = arith.constant 1.000000e+00 : f32
    %300 = vector.broadcast %cst_121 : f32 to vector<2x32xf32>
    %301 = arith.addf %300, %299 : vector<2x32xf32>
    %302 = arith.divf %300, %301 : vector<2x32xf32>
    %303 = arith.index_cast %c3_i32 : i32 to index
    %c0_122 = arith.constant 0 : index
    %c0_123 = arith.constant 0 : index
    %304 = vector.load %arg4[%303, %c0_122, %c0_123] : memref<8x2x32xf32, #tpu.memory_space<vmem>>, vector<1x2x32xf32>
    %305 = vector.shape_cast %304 : vector<1x2x32xf32> to vector<2x32xf32>
    %306 = arith.mulf %293, %284 : vector<2x32xf32>
    %307 = arith.addf %305, %306 : vector<2x32xf32>
    %308 = math.tanh %307 : vector<2x32xf32>
    %cst_124 = arith.constant 1.000000e+00 : f32
    %309 = vector.broadcast %cst_124 : f32 to vector<2x32xf32>
    %310 = arith.subf %309, %302 : vector<2x32xf32>
    %311 = arith.mulf %310, %308 : vector<2x32xf32>
    %312 = arith.mulf %302, %242 : vector<2x32xf32>
    %313 = arith.addf %311, %312 : vector<2x32xf32>
    %c8_i32_125 = arith.constant 8 : i32
    %314 = arith.cmpi slt, %245, %c8_i32_125 : i32
    %c0_i32_126 = arith.constant 0 : i32
    %315 = arith.cmpi sgt, %245, %c0_i32_126 : i32
    %316 = arith.andi %315, %314 : i1
    %317 = arith.select %314, %313, %242 : vector<2x32xf32>
    %318 = arith.select %316, %279, %243 : vector<2x16xf32>
    %c4_i32 = arith.constant 4 : i32
    %c8_i32_127 = arith.constant 8 : i32
    %319 = arith.muli %arg1, %c8_i32_127 : i32
    %320 = arith.addi %319, %c4_i32 : i32
    %cst_128 = arith.constant dense<0.000000e+00> : vector<2x16xf32>
    %321 = tpu.matmul %317, %7, %cst_128 {dimension_numbers = #tpu.dot_dimension_numbers<[1], [0], [0], [1], [0, 0, 1, 1], [], []>} : vector<2x32xf32>, vector<32x16xf32>, vector<2x16xf32> -> vector<2x16xf32>
    %322 = vector.broadcast %13 : vector<1x16xf32> to vector<2x16xf32>
    %323 = arith.addf %321, %322 : vector<2x16xf32>
    %cst_129 = arith.constant dense<0.000000e+00> : vector<2x16xf32>
    %324 = tpu.matmul %317, %8, %cst_129 {dimension_numbers = #tpu.dot_dimension_numbers<[1], [0], [0], [1], [0, 0, 1, 1], [], []>} : vector<2x32xf32>, vector<32x16xf32>, vector<2x16xf32> -> vector<2x16xf32>
    %325 = vector.broadcast %14 : vector<1x16xf32> to vector<2x16xf32>
    %326 = arith.addf %324, %325 : vector<2x16xf32>
    %cst_130 = arith.constant dense<0.000000e+00> : vector<2x16xf32>
    %327 = tpu.matmul %317, %9, %cst_130 {dimension_numbers = #tpu.dot_dimension_numbers<[1], [0], [0], [1], [0, 0, 1, 1], [], []>} : vector<2x32xf32>, vector<32x16xf32>, vector<2x16xf32> -> vector<2x16xf32>
    %328 = vector.broadcast %15 : vector<1x16xf32> to vector<2x16xf32>
    %329 = arith.addf %327, %328 : vector<2x16xf32>
    %cst_131 = arith.constant dense<0.000000e+00> : vector<2x16xf32>
    %330 = tpu.matmul %318, %10, %cst_131 {dimension_numbers = #tpu.dot_dimension_numbers<[1], [0], [0], [1], [0, 0, 1, 1], [], []>} : vector<2x16xf32>, vector<16x16xf32>, vector<2x16xf32> -> vector<2x16xf32>
    %cst_132 = arith.constant dense<0.000000e+00> : vector<2x16xf32>
    %331 = tpu.matmul %318, %11, %cst_132 {dimension_numbers = #tpu.dot_dimension_numbers<[1], [0], [0], [1], [0, 0, 1, 1], [], []>} : vector<2x16xf32>, vector<16x16xf32>, vector<2x16xf32> -> vector<2x16xf32>
    %cst_133 = arith.constant dense<0.000000e+00> : vector<2x16xf32>
    %332 = tpu.matmul %318, %12, %cst_133 {dimension_numbers = #tpu.dot_dimension_numbers<[1], [0], [0], [1], [0, 0, 1, 1], [], []>} : vector<2x16xf32>, vector<16x16xf32>, vector<2x16xf32> -> vector<2x16xf32>
    %333 = vector.broadcast %16 : vector<1x16xf32> to vector<2x16xf32>
    %334 = arith.addf %332, %333 : vector<2x16xf32>
    %335 = arith.addf %323, %330 : vector<2x16xf32>
    %336 = arith.negf %335 : vector<2x16xf32>
    %337 = math.exp %336 : vector<2x16xf32>
    %cst_134 = arith.constant 1.000000e+00 : f32
    %338 = vector.broadcast %cst_134 : f32 to vector<2x16xf32>
    %339 = arith.addf %338, %337 : vector<2x16xf32>
    %340 = arith.divf %338, %339 : vector<2x16xf32>
    %341 = arith.addf %326, %331 : vector<2x16xf32>
    %342 = arith.negf %341 : vector<2x16xf32>
    %343 = math.exp %342 : vector<2x16xf32>
    %cst_135 = arith.constant 1.000000e+00 : f32
    %344 = vector.broadcast %cst_135 : f32 to vector<2x16xf32>
    %345 = arith.addf %344, %343 : vector<2x16xf32>
    %346 = arith.divf %344, %345 : vector<2x16xf32>
    %347 = arith.mulf %340, %334 : vector<2x16xf32>
    %348 = arith.addf %329, %347 : vector<2x16xf32>
    %349 = math.tanh %348 : vector<2x16xf32>
    %cst_136 = arith.constant 1.000000e+00 : f32
    %350 = vector.broadcast %cst_136 : f32 to vector<2x16xf32>
    %351 = arith.subf %350, %346 : vector<2x16xf32>
    %352 = arith.mulf %351, %349 : vector<2x16xf32>
    %353 = arith.mulf %346, %318 : vector<2x16xf32>
    %354 = arith.addf %352, %353 : vector<2x16xf32>
    %cst_137 = arith.constant dense<0.000000e+00> : vector<2x32xf32>
    %355 = tpu.matmul %317, %3, %cst_137 {dimension_numbers = #tpu.dot_dimension_numbers<[1], [0], [0], [1], [0, 0, 1, 1], [], []>} : vector<2x32xf32>, vector<32x32xf32>, vector<2x32xf32> -> vector<2x32xf32>
    %cst_138 = arith.constant dense<0.000000e+00> : vector<2x32xf32>
    %356 = tpu.matmul %317, %4, %cst_138 {dimension_numbers = #tpu.dot_dimension_numbers<[1], [0], [0], [1], [0, 0, 1, 1], [], []>} : vector<2x32xf32>, vector<32x32xf32>, vector<2x32xf32> -> vector<2x32xf32>
    %cst_139 = arith.constant dense<0.000000e+00> : vector<2x32xf32>
    %357 = tpu.matmul %317, %5, %cst_139 {dimension_numbers = #tpu.dot_dimension_numbers<[1], [0], [0], [1], [0, 0, 1, 1], [], []>} : vector<2x32xf32>, vector<32x32xf32>, vector<2x32xf32> -> vector<2x32xf32>
    %358 = vector.broadcast %6 : vector<1x32xf32> to vector<2x32xf32>
    %359 = arith.addf %357, %358 : vector<2x32xf32>
    %360 = arith.index_cast %c4_i32 : i32 to index
    %c0_140 = arith.constant 0 : index
    %c0_141 = arith.constant 0 : index
    %361 = vector.load %arg2[%360, %c0_140, %c0_141] : memref<8x2x32xf32, #tpu.memory_space<vmem>>, vector<1x2x32xf32>
    %362 = vector.shape_cast %361 : vector<1x2x32xf32> to vector<2x32xf32>
    %363 = arith.addf %362, %355 : vector<2x32xf32>
    %364 = arith.negf %363 : vector<2x32xf32>
    %365 = math.exp %364 : vector<2x32xf32>
    %cst_142 = arith.constant 1.000000e+00 : f32
    %366 = vector.broadcast %cst_142 : f32 to vector<2x32xf32>
    %367 = arith.addf %366, %365 : vector<2x32xf32>
    %368 = arith.divf %366, %367 : vector<2x32xf32>
    %369 = arith.index_cast %c4_i32 : i32 to index
    %c0_143 = arith.constant 0 : index
    %c0_144 = arith.constant 0 : index
    %370 = vector.load %arg3[%369, %c0_143, %c0_144] : memref<8x2x32xf32, #tpu.memory_space<vmem>>, vector<1x2x32xf32>
    %371 = vector.shape_cast %370 : vector<1x2x32xf32> to vector<2x32xf32>
    %372 = arith.addf %371, %356 : vector<2x32xf32>
    %373 = arith.negf %372 : vector<2x32xf32>
    %374 = math.exp %373 : vector<2x32xf32>
    %cst_145 = arith.constant 1.000000e+00 : f32
    %375 = vector.broadcast %cst_145 : f32 to vector<2x32xf32>
    %376 = arith.addf %375, %374 : vector<2x32xf32>
    %377 = arith.divf %375, %376 : vector<2x32xf32>
    %378 = arith.index_cast %c4_i32 : i32 to index
    %c0_146 = arith.constant 0 : index
    %c0_147 = arith.constant 0 : index
    %379 = vector.load %arg4[%378, %c0_146, %c0_147] : memref<8x2x32xf32, #tpu.memory_space<vmem>>, vector<1x2x32xf32>
    %380 = vector.shape_cast %379 : vector<1x2x32xf32> to vector<2x32xf32>
    %381 = arith.mulf %368, %359 : vector<2x32xf32>
    %382 = arith.addf %380, %381 : vector<2x32xf32>
    %383 = math.tanh %382 : vector<2x32xf32>
    %cst_148 = arith.constant 1.000000e+00 : f32
    %384 = vector.broadcast %cst_148 : f32 to vector<2x32xf32>
    %385 = arith.subf %384, %377 : vector<2x32xf32>
    %386 = arith.mulf %385, %383 : vector<2x32xf32>
    %387 = arith.mulf %377, %317 : vector<2x32xf32>
    %388 = arith.addf %386, %387 : vector<2x32xf32>
    %c8_i32_149 = arith.constant 8 : i32
    %389 = arith.cmpi slt, %320, %c8_i32_149 : i32
    %c0_i32_150 = arith.constant 0 : i32
    %390 = arith.cmpi sgt, %320, %c0_i32_150 : i32
    %391 = arith.andi %390, %389 : i1
    %392 = arith.select %389, %388, %317 : vector<2x32xf32>
    %393 = arith.select %391, %354, %318 : vector<2x16xf32>
    %c5_i32 = arith.constant 5 : i32
    %c8_i32_151 = arith.constant 8 : i32
    %394 = arith.muli %arg1, %c8_i32_151 : i32
    %395 = arith.addi %394, %c5_i32 : i32
    %cst_152 = arith.constant dense<0.000000e+00> : vector<2x16xf32>
    %396 = tpu.matmul %392, %7, %cst_152 {dimension_numbers = #tpu.dot_dimension_numbers<[1], [0], [0], [1], [0, 0, 1, 1], [], []>} : vector<2x32xf32>, vector<32x16xf32>, vector<2x16xf32> -> vector<2x16xf32>
    %397 = vector.broadcast %13 : vector<1x16xf32> to vector<2x16xf32>
    %398 = arith.addf %396, %397 : vector<2x16xf32>
    %cst_153 = arith.constant dense<0.000000e+00> : vector<2x16xf32>
    %399 = tpu.matmul %392, %8, %cst_153 {dimension_numbers = #tpu.dot_dimension_numbers<[1], [0], [0], [1], [0, 0, 1, 1], [], []>} : vector<2x32xf32>, vector<32x16xf32>, vector<2x16xf32> -> vector<2x16xf32>
    %400 = vector.broadcast %14 : vector<1x16xf32> to vector<2x16xf32>
    %401 = arith.addf %399, %400 : vector<2x16xf32>
    %cst_154 = arith.constant dense<0.000000e+00> : vector<2x16xf32>
    %402 = tpu.matmul %392, %9, %cst_154 {dimension_numbers = #tpu.dot_dimension_numbers<[1], [0], [0], [1], [0, 0, 1, 1], [], []>} : vector<2x32xf32>, vector<32x16xf32>, vector<2x16xf32> -> vector<2x16xf32>
    %403 = vector.broadcast %15 : vector<1x16xf32> to vector<2x16xf32>
    %404 = arith.addf %402, %403 : vector<2x16xf32>
    %cst_155 = arith.constant dense<0.000000e+00> : vector<2x16xf32>
    %405 = tpu.matmul %393, %10, %cst_155 {dimension_numbers = #tpu.dot_dimension_numbers<[1], [0], [0], [1], [0, 0, 1, 1], [], []>} : vector<2x16xf32>, vector<16x16xf32>, vector<2x16xf32> -> vector<2x16xf32>
    %cst_156 = arith.constant dense<0.000000e+00> : vector<2x16xf32>
    %406 = tpu.matmul %393, %11, %cst_156 {dimension_numbers = #tpu.dot_dimension_numbers<[1], [0], [0], [1], [0, 0, 1, 1], [], []>} : vector<2x16xf32>, vector<16x16xf32>, vector<2x16xf32> -> vector<2x16xf32>
    %cst_157 = arith.constant dense<0.000000e+00> : vector<2x16xf32>
    %407 = tpu.matmul %393, %12, %cst_157 {dimension_numbers = #tpu.dot_dimension_numbers<[1], [0], [0], [1], [0, 0, 1, 1], [], []>} : vector<2x16xf32>, vector<16x16xf32>, vector<2x16xf32> -> vector<2x16xf32>
    %408 = vector.broadcast %16 : vector<1x16xf32> to vector<2x16xf32>
    %409 = arith.addf %407, %408 : vector<2x16xf32>
    %410 = arith.addf %398, %405 : vector<2x16xf32>
    %411 = arith.negf %410 : vector<2x16xf32>
    %412 = math.exp %411 : vector<2x16xf32>
    %cst_158 = arith.constant 1.000000e+00 : f32
    %413 = vector.broadcast %cst_158 : f32 to vector<2x16xf32>
    %414 = arith.addf %413, %412 : vector<2x16xf32>
    %415 = arith.divf %413, %414 : vector<2x16xf32>
    %416 = arith.addf %401, %406 : vector<2x16xf32>
    %417 = arith.negf %416 : vector<2x16xf32>
    %418 = math.exp %417 : vector<2x16xf32>
    %cst_159 = arith.constant 1.000000e+00 : f32
    %419 = vector.broadcast %cst_159 : f32 to vector<2x16xf32>
    %420 = arith.addf %419, %418 : vector<2x16xf32>
    %421 = arith.divf %419, %420 : vector<2x16xf32>
    %422 = arith.mulf %415, %409 : vector<2x16xf32>
    %423 = arith.addf %404, %422 : vector<2x16xf32>
    %424 = math.tanh %423 : vector<2x16xf32>
    %cst_160 = arith.constant 1.000000e+00 : f32
    %425 = vector.broadcast %cst_160 : f32 to vector<2x16xf32>
    %426 = arith.subf %425, %421 : vector<2x16xf32>
    %427 = arith.mulf %426, %424 : vector<2x16xf32>
    %428 = arith.mulf %421, %393 : vector<2x16xf32>
    %429 = arith.addf %427, %428 : vector<2x16xf32>
    %cst_161 = arith.constant dense<0.000000e+00> : vector<2x32xf32>
    %430 = tpu.matmul %392, %3, %cst_161 {dimension_numbers = #tpu.dot_dimension_numbers<[1], [0], [0], [1], [0, 0, 1, 1], [], []>} : vector<2x32xf32>, vector<32x32xf32>, vector<2x32xf32> -> vector<2x32xf32>
    %cst_162 = arith.constant dense<0.000000e+00> : vector<2x32xf32>
    %431 = tpu.matmul %392, %4, %cst_162 {dimension_numbers = #tpu.dot_dimension_numbers<[1], [0], [0], [1], [0, 0, 1, 1], [], []>} : vector<2x32xf32>, vector<32x32xf32>, vector<2x32xf32> -> vector<2x32xf32>
    %cst_163 = arith.constant dense<0.000000e+00> : vector<2x32xf32>
    %432 = tpu.matmul %392, %5, %cst_163 {dimension_numbers = #tpu.dot_dimension_numbers<[1], [0], [0], [1], [0, 0, 1, 1], [], []>} : vector<2x32xf32>, vector<32x32xf32>, vector<2x32xf32> -> vector<2x32xf32>
    %433 = vector.broadcast %6 : vector<1x32xf32> to vector<2x32xf32>
    %434 = arith.addf %432, %433 : vector<2x32xf32>
    %435 = arith.index_cast %c5_i32 : i32 to index
    %c0_164 = arith.constant 0 : index
    %c0_165 = arith.constant 0 : index
    %436 = vector.load %arg2[%435, %c0_164, %c0_165] : memref<8x2x32xf32, #tpu.memory_space<vmem>>, vector<1x2x32xf32>
    %437 = vector.shape_cast %436 : vector<1x2x32xf32> to vector<2x32xf32>
    %438 = arith.addf %437, %430 : vector<2x32xf32>
    %439 = arith.negf %438 : vector<2x32xf32>
    %440 = math.exp %439 : vector<2x32xf32>
    %cst_166 = arith.constant 1.000000e+00 : f32
    %441 = vector.broadcast %cst_166 : f32 to vector<2x32xf32>
    %442 = arith.addf %441, %440 : vector<2x32xf32>
    %443 = arith.divf %441, %442 : vector<2x32xf32>
    %444 = arith.index_cast %c5_i32 : i32 to index
    %c0_167 = arith.constant 0 : index
    %c0_168 = arith.constant 0 : index
    %445 = vector.load %arg3[%444, %c0_167, %c0_168] : memref<8x2x32xf32, #tpu.memory_space<vmem>>, vector<1x2x32xf32>
    %446 = vector.shape_cast %445 : vector<1x2x32xf32> to vector<2x32xf32>
    %447 = arith.addf %446, %431 : vector<2x32xf32>
    %448 = arith.negf %447 : vector<2x32xf32>
    %449 = math.exp %448 : vector<2x32xf32>
    %cst_169 = arith.constant 1.000000e+00 : f32
    %450 = vector.broadcast %cst_169 : f32 to vector<2x32xf32>
    %451 = arith.addf %450, %449 : vector<2x32xf32>
    %452 = arith.divf %450, %451 : vector<2x32xf32>
    %453 = arith.index_cast %c5_i32 : i32 to index
    %c0_170 = arith.constant 0 : index
    %c0_171 = arith.constant 0 : index
    %454 = vector.load %arg4[%453, %c0_170, %c0_171] : memref<8x2x32xf32, #tpu.memory_space<vmem>>, vector<1x2x32xf32>
    %455 = vector.shape_cast %454 : vector<1x2x32xf32> to vector<2x32xf32>
    %456 = arith.mulf %443, %434 : vector<2x32xf32>
    %457 = arith.addf %455, %456 : vector<2x32xf32>
    %458 = math.tanh %457 : vector<2x32xf32>
    %cst_172 = arith.constant 1.000000e+00 : f32
    %459 = vector.broadcast %cst_172 : f32 to vector<2x32xf32>
    %460 = arith.subf %459, %452 : vector<2x32xf32>
    %461 = arith.mulf %460, %458 : vector<2x32xf32>
    %462 = arith.mulf %452, %392 : vector<2x32xf32>
    %463 = arith.addf %461, %462 : vector<2x32xf32>
    %c8_i32_173 = arith.constant 8 : i32
    %464 = arith.cmpi slt, %395, %c8_i32_173 : i32
    %c0_i32_174 = arith.constant 0 : i32
    %465 = arith.cmpi sgt, %395, %c0_i32_174 : i32
    %466 = arith.andi %465, %464 : i1
    %467 = arith.select %464, %463, %392 : vector<2x32xf32>
    %468 = arith.select %466, %429, %393 : vector<2x16xf32>
    %c6_i32 = arith.constant 6 : i32
    %c8_i32_175 = arith.constant 8 : i32
    %469 = arith.muli %arg1, %c8_i32_175 : i32
    %470 = arith.addi %469, %c6_i32 : i32
    %cst_176 = arith.constant dense<0.000000e+00> : vector<2x16xf32>
    %471 = tpu.matmul %467, %7, %cst_176 {dimension_numbers = #tpu.dot_dimension_numbers<[1], [0], [0], [1], [0, 0, 1, 1], [], []>} : vector<2x32xf32>, vector<32x16xf32>, vector<2x16xf32> -> vector<2x16xf32>
    %472 = vector.broadcast %13 : vector<1x16xf32> to vector<2x16xf32>
    %473 = arith.addf %471, %472 : vector<2x16xf32>
    %cst_177 = arith.constant dense<0.000000e+00> : vector<2x16xf32>
    %474 = tpu.matmul %467, %8, %cst_177 {dimension_numbers = #tpu.dot_dimension_numbers<[1], [0], [0], [1], [0, 0, 1, 1], [], []>} : vector<2x32xf32>, vector<32x16xf32>, vector<2x16xf32> -> vector<2x16xf32>
    %475 = vector.broadcast %14 : vector<1x16xf32> to vector<2x16xf32>
    %476 = arith.addf %474, %475 : vector<2x16xf32>
    %cst_178 = arith.constant dense<0.000000e+00> : vector<2x16xf32>
    %477 = tpu.matmul %467, %9, %cst_178 {dimension_numbers = #tpu.dot_dimension_numbers<[1], [0], [0], [1], [0, 0, 1, 1], [], []>} : vector<2x32xf32>, vector<32x16xf32>, vector<2x16xf32> -> vector<2x16xf32>
    %478 = vector.broadcast %15 : vector<1x16xf32> to vector<2x16xf32>
    %479 = arith.addf %477, %478 : vector<2x16xf32>
    %cst_179 = arith.constant dense<0.000000e+00> : vector<2x16xf32>
    %480 = tpu.matmul %468, %10, %cst_179 {dimension_numbers = #tpu.dot_dimension_numbers<[1], [0], [0], [1], [0, 0, 1, 1], [], []>} : vector<2x16xf32>, vector<16x16xf32>, vector<2x16xf32> -> vector<2x16xf32>
    %cst_180 = arith.constant dense<0.000000e+00> : vector<2x16xf32>
    %481 = tpu.matmul %468, %11, %cst_180 {dimension_numbers = #tpu.dot_dimension_numbers<[1], [0], [0], [1], [0, 0, 1, 1], [], []>} : vector<2x16xf32>, vector<16x16xf32>, vector<2x16xf32> -> vector<2x16xf32>
    %cst_181 = arith.constant dense<0.000000e+00> : vector<2x16xf32>
    %482 = tpu.matmul %468, %12, %cst_181 {dimension_numbers = #tpu.dot_dimension_numbers<[1], [0], [0], [1], [0, 0, 1, 1], [], []>} : vector<2x16xf32>, vector<16x16xf32>, vector<2x16xf32> -> vector<2x16xf32>
    %483 = vector.broadcast %16 : vector<1x16xf32> to vector<2x16xf32>
    %484 = arith.addf %482, %483 : vector<2x16xf32>
    %485 = arith.addf %473, %480 : vector<2x16xf32>
    %486 = arith.negf %485 : vector<2x16xf32>
    %487 = math.exp %486 : vector<2x16xf32>
    %cst_182 = arith.constant 1.000000e+00 : f32
    %488 = vector.broadcast %cst_182 : f32 to vector<2x16xf32>
    %489 = arith.addf %488, %487 : vector<2x16xf32>
    %490 = arith.divf %488, %489 : vector<2x16xf32>
    %491 = arith.addf %476, %481 : vector<2x16xf32>
    %492 = arith.negf %491 : vector<2x16xf32>
    %493 = math.exp %492 : vector<2x16xf32>
    %cst_183 = arith.constant 1.000000e+00 : f32
    %494 = vector.broadcast %cst_183 : f32 to vector<2x16xf32>
    %495 = arith.addf %494, %493 : vector<2x16xf32>
    %496 = arith.divf %494, %495 : vector<2x16xf32>
    %497 = arith.mulf %490, %484 : vector<2x16xf32>
    %498 = arith.addf %479, %497 : vector<2x16xf32>
    %499 = math.tanh %498 : vector<2x16xf32>
    %cst_184 = arith.constant 1.000000e+00 : f32
    %500 = vector.broadcast %cst_184 : f32 to vector<2x16xf32>
    %501 = arith.subf %500, %496 : vector<2x16xf32>
    %502 = arith.mulf %501, %499 : vector<2x16xf32>
    %503 = arith.mulf %496, %468 : vector<2x16xf32>
    %504 = arith.addf %502, %503 : vector<2x16xf32>
    %cst_185 = arith.constant dense<0.000000e+00> : vector<2x32xf32>
    %505 = tpu.matmul %467, %3, %cst_185 {dimension_numbers = #tpu.dot_dimension_numbers<[1], [0], [0], [1], [0, 0, 1, 1], [], []>} : vector<2x32xf32>, vector<32x32xf32>, vector<2x32xf32> -> vector<2x32xf32>
    %cst_186 = arith.constant dense<0.000000e+00> : vector<2x32xf32>
    %506 = tpu.matmul %467, %4, %cst_186 {dimension_numbers = #tpu.dot_dimension_numbers<[1], [0], [0], [1], [0, 0, 1, 1], [], []>} : vector<2x32xf32>, vector<32x32xf32>, vector<2x32xf32> -> vector<2x32xf32>
    %cst_187 = arith.constant dense<0.000000e+00> : vector<2x32xf32>
    %507 = tpu.matmul %467, %5, %cst_187 {dimension_numbers = #tpu.dot_dimension_numbers<[1], [0], [0], [1], [0, 0, 1, 1], [], []>} : vector<2x32xf32>, vector<32x32xf32>, vector<2x32xf32> -> vector<2x32xf32>
    %508 = vector.broadcast %6 : vector<1x32xf32> to vector<2x32xf32>
    %509 = arith.addf %507, %508 : vector<2x32xf32>
    %510 = arith.index_cast %c6_i32 : i32 to index
    %c0_188 = arith.constant 0 : index
    %c0_189 = arith.constant 0 : index
    %511 = vector.load %arg2[%510, %c0_188, %c0_189] : memref<8x2x32xf32, #tpu.memory_space<vmem>>, vector<1x2x32xf32>
    %512 = vector.shape_cast %511 : vector<1x2x32xf32> to vector<2x32xf32>
    %513 = arith.addf %512, %505 : vector<2x32xf32>
    %514 = arith.negf %513 : vector<2x32xf32>
    %515 = math.exp %514 : vector<2x32xf32>
    %cst_190 = arith.constant 1.000000e+00 : f32
    %516 = vector.broadcast %cst_190 : f32 to vector<2x32xf32>
    %517 = arith.addf %516, %515 : vector<2x32xf32>
    %518 = arith.divf %516, %517 : vector<2x32xf32>
    %519 = arith.index_cast %c6_i32 : i32 to index
    %c0_191 = arith.constant 0 : index
    %c0_192 = arith.constant 0 : index
    %520 = vector.load %arg3[%519, %c0_191, %c0_192] : memref<8x2x32xf32, #tpu.memory_space<vmem>>, vector<1x2x32xf32>
    %521 = vector.shape_cast %520 : vector<1x2x32xf32> to vector<2x32xf32>
    %522 = arith.addf %521, %506 : vector<2x32xf32>
    %523 = arith.negf %522 : vector<2x32xf32>
    %524 = math.exp %523 : vector<2x32xf32>
    %cst_193 = arith.constant 1.000000e+00 : f32
    %525 = vector.broadcast %cst_193 : f32 to vector<2x32xf32>
    %526 = arith.addf %525, %524 : vector<2x32xf32>
    %527 = arith.divf %525, %526 : vector<2x32xf32>
    %528 = arith.index_cast %c6_i32 : i32 to index
    %c0_194 = arith.constant 0 : index
    %c0_195 = arith.constant 0 : index
    %529 = vector.load %arg4[%528, %c0_194, %c0_195] : memref<8x2x32xf32, #tpu.memory_space<vmem>>, vector<1x2x32xf32>
    %530 = vector.shape_cast %529 : vector<1x2x32xf32> to vector<2x32xf32>
    %531 = arith.mulf %518, %509 : vector<2x32xf32>
    %532 = arith.addf %530, %531 : vector<2x32xf32>
    %533 = math.tanh %532 : vector<2x32xf32>
    %cst_196 = arith.constant 1.000000e+00 : f32
    %534 = vector.broadcast %cst_196 : f32 to vector<2x32xf32>
    %535 = arith.subf %534, %527 : vector<2x32xf32>
    %536 = arith.mulf %535, %533 : vector<2x32xf32>
    %537 = arith.mulf %527, %467 : vector<2x32xf32>
    %538 = arith.addf %536, %537 : vector<2x32xf32>
    %c8_i32_197 = arith.constant 8 : i32
    %539 = arith.cmpi slt, %470, %c8_i32_197 : i32
    %c0_i32_198 = arith.constant 0 : i32
    %540 = arith.cmpi sgt, %470, %c0_i32_198 : i32
    %541 = arith.andi %540, %539 : i1
    %542 = arith.select %539, %538, %467 : vector<2x32xf32>
    %543 = arith.select %541, %504, %468 : vector<2x16xf32>
    %c7_i32 = arith.constant 7 : i32
    %c8_i32_199 = arith.constant 8 : i32
    %544 = arith.muli %arg1, %c8_i32_199 : i32
    %545 = arith.addi %544, %c7_i32 : i32
    %cst_200 = arith.constant dense<0.000000e+00> : vector<2x16xf32>
    %546 = tpu.matmul %542, %7, %cst_200 {dimension_numbers = #tpu.dot_dimension_numbers<[1], [0], [0], [1], [0, 0, 1, 1], [], []>} : vector<2x32xf32>, vector<32x16xf32>, vector<2x16xf32> -> vector<2x16xf32>
    %547 = vector.broadcast %13 : vector<1x16xf32> to vector<2x16xf32>
    %548 = arith.addf %546, %547 : vector<2x16xf32>
    %cst_201 = arith.constant dense<0.000000e+00> : vector<2x16xf32>
    %549 = tpu.matmul %542, %8, %cst_201 {dimension_numbers = #tpu.dot_dimension_numbers<[1], [0], [0], [1], [0, 0, 1, 1], [], []>} : vector<2x32xf32>, vector<32x16xf32>, vector<2x16xf32> -> vector<2x16xf32>
    %550 = vector.broadcast %14 : vector<1x16xf32> to vector<2x16xf32>
    %551 = arith.addf %549, %550 : vector<2x16xf32>
    %cst_202 = arith.constant dense<0.000000e+00> : vector<2x16xf32>
    %552 = tpu.matmul %542, %9, %cst_202 {dimension_numbers = #tpu.dot_dimension_numbers<[1], [0], [0], [1], [0, 0, 1, 1], [], []>} : vector<2x32xf32>, vector<32x16xf32>, vector<2x16xf32> -> vector<2x16xf32>
    %553 = vector.broadcast %15 : vector<1x16xf32> to vector<2x16xf32>
    %554 = arith.addf %552, %553 : vector<2x16xf32>
    %cst_203 = arith.constant dense<0.000000e+00> : vector<2x16xf32>
    %555 = tpu.matmul %543, %10, %cst_203 {dimension_numbers = #tpu.dot_dimension_numbers<[1], [0], [0], [1], [0, 0, 1, 1], [], []>} : vector<2x16xf32>, vector<16x16xf32>, vector<2x16xf32> -> vector<2x16xf32>
    %cst_204 = arith.constant dense<0.000000e+00> : vector<2x16xf32>
    %556 = tpu.matmul %543, %11, %cst_204 {dimension_numbers = #tpu.dot_dimension_numbers<[1], [0], [0], [1], [0, 0, 1, 1], [], []>} : vector<2x16xf32>, vector<16x16xf32>, vector<2x16xf32> -> vector<2x16xf32>
    %cst_205 = arith.constant dense<0.000000e+00> : vector<2x16xf32>
    %557 = tpu.matmul %543, %12, %cst_205 {dimension_numbers = #tpu.dot_dimension_numbers<[1], [0], [0], [1], [0, 0, 1, 1], [], []>} : vector<2x16xf32>, vector<16x16xf32>, vector<2x16xf32> -> vector<2x16xf32>
    %558 = vector.broadcast %16 : vector<1x16xf32> to vector<2x16xf32>
    %559 = arith.addf %557, %558 : vector<2x16xf32>
    %560 = arith.addf %548, %555 : vector<2x16xf32>
    %561 = arith.negf %560 : vector<2x16xf32>
    %562 = math.exp %561 : vector<2x16xf32>
    %cst_206 = arith.constant 1.000000e+00 : f32
    %563 = vector.broadcast %cst_206 : f32 to vector<2x16xf32>
    %564 = arith.addf %563, %562 : vector<2x16xf32>
    %565 = arith.divf %563, %564 : vector<2x16xf32>
    %566 = arith.addf %551, %556 : vector<2x16xf32>
    %567 = arith.negf %566 : vector<2x16xf32>
    %568 = math.exp %567 : vector<2x16xf32>
    %cst_207 = arith.constant 1.000000e+00 : f32
    %569 = vector.broadcast %cst_207 : f32 to vector<2x16xf32>
    %570 = arith.addf %569, %568 : vector<2x16xf32>
    %571 = arith.divf %569, %570 : vector<2x16xf32>
    %572 = arith.mulf %565, %559 : vector<2x16xf32>
    %573 = arith.addf %554, %572 : vector<2x16xf32>
    %574 = math.tanh %573 : vector<2x16xf32>
    %cst_208 = arith.constant 1.000000e+00 : f32
    %575 = vector.broadcast %cst_208 : f32 to vector<2x16xf32>
    %576 = arith.subf %575, %571 : vector<2x16xf32>
    %577 = arith.mulf %576, %574 : vector<2x16xf32>
    %578 = arith.mulf %571, %543 : vector<2x16xf32>
    %579 = arith.addf %577, %578 : vector<2x16xf32>
    %cst_209 = arith.constant dense<0.000000e+00> : vector<2x32xf32>
    %580 = tpu.matmul %542, %3, %cst_209 {dimension_numbers = #tpu.dot_dimension_numbers<[1], [0], [0], [1], [0, 0, 1, 1], [], []>} : vector<2x32xf32>, vector<32x32xf32>, vector<2x32xf32> -> vector<2x32xf32>
    %cst_210 = arith.constant dense<0.000000e+00> : vector<2x32xf32>
    %581 = tpu.matmul %542, %4, %cst_210 {dimension_numbers = #tpu.dot_dimension_numbers<[1], [0], [0], [1], [0, 0, 1, 1], [], []>} : vector<2x32xf32>, vector<32x32xf32>, vector<2x32xf32> -> vector<2x32xf32>
    %cst_211 = arith.constant dense<0.000000e+00> : vector<2x32xf32>
    %582 = tpu.matmul %542, %5, %cst_211 {dimension_numbers = #tpu.dot_dimension_numbers<[1], [0], [0], [1], [0, 0, 1, 1], [], []>} : vector<2x32xf32>, vector<32x32xf32>, vector<2x32xf32> -> vector<2x32xf32>
    %583 = vector.broadcast %6 : vector<1x32xf32> to vector<2x32xf32>
    %584 = arith.addf %582, %583 : vector<2x32xf32>
    %585 = arith.index_cast %c7_i32 : i32 to index
    %c0_212 = arith.constant 0 : index
    %c0_213 = arith.constant 0 : index
    %586 = vector.load %arg2[%585, %c0_212, %c0_213] : memref<8x2x32xf32, #tpu.memory_space<vmem>>, vector<1x2x32xf32>
    %587 = vector.shape_cast %586 : vector<1x2x32xf32> to vector<2x32xf32>
    %588 = arith.addf %587, %580 : vector<2x32xf32>
    %589 = arith.negf %588 : vector<2x32xf32>
    %590 = math.exp %589 : vector<2x32xf32>
    %cst_214 = arith.constant 1.000000e+00 : f32
    %591 = vector.broadcast %cst_214 : f32 to vector<2x32xf32>
    %592 = arith.addf %591, %590 : vector<2x32xf32>
    %593 = arith.divf %591, %592 : vector<2x32xf32>
    %594 = arith.index_cast %c7_i32 : i32 to index
    %c0_215 = arith.constant 0 : index
    %c0_216 = arith.constant 0 : index
    %595 = vector.load %arg3[%594, %c0_215, %c0_216] : memref<8x2x32xf32, #tpu.memory_space<vmem>>, vector<1x2x32xf32>
    %596 = vector.shape_cast %595 : vector<1x2x32xf32> to vector<2x32xf32>
    %597 = arith.addf %596, %581 : vector<2x32xf32>
    %598 = arith.negf %597 : vector<2x32xf32>
    %599 = math.exp %598 : vector<2x32xf32>
    %cst_217 = arith.constant 1.000000e+00 : f32
    %600 = vector.broadcast %cst_217 : f32 to vector<2x32xf32>
    %601 = arith.addf %600, %599 : vector<2x32xf32>
    %602 = arith.divf %600, %601 : vector<2x32xf32>
    %603 = arith.index_cast %c7_i32 : i32 to index
    %c0_218 = arith.constant 0 : index
    %c0_219 = arith.constant 0 : index
    %604 = vector.load %arg4[%603, %c0_218, %c0_219] : memref<8x2x32xf32, #tpu.memory_space<vmem>>, vector<1x2x32xf32>
    %605 = vector.shape_cast %604 : vector<1x2x32xf32> to vector<2x32xf32>
    %606 = arith.mulf %593, %584 : vector<2x32xf32>
    %607 = arith.addf %605, %606 : vector<2x32xf32>
    %608 = math.tanh %607 : vector<2x32xf32>
    %cst_220 = arith.constant 1.000000e+00 : f32
    %609 = vector.broadcast %cst_220 : f32 to vector<2x32xf32>
    %610 = arith.subf %609, %602 : vector<2x32xf32>
    %611 = arith.mulf %610, %608 : vector<2x32xf32>
    %612 = arith.mulf %602, %542 : vector<2x32xf32>
    %613 = arith.addf %611, %612 : vector<2x32xf32>
    %c8_i32_221 = arith.constant 8 : i32
    %614 = arith.cmpi slt, %545, %c8_i32_221 : i32
    %c0_i32_222 = arith.constant 0 : i32
    %615 = arith.cmpi sgt, %545, %c0_i32_222 : i32
    %616 = arith.andi %615, %614 : i1
    %617 = arith.select %614, %613, %542 : vector<2x32xf32>
    %618 = arith.select %616, %579, %543 : vector<2x16xf32>
    %c8_i32_223 = arith.constant 8 : i32
    %c0_224 = arith.constant 0 : index
    %c0_225 = arith.constant 0 : index
    %619 = vector.load %arg20[%c0_224, %c0_225] : memref<2x32xf32, #tpu.memory_space<vmem>>, vector<2x32xf32>
    tpu.vector_store %arg20[%c0_224, %c0_225], %617 {strides = array<i32>} : memref<2x32xf32, #tpu.memory_space<vmem>>, vector<2x32xf32>,
    %c0_226 = arith.constant 0 : index
    %c0_227 = arith.constant 0 : index
    %620 = vector.load %arg21[%c0_226, %c0_227] : memref<2x16xf32, #tpu.memory_space<vmem>>, vector<2x16xf32>
    tpu.vector_store %arg21[%c0_226, %c0_227], %618 {strides = array<i32>} : memref<2x16xf32, #tpu.memory_space<vmem>>, vector<2x16xf32>,
    %c0_i32_228 = arith.constant 0 : i32
    %621 = arith.cmpi eq, %arg1, %c0_i32_228 : i32
    %622 = arith.extui %621 : i1 to i32
    %c0_i32_229 = arith.constant 0 : i32
    %623 = arith.cmpi ne, %622, %c0_i32_229 : i32
    scf.if %623 {
      %cst_230 = arith.constant dense<0.000000e+00> : vector<2x16xf32>
      %624 = tpu.matmul %617, %7, %cst_230 {dimension_numbers = #tpu.dot_dimension_numbers<[1], [0], [0], [1], [0, 0, 1, 1], [], []>} : vector<2x32xf32>, vector<32x16xf32>, vector<2x16xf32> -> vector<2x16xf32>
      %625 = vector.broadcast %13 : vector<1x16xf32> to vector<2x16xf32>
      %626 = arith.addf %624, %625 : vector<2x16xf32>
      %cst_231 = arith.constant dense<0.000000e+00> : vector<2x16xf32>
      %627 = tpu.matmul %617, %8, %cst_231 {dimension_numbers = #tpu.dot_dimension_numbers<[1], [0], [0], [1], [0, 0, 1, 1], [], []>} : vector<2x32xf32>, vector<32x16xf32>, vector<2x16xf32> -> vector<2x16xf32>
      %628 = vector.broadcast %14 : vector<1x16xf32> to vector<2x16xf32>
      %629 = arith.addf %627, %628 : vector<2x16xf32>
      %cst_232 = arith.constant dense<0.000000e+00> : vector<2x16xf32>
      %630 = tpu.matmul %617, %9, %cst_232 {dimension_numbers = #tpu.dot_dimension_numbers<[1], [0], [0], [1], [0, 0, 1, 1], [], []>} : vector<2x32xf32>, vector<32x16xf32>, vector<2x16xf32> -> vector<2x16xf32>
      %631 = vector.broadcast %15 : vector<1x16xf32> to vector<2x16xf32>
      %632 = arith.addf %630, %631 : vector<2x16xf32>
      %cst_233 = arith.constant dense<0.000000e+00> : vector<2x16xf32>
      %633 = tpu.matmul %618, %10, %cst_233 {dimension_numbers = #tpu.dot_dimension_numbers<[1], [0], [0], [1], [0, 0, 1, 1], [], []>} : vector<2x16xf32>, vector<16x16xf32>, vector<2x16xf32> -> vector<2x16xf32>
      %cst_234 = arith.constant dense<0.000000e+00> : vector<2x16xf32>
      %634 = tpu.matmul %618, %11, %cst_234 {dimension_numbers = #tpu.dot_dimension_numbers<[1], [0], [0], [1], [0, 0, 1, 1], [], []>} : vector<2x16xf32>, vector<16x16xf32>, vector<2x16xf32> -> vector<2x16xf32>
      %cst_235 = arith.constant dense<0.000000e+00> : vector<2x16xf32>
      %635 = tpu.matmul %618, %12, %cst_235 {dimension_numbers = #tpu.dot_dimension_numbers<[1], [0], [0], [1], [0, 0, 1, 1], [], []>} : vector<2x16xf32>, vector<16x16xf32>, vector<2x16xf32> -> vector<2x16xf32>
      %636 = vector.broadcast %16 : vector<1x16xf32> to vector<2x16xf32>
      %637 = arith.addf %635, %636 : vector<2x16xf32>
      %638 = arith.addf %626, %633 : vector<2x16xf32>
      %639 = arith.negf %638 : vector<2x16xf32>
      %640 = math.exp %639 : vector<2x16xf32>
      %cst_236 = arith.constant 1.000000e+00 : f32
      %641 = vector.broadcast %cst_236 : f32 to vector<2x16xf32>
      %642 = arith.addf %641, %640 : vector<2x16xf32>
      %643 = arith.divf %641, %642 : vector<2x16xf32>
      %644 = arith.addf %629, %634 : vector<2x16xf32>
      %645 = arith.negf %644 : vector<2x16xf32>
      %646 = math.exp %645 : vector<2x16xf32>
      %cst_237 = arith.constant 1.000000e+00 : f32
      %647 = vector.broadcast %cst_237 : f32 to vector<2x16xf32>
      %648 = arith.addf %647, %646 : vector<2x16xf32>
      %649 = arith.divf %647, %648 : vector<2x16xf32>
      %650 = arith.mulf %643, %637 : vector<2x16xf32>
      %651 = arith.addf %632, %650 : vector<2x16xf32>
      %652 = math.tanh %651 : vector<2x16xf32>
      %cst_238 = arith.constant 1.000000e+00 : f32
      %653 = vector.broadcast %cst_238 : f32 to vector<2x16xf32>
      %654 = arith.subf %653, %649 : vector<2x16xf32>
      %655 = arith.mulf %654, %652 : vector<2x16xf32>
      %656 = arith.mulf %649, %618 : vector<2x16xf32>
      %657 = arith.addf %655, %656 : vector<2x16xf32>
      %c0_239 = arith.constant 0 : index
      %c0_240 = arith.constant 0 : index
      %658 = vector.load %arg19[%c0_239, %c0_240] : memref<2x16xf32, #tpu.memory_space<vmem>>, vector<2x16xf32>
      tpu.vector_store %arg19[%c0_239, %c0_240], %657 {strides = array<i32>} : memref<2x16xf32, #tpu.memory_space<vmem>>, vector<2x16xf32>,
    } else {
    }
    return
  }
  func.func @transform_0(%arg0: i32, %arg1: i32) -> (i32, i32, i32) {
    %c0_i32 = arith.constant 0 : i32
    %c0_i32_0 = arith.constant 0 : i32
    return %arg1, %arg0, %c0_i32 : i32, i32, i32
  }
  func.func @transform_1(%arg0: i32, %arg1: i32) -> (i32, i32, i32) {
    %c0_i32 = arith.constant 0 : i32
    %c0_i32_0 = arith.constant 0 : i32
    return %arg1, %arg0, %c0_i32 : i32, i32, i32
  }
  func.func @transform_2(%arg0: i32, %arg1: i32) -> (i32, i32, i32) {
    %c0_i32 = arith.constant 0 : i32
    %c0_i32_0 = arith.constant 0 : i32
    return %arg1, %arg0, %c0_i32 : i32, i32, i32
  }
  func.func @transform_3(%arg0: i32, %arg1: i32) -> (i32, i32) {
    %c0_i32 = arith.constant 0 : i32
    %c0_i32_0 = arith.constant 0 : i32
    %c0_i32_1 = arith.constant 0 : i32
    return %c0_i32, %c0_i32_0 : i32, i32
  }
  func.func @transform_4(%arg0: i32, %arg1: i32) -> (i32, i32) {
    %c0_i32 = arith.constant 0 : i32
    %c0_i32_0 = arith.constant 0 : i32
    %c0_i32_1 = arith.constant 0 : i32
    return %c0_i32, %c0_i32_0 : i32, i32
  }
  func.func @transform_5(%arg0: i32, %arg1: i32) -> (i32, i32) {
    %c0_i32 = arith.constant 0 : i32
    %c0_i32_0 = arith.constant 0 : i32
    %c0_i32_1 = arith.constant 0 : i32
    return %c0_i32, %c0_i32_0 : i32, i32
  }
  func.func @transform_6(%arg0: i32, %arg1: i32) -> (i32, i32) {
    %c0_i32 = arith.constant 0 : i32
    %c0_i32_0 = arith.constant 0 : i32
    %c0_i32_1 = arith.constant 0 : i32
    return %c0_i32, %c0_i32_0 : i32, i32
  }
  func.func @transform_7(%arg0: i32, %arg1: i32) -> (i32, i32) {
    %c0_i32 = arith.constant 0 : i32
    %c0_i32_0 = arith.constant 0 : i32
    %c0_i32_1 = arith.constant 0 : i32
    return %c0_i32, %c0_i32_0 : i32, i32
  }
  func.func @transform_8(%arg0: i32, %arg1: i32) -> (i32, i32) {
    %c0_i32 = arith.constant 0 : i32
    %c0_i32_0 = arith.constant 0 : i32
    %c0_i32_1 = arith.constant 0 : i32
    return %c0_i32, %c0_i32_0 : i32, i32
  }
  func.func @transform_9(%arg0: i32, %arg1: i32) -> (i32, i32) {
    %c0_i32 = arith.constant 0 : i32
    %c0_i32_0 = arith.constant 0 : i32
    %c0_i32_1 = arith.constant 0 : i32
    return %c0_i32, %c0_i32_0 : i32, i32
  }
  func.func @transform_10(%arg0: i32, %arg1: i32) -> (i32, i32) {
    %c0_i32 = arith.constant 0 : i32
    %c0_i32_0 = arith.constant 0 : i32
    %c0_i32_1 = arith.constant 0 : i32
    return %c0_i32, %c0_i32_0 : i32, i32
  }
  func.func @transform_11(%arg0: i32, %arg1: i32) -> (i32, i32) {
    %c0_i32 = arith.constant 0 : i32
    %c0_i32_0 = arith.constant 0 : i32
    %c0_i32_1 = arith.constant 0 : i32
    return %c0_i32, %c0_i32_0 : i32, i32
  }
  func.func @transform_12(%arg0: i32, %arg1: i32) -> (i32, i32) {
    %c0_i32 = arith.constant 0 : i32
    %c0_i32_0 = arith.constant 0 : i32
    %c0_i32_1 = arith.constant 0 : i32
    return %c0_i32, %c0_i32_0 : i32, i32
  }
  func.func @transform_13(%arg0: i32, %arg1: i32) -> (i32, i32) {
    %c0_i32 = arith.constant 0 : i32
    %c0_i32_0 = arith.constant 0 : i32
    %c0_i32_1 = arith.constant 0 : i32
    return %c0_i32, %c0_i32_0 : i32, i32
  }
  func.func @transform_14(%arg0: i32, %arg1: i32) -> (i32, i32) {
    %c0_i32 = arith.constant 0 : i32
    %c0_i32_0 = arith.constant 0 : i32
    %c0_i32_1 = arith.constant 0 : i32
    return %c0_i32, %c0_i32_0 : i32, i32
  }
  func.func @transform_15(%arg0: i32, %arg1: i32) -> (i32, i32) {
    %c0_i32 = arith.constant 0 : i32
    %c0_i32_0 = arith.constant 0 : i32
    %c0_i32_1 = arith.constant 0 : i32
    return %c0_i32, %c0_i32_0 : i32, i32
  }
  func.func @transform_16(%arg0: i32, %arg1: i32) -> (i32, i32) {
    %c0_i32 = arith.constant 0 : i32
    %c0_i32_0 = arith.constant 0 : i32
    %c0_i32_1 = arith.constant 0 : i32
    return %c0_i32, %c0_i32_0 : i32, i32
  }
  func.func @transform_17(%arg0: i32, %arg1: i32) -> (i32, i32) {
    %c0_i32 = arith.constant 0 : i32
    %c0_i32_0 = arith.constant 0 : i32
    return %arg0, %c0_i32 : i32, i32
  }
}

</mosaic_0001>

<bundles_post_ra>
// kernel: encoder_forward.1
= control target key start
LH: loop header
LB: loop body
LE: loop exit
PB: predicated region body
PF: predicated region fallthrough
CT: control target
= control target key end

     0   :  { %s9113_s0 = inlined_call_operand.vmem [shape: f32[8,2,32], index: 0, kind: input, shape index: {}]   ;;  %s9114_s1 = inlined_call_operand.vmem [shape: f32[8,2,32], index: 1, kind: input, shape index: {}]   ;;  %s9115_s2 = inlined_call_operand.vmem [shape: f32[8,2,32], index: 2, kind: input, shape index: {}]   ;;  %s9116_s3 = inlined_call_operand.vmem [shape: f32[32,32], index: 3, kind: input, shape index: {}]   ;;  %s9117_s4 = inlined_call_operand.vmem [shape: f32[32,32], index: 4, kind: input, shape index: {}]   ;;  %s9118_s5 = inlined_call_operand.vmem [shape: f32[32,32], index: 5, kind: input, shape index: {}]   ;;  %s9119_s6 = inlined_call_operand.vmem [shape: f32[1,32], index: 6, kind: input, shape index: {}]   ;;  %s9120_s7 = inlined_call_operand.vmem [shape: f32[32,16], index: 7, kind: input, shape index: {}]   ;;  %s9121_s8 = inlined_call_operand.vmem [shape: f32[32,16], index: 8, kind: input, shape index: {}]   ;;  %s9122_s9 = inlined_call_operand.vmem [shape: f32[32,16], index: 9, kind: input, shape index: {}]   ;;  %s9123_s10 = inlined_call_operand.vmem [shape: f32[16,16], index: 10, kind: input, shape index: {}]   ;;  %s9124_s11 = inlined_call_operand.vmem [shape: f32[16,16], index: 11, kind: input, shape index: {}]   ;;  %s9125_s12 = inlined_call_operand.vmem [shape: f32[16,16], index: 12, kind: input, shape index: {}]   ;;  %s9126_s13 = inlined_call_operand.vmem [shape: f32[1,16], index: 13, kind: input, shape index: {}]   ;;  %s9127_s14 = inlined_call_operand.vmem [shape: f32[1,16], index: 14, kind: input, shape index: {}]   ;;  %s9128_s15 = inlined_call_operand.vmem [shape: f32[1,16], index: 15, kind: input, shape index: {}]   ;;  %s9129_s16 = inlined_call_operand.vmem [shape: f32[1,16], index: 16, kind: input, shape index: {}]   ;;  %s9130_s17 = inlined_call_operand.hbm [shape: f32[2,16], index: 17, kind: output, shape index: {}]  }
   0x1   :  { %9133 = sst [smem:[#allocation7_spill]] %s9113_s0 }
   0x2   :  { %9134 = sst [smem:[#allocation8_spill]] %s9114_s1 }
   0x3   :  { %v7734_v0 = vld [vmem:[%s9121_s8 + $0x18] sm:$0xff]  ;;  %vm61_vm0 = vcmask 254976   ;;  %v7638_v1 = vmov 0.0   ;;  %v7740_v2 = vld [vmem:[%s9121_s8 + $0x10] sm:$0xff]  ;;  %vm7639_vm1 = vmmov 0   ;;  %vm63_vm2 = vcmask 123904  }
   0x4   :  { %6661 = vmatprep.subr.mxu1 %v7638_v1  ;;  %6669 = vmatprep.mubr.msk.f32.mxu1 %vm7639_vm1, %v7638_v1  ;;  %62 = vst.msk [vmem:[#allocation2] sm:$0x3] %vm61_vm0, %v7638_v1  ;;  %v7749_v3 = vld [vmem:[%s9120_s7 + $0x18] sm:$0xff]  ;;  %v7758_v4 = vld [vmem:[%s9120_s7 + $0x10] sm:$0xff]  ;;  %v7764_v5 = vld [vmem:[%s9121_s8 + $0x8] sm:$0xff]  ;;  %vm109_vm3 = vcmask 261120  }
   0x5   :  { %6662 = vmatpush3.msra.mxu1 %v7734_v0  ;;  %6650 = vmatprep.subr.mxu0 %v7638_v1  ;;  %64 = vst.msk [vmem:[#allocation3] sm:$0x3] %vm63_vm2, %v7638_v1  ;;  %v7772_v6 = vld [vmem:[%s9120_s7 + $0x8] sm:$0xff]  ;;  %v7778_v7 = vld [vmem:[%s9121_s8] sm:$0xff]  ;;  %vm335_vm4 = vcmask 130048  }
   0x6   :  { %6663 = vmatprep.subr.mxu1 %v7638_v1  ;;  %6651 = vmatpush3.msra.mxu0 %v7749_v3  ;;  %v7787_v8 = vld [vmem:[%s9123_s10 + $0x8] sm:$0xff]  ;;  %v7797_v10 = vld [vmem:[%s9120_s7] sm:$0xff] }
   0x7   :  { %6664 = vmatpush3.msra.mxu1 %v7740_v2  ;;  %6652 = vmatprep.subr.mxu0 %v7638_v1  ;;  %v7805_v11 = vld [vmem:[%s9123_s10] sm:$0xff] }
   0x8   :  { %6665 = vmatprep.subr.mxu1 %v7638_v1  ;;  %6653 = vmatpush3.msra.mxu0 %v7758_v4 }
   0x9   :  { %6666 = vmatpush3.msra.mxu1 %v7764_v5  ;;  %6654 = vmatprep.subr.mxu0 %v7638_v1 }
   0xa   :  { %6667 = vmatprep.subr.mxu1 %v7638_v1  ;;  %6655 = vmatpush3.msra.mxu0 %v7772_v6 }
   0xb   :  { %6668 = vmatpush3.msra.mxu1 %v7778_v7  ;;  %v7791_v9 = vld [vmem:[#allocation2] sm:$0x3]  ;;  %6656 = vmatprep.subr.mxu0 %v7638_v1 }
   0xc   :  { %6670 = vmatmul.mubr.msk.f32.vlgmr.msra.gmra.mxu1 %vm109_vm3, %v7791_v9  ;;  %6683 = vmatprep.subr.mxu1 %v7638_v1  ;;  %v7810_v12 = vld [vmem:[#allocation3] sm:$0x3] }
   0xd   :  { %6684 = vmatpush3.msra.mxu1 %v7787_v8  ;;  %6687 = vmatprep.mubr.msk.f32.mxu1 %vm7639_vm1, %v7638_v1 }
   0xe   :  { %22 = vsyncpa [#allocation5], 0  ;;  %6685 = vmatprep.subr.mxu1 %v7638_v1  ;;  %v7816_v13 = vld [vmem:[%s9124_s11 + $0x8] sm:$0xff]  ;;  %6657 = vmatpush3.msra.mxu0 %v7797_v10  ;;  %v7828_v14 = vld [vmem:[%s9124_s11] sm:$0xff]  ;;  %s9135_s26 = sld [smem:[#allocation7_spill]] }
   0xf   :  { %6686 = vmatpush3.msra.mxu1 %v7805_v11  ;;  %6658 = vmatprep.mubr.msk.f32.mxu0 %vm7639_vm1, %v7638_v1  ;;  %v7837_v15 = vld [vmem:[%s9116_s3 + $0x18] sm:$0xff]  ;;  %v7854_v17 = vld [vmem:[%s9116_s3 + $0x10] sm:$0xff]  ;;  %v7868_v19 = vld [vmem:[%s9116_s3 + $0x8] sm:$0xff]  ;;  %s9136_s29 = sld [smem:[#allocation8_spill]] }
  0x10   :  { %6688 = vmatmul.mubr.msk.f32.vlgmr.msra.gmra.mxu1 %vm335_vm4, %v7810_v12  ;;  %6690 = vmatprep.subr.mxu1 %v7638_v1  ;;  %v7843_v16 = vld [vmem:[%s9122_s9 + $0x18] sm:$0xff]  ;;  %v7859_v18 = vld [vmem:[%s9122_s9 + $0x10] sm:$0xff]  ;;  %v7873_v20 = vld [vmem:[%s9122_s9 + $0x8] sm:$0xff] }
  0x11   :  { %6691 = vmatpush3.msra.mxu1 %v7816_v13  ;;  %6694 = vmatprep.mubr.msk.f32.mxu1 %vm7639_vm1, %v7638_v1  ;;  %v7882_v21 = vld [vmem:[%s9116_s3] sm:$0xff]  ;;  %v7902_v23 = vld [vmem:[%s9125_s12 + $0x8] sm:$0xff]  ;;  %v7910_v24 = vld [vmem:[%s9118_s5 + $0x18] sm:$0xff] }
  0x12   :  { %6692 = vmatprep.subr.mxu1 %v7638_v1  ;;  %6672 = vmatprep.subr.mxu0 %v7638_v1  ;;  %v7889_v22 = vld [vmem:[%s9122_s9] sm:$0xff]  ;;  %v7927_v26 = vld [vmem:[%s9117_s4 + $0x18] sm:$0xff]  ;;  %v7935_v27 = vld [vmem:[%s9118_s5 + $0x10] sm:$0xff] }
  0x13   :  { %6693 = vmatpush3.msra.mxu1 %v7828_v14  ;;  %6659 = vmatmul.mubr.msk.f32.vlgmr.msra.gmra.mxu0 %vm109_vm3, %v7791_v9  ;;  %v7917_v25 = vld [vmem:[%s9125_s12] sm:$0xff]  ;;  %v7943_v28 = vld [vmem:[%s9117_s4 + $0x10] sm:$0xff]  ;;  %v7951_v29 = vld [vmem:[%s9118_s5 + $0x8] sm:$0xff] }
  0x14   :  { %6695 = vmatmul.mubr.msk.f32.vlgmr.msra.gmra.mxu1 %vm335_vm4, %v7810_v12  ;;  %6704 = vmatprep.subr.mxu1 %v7638_v1  ;;  %v7957_v30 = vld [vmem:[%s9117_s4 + $0x8] sm:$0xff]  ;;  %v7965_v31 = vld [vmem:[%s9118_s5] sm:$0xff] }
  0x15   :  { %6705 = vmatpush3.msra.mxu1 %v7837_v15  ;;  %6673 = vmatpush3.msra.mxu0 %v7843_v16  ;;  %v7971_v32 = vld [vmem:[%s9117_s4] sm:$0xff] }
  0x16   :  { %6706 = vmatprep.subr.mxu1 %v7638_v1  ;;  %6674 = vmatprep.subr.mxu0 %v7638_v1  ;;  %v792_v41 = vld [vmem:[%s9135_s26] sm:$0x3] }
  0x17   :  { %6707 = vmatpush3.msra.mxu1 %v7854_v17  ;;  %6675 = vmatpush3.msra.mxu0 %v7859_v18  ;;  %v800_v50 = vld [vmem:[%s9136_s29] sm:$0x3] }
  0x18   :  { %6708 = vmatprep.subr.mxu1 %v7638_v1  ;;  %6676 = vmatprep.subr.mxu0 %v7638_v1  ;;  %v8016_v59 = vld [vmem:[%s9119_s6] ss:$0 sm:$0xff] }
  0x19   :  { %6709 = vmatpush3.msra.mxu1 %v7868_v19  ;;  %6677 = vmatpush3.msra.mxu0 %v7873_v20 }
  0x1a   :  { %6710 = vmatprep.subr.mxu1 %v7638_v1  ;;  %6712 = vmatprep.mubr.msk.f32.mxu1 %vm7639_vm1, %v7638_v1 }
  0x1b   :  { %6711 = vmatpush3.msra.mxu1 %v7882_v21  ;;  %6678 = vmatprep.subr.mxu0 %v7638_v1 }
  0x1c   :  { %6713 = vmatmul.mubr.msk.f32.vlgmr.msra.gmra.mxu1 %vm109_vm3, %v7791_v9  ;;  %6679 = vmatpush3.msra.mxu0 %v7889_v22 }
  0x1d   :  { %6680 = vmatprep.mubr.msk.f32.mxu0 %vm7639_vm1, %v7638_v1  ;;  %6697 = vmatprep.subr.mxu0 %v7638_v1 }
  0x1e   :  { %6681 = vmatmul.mubr.msk.f32.vlgmr.msra.gmra.mxu0 %vm109_vm3, %v7791_v9  ;;  %6726 = vmatprep.subr.mxu1 %v7638_v1 }
  0x1f   :  { %6698 = vmatpush3.msra.mxu0 %v7902_v23  ;;  %6701 = vmatprep.mubr.msk.f32.mxu0 %vm7639_vm1, %v7638_v1 }
  0x20   :  { %6699 = vmatprep.subr.mxu0 %v7638_v1  ;;  %6727 = vmatpush3.msra.mxu1 %v7910_v24 }
  0x21   :  { %6700 = vmatpush3.msra.mxu0 %v7917_v25  ;;  %6728 = vmatprep.subr.mxu1 %v7638_v1 }
  0x22   :  { %6715 = vmatprep.subr.mxu0 %v7638_v1  ;;  %6702 = vmatmul.mubr.msk.f32.vlgmr.msra.gmra.mxu0 %vm335_vm4, %v7810_v12 }
  0x23   :  { %6716 = vmatpush3.msra.mxu0 %v7927_v26  ;;  %6723 = vmatprep.mubr.msk.f32.mxu0 %vm7639_vm1, %v7638_v1 }
  0x24   :  { %6717 = vmatprep.subr.mxu0 %v7638_v1  ;;  %6729 = vmatpush3.msra.mxu1 %v7935_v27 }
  0x25   :  { %6718 = vmatpush3.msra.mxu0 %v7943_v28  ;;  %6730 = vmatprep.subr.mxu1 %v7638_v1 }
  0x26   :  { %6719 = vmatprep.subr.mxu0 %v7638_v1  ;;  %6731 = vmatpush3.msra.mxu1 %v7951_v29 }
  0x27   :  { %6720 = vmatpush3.msra.mxu0 %v7957_v30  ;;  %6732 = vmatprep.subr.mxu1 %v7638_v1 }
  0x28   :  { %6721 = vmatprep.subr.mxu0 %v7638_v1  ;;  %6733 = vmatpush3.msra.mxu1 %v7965_v31 }
  0x29   :  { %6722 = vmatpush3.msra.mxu0 %v7971_v32  ;;  %6734 = vmatprep.mubr.msk.f32.mxu1 %vm7639_vm1, %v7638_v1 }
  0x2a   :  { %6724 = vmatmul.mubr.msk.f32.vlgmr.msra.gmra.mxu0 %vm109_vm3, %v7791_v9  ;;  %6735 = vmatmul.mubr.msk.f32.vlgmr.msra.gmra.mxu1 %vm109_vm3, %v7791_v9 }
  0x2b   :  { %6737 = vmatprep.subr.mxu0 %v7638_v1  ;;  %6748 = vmatprep.subr.mxu1 %v7638_v1 }
  0x2c   :  { %6738 = vmatpush3.msra.mxu0 %v7749_v3  ;;  %6749 = vmatpush3.msra.mxu1 %v7734_v0 }
  0x2d   :  { %6739 = vmatprep.subr.mxu0 %v7638_v1  ;;  %6750 = vmatprep.subr.mxu1 %v7638_v1 }
  0x2e   :  { %6740 = vmatpush3.msra.mxu0 %v7758_v4  ;;  %6751 = vmatpush3.msra.mxu1 %v7740_v2 }
  0x2f   :  { %6741 = vmatprep.subr.mxu0 %v7638_v1  ;;  %6752 = vmatprep.subr.mxu1 %v7638_v1 }
  0x30   :  { %6742 = vmatpush3.msra.mxu0 %v7772_v6  ;;  %6753 = vmatpush3.msra.mxu1 %v7764_v5 }
  0x31   :  { %6743 = vmatprep.subr.mxu0 %v7638_v1  ;;  %6754 = vmatprep.subr.mxu1 %v7638_v1 }
  0x32   :  { %6744 = vmatpush3.msra.mxu0 %v7797_v10  ;;  %6755 = vmatpush3.msra.mxu1 %v7778_v7 }
  0x33   :  { %6745 = vmatprep.mubr.msk.f32.mxu0 %vm7639_vm1, %v7638_v1  ;;  %6756 = vmatprep.mubr.msk.f32.mxu1 %vm7639_vm1, %v7638_v1 }
  0x34   :  { %6759 = vmatprep.subr.mxu0 %v7638_v1  ;;  %6770 = vmatprep.subr.mxu1 %v7638_v1 }
  0xcc   :  { %v255_v33 = vpop.f32.mrf.mxu1 }
  0xcd   :  { %v808_v33 = vld [vmem:[%s9115_s2] sm:$0x3] }
  0xce   :  { %v6671_v34 = vpop.f32.mrf.mxu1 }
  0xd0   :  { %v405_v35 = vpop.f32.mrf.mxu1 }
  0xd2   :  { %v6689_v36 = vpop.f32.mrf.mxu1 }
  0xd3   :  { %v179_v37 = vpop.f32.mrf.mxu0 }
  0xd4   :  { %v475_v38 = vpop.f32.mrf.mxu1 }
  0xd5   :  { %v6660_v39 = vpop.f32.mrf.mxu0 }
  0xd6   :  { %v6696_v40 = vpop.f32.mrf.mxu1 }
  0xdc   :  { %v642_v42 = vpop.f32.mrf.mxu1 }
  0xdd   :  { %v793_v43 = vadd.f32 %v792_v41, %v642_v42 }
  0xde   :  { %v6714_v44 = vpop.f32.mrf.mxu1  ;;  %v331_v45 = vpop.f32.mrf.mxu0 }
  0xdf   :  { %v6192_v46 = vmul.f32 -1.442695, %v793_v43 }
  0xe0   :  { %v6682_v47 = vpop.f32.mrf.mxu0 }
  0xe1   :  { %7403 = vpow2.f32 %v6192_v46  ;;  %v8124_v47 = vld [vmem:[%s9126_s13] ss:$0 sm:$0xff] }
  0xe2   :  { %v551_v48 = vpop.f32.mrf.mxu0 }
  0xe4   :  { %v6703_v49 = vpop.f32.mrf.mxu0 }
  0xea   :  { %v712_v51 = vpop.f32.mrf.mxu0  ;;  %v788_v52 = vpop.f32.mrf.mxu1 }
  0xeb   :  { %v801_v53 = vadd.f32 %v800_v50, %v712_v51  ;;  %v789_v60 = vadd.f32 %v8016_v59, %v788_v52 }
  0xec   :  { %v6725_v54 = vpop.f32.mrf.mxu0  ;;  %v6736_v55 = vpop.f32.mrf.mxu1 }
  0xed   :  { %v6193_v56 = vmul.f32 -1.442695, %v801_v53 }
  0xee   :  { %v7404_v57 = vpop.eup %7403 }
  0xef   :  { %v797_v58 = vadd.f32 1.0, %v7404_v57  ;;  %7405 = vpow2.f32 %v6193_v56 }
  0xf1   :  { %7407 = vrcp.f32 %v797_v58  ;;  %v6205_v58 = vld [vmem:[%s9135_s26 + $0x2] sm:$0x3] }
  0xfc   :  { %v7406_v61 = vpop.eup %7405 }
  0xfd   :  { %v805_v62 = vadd.f32 1.0, %v7406_v61 }
  0xfe   :  { %v7408_v63 = vpop.eup %7407 }
  0xff   :  { %7409 = vrcp.f32 %v805_v62  ;;  %v809_v34 = vmul.f32 %v7408_v63, %v789_v60 }
 0x101   :  { %v810_v35 = vadd.f32 %v809_v34, %v808_v33  ;;  %v6207_v34 = vld [vmem:[%s9136_s29 + $0x2] sm:$0x3] }
 0x103   :  { %7411 = vtanh.f32 %v810_v35  ;;  %v8136_v35 = vld [vmem:[%s9127_s14] ss:$0 sm:$0xff] }
 0x10c   :  { %v7410_v36 = vpop.eup %7409 }
 0x10d   :  { %v812_v37 = vsub.f32 1.0, %v7410_v36  ;;  %v814_v39 = vmul.f32 %v7410_v36, %v7791_v9 }
 0x110   :  { %v7412_v38 = vpop.eup %7411 }
 0x111   :  { %v813_v40 = vmul.f32 %v7412_v38, %v812_v37 }
 0x113   :  { %v8023_v41 = vadd.f32 %v814_v39, %v813_v40 }
 0x115   :  { %6746 = vmatmul.mubr.msk.f32.vlgmr.msra.gmra.mxu0 %vm109_vm3, %v8023_v41  ;;  %6757 = vmatmul.mubr.msk.f32.vlgmr.msra.gmra.mxu1 %vm109_vm3, %v8023_v41 }
 0x116   :  { %6760 = vmatpush3.msra.mxu0 %v7843_v16  ;;  %6771 = vmatpush3.msra.mxu1 %v7787_v8 }
 0x117   :  { %6761 = vmatprep.subr.mxu0 %v7638_v1  ;;  %6772 = vmatprep.subr.mxu1 %v7638_v1 }
 0x118   :  { %6762 = vmatpush3.msra.mxu0 %v7859_v18  ;;  %6773 = vmatpush3.msra.mxu1 %v7805_v11 }
 0x119   :  { %6763 = vmatprep.subr.mxu0 %v7638_v1  ;;  %6774 = vmatprep.mubr.msk.f32.mxu1 %vm7639_vm1, %v7638_v1 }
 0x11a   :  { %6784 = vmatprep.subr.mxu1 %v7638_v1  ;;  %6764 = vmatpush3.msra.mxu0 %v7873_v20 }
 0x11b   :  { %6775 = vmatmul.mubr.msk.f32.vlgmr.msra.gmra.mxu1 %vm335_vm4, %v7810_v12  ;;  %6765 = vmatprep.subr.mxu0 %v7638_v1 }
 0x11c   :  { %6785 = vmatpush3.msra.mxu1 %v7902_v23  ;;  %6766 = vmatpush3.msra.mxu0 %v7889_v22 }
 0x11d   :  { %6786 = vmatprep.subr.mxu1 %v7638_v1  ;;  %6767 = vmatprep.mubr.msk.f32.mxu0 %vm7639_vm1, %v7638_v1 }
 0x11e   :  { %6787 = vmatpush3.msra.mxu1 %v7917_v25  ;;  %6768 = vmatmul.mubr.msk.f32.vlgmr.msra.gmra.mxu0 %vm109_vm3, %v8023_v41 }
 0x11f   :  { %6777 = vmatprep.subr.mxu0 %v7638_v1  ;;  %6788 = vmatprep.mubr.msk.f32.mxu1 %vm7639_vm1, %v7638_v1 }
 0x120   :  { %6802 = vmatprep.subr.mxu1 %v7638_v1  ;;  %6778 = vmatpush3.msra.mxu0 %v7816_v13 }
 0x121   :  { %6789 = vmatmul.mubr.msk.f32.vlgmr.msra.gmra.mxu1 %vm335_vm4, %v7810_v12  ;;  %6779 = vmatprep.subr.mxu0 %v7638_v1 }
 0x122   :  { %6803 = vmatpush3.msra.mxu1 %v7927_v26  ;;  %6780 = vmatpush3.msra.mxu0 %v7828_v14 }
 0x123   :  { %6804 = vmatprep.subr.mxu1 %v7638_v1  ;;  %6781 = vmatprep.mubr.msk.f32.mxu0 %vm7639_vm1, %v7638_v1 }
 0x124   :  { %6805 = vmatpush3.msra.mxu1 %v7943_v28  ;;  %6782 = vmatmul.mubr.msk.f32.vlgmr.msra.gmra.mxu0 %vm335_vm4, %v7810_v12 }
 0x125   :  { %6791 = vmatprep.subr.mxu0 %v7638_v1  ;;  %6806 = vmatprep.subr.mxu1 %v7638_v1 }
 0x126   :  { %6792 = vmatpush3.msra.mxu0 %v7837_v15  ;;  %6807 = vmatpush3.msra.mxu1 %v7957_v30 }
 0x127   :  { %6793 = vmatprep.subr.mxu0 %v7638_v1  ;;  %6808 = vmatprep.subr.mxu1 %v7638_v1 }
 0x128   :  { %6794 = vmatpush3.msra.mxu0 %v7854_v17  ;;  %6809 = vmatpush3.msra.mxu1 %v7971_v32 }
 0x129   :  { %6810 = vmatprep.mubr.msk.f32.mxu1 %vm7639_vm1, %v7638_v1  ;;  %6795 = vmatprep.subr.mxu0 %v7638_v1 }
 0x12a   :  { %6811 = vmatmul.mubr.msk.f32.vlgmr.msra.gmra.mxu1 %vm109_vm3, %v8023_v41  ;;  %6796 = vmatpush3.msra.mxu0 %v7868_v19 }
 0x12b   :  { %6797 = vmatprep.subr.mxu0 %v7638_v1  ;;  %6799 = vmatprep.mubr.msk.f32.mxu0 %vm7639_vm1, %v7638_v1 }
 0x12c   :  { %6798 = vmatpush3.msra.mxu0 %v7882_v21  ;;  %6824 = vmatprep.subr.mxu1 %v7638_v1 }
 0x12d   :  { %6800 = vmatmul.mubr.msk.f32.vlgmr.msra.gmra.mxu0 %vm109_vm3, %v8023_v41  ;;  %6813 = vmatprep.subr.mxu0 %v7638_v1 }
 0x12e   :  { %6814 = vmatpush3.msra.mxu0 %v7910_v24  ;;  %6821 = vmatprep.mubr.msk.f32.mxu0 %vm7639_vm1, %v7638_v1 }
 0x12f   :  { %6815 = vmatprep.subr.mxu0 %v7638_v1  ;;  %6825 = vmatpush3.msra.mxu1 %v7749_v3 }
 0x130   :  { %6816 = vmatpush3.msra.mxu0 %v7935_v27  ;;  %6826 = vmatprep.subr.mxu1 %v7638_v1 }
 0x131   :  { %6817 = vmatprep.subr.mxu0 %v7638_v1  ;;  %6827 = vmatpush3.msra.mxu1 %v7758_v4 }
 0x132   :  { %6818 = vmatpush3.msra.mxu0 %v7951_v29  ;;  %6828 = vmatprep.subr.mxu1 %v7638_v1 }
 0x133   :  { %6819 = vmatprep.subr.mxu0 %v7638_v1  ;;  %6829 = vmatpush3.msra.mxu1 %v7772_v6 }
 0x134   :  { %6820 = vmatpush3.msra.mxu0 %v7965_v31  ;;  %6830 = vmatprep.subr.mxu1 %v7638_v1 }
 0x135   :  { %6822 = vmatmul.mubr.msk.f32.vlgmr.msra.gmra.mxu0 %vm109_vm3, %v8023_v41  ;;  %6835 = vmatprep.subr.mxu0 %v7638_v1 }
 0x136   :  { %6836 = vmatpush3.msra.mxu0 %v7734_v0  ;;  %6831 = vmatpush3.msra.mxu1 %v7797_v10 }
 0x137   :  { %6837 = vmatprep.subr.mxu0 %v7638_v1  ;;  %6832 = vmatprep.mubr.msk.f32.mxu1 %vm7639_vm1, %v7638_v1 }
 0x138   :  { %6838 = vmatpush3.msra.mxu0 %v7740_v2  ;;  %6843 = vmatprep.mubr.msk.f32.mxu0 %vm7639_vm1, %v7638_v1 }
 0x139   :  { %6839 = vmatprep.subr.mxu0 %v7638_v1  ;;  %6846 = vmatprep.subr.mxu1 %v7638_v1 }
 0x13a   :  { %6840 = vmatpush3.msra.mxu0 %v7764_v5 }
 0x13b   :  { %6841 = vmatprep.subr.mxu0 %v7638_v1 }
 0x13c   :  { %6842 = vmatpush3.msra.mxu0 %v7778_v7 }
 0x13d   :  { %6857 = vmatprep.subr.mxu0 %v7638_v1 }
 0x1d5   :  { %v898_v9 = vpop.f32.mrf.mxu0  ;;  %v968_v42 = vpop.f32.mrf.mxu1 }
 0x1d6   :  { %v899_v50 = vadd.f32 %v8124_v47, %v898_v9  ;;  %v969_v38 = vadd.f32 %v8136_v35, %v968_v42 }
 0x1d7   :  { %v6747_v43 = vpop.f32.mrf.mxu0  ;;  %v6758_v44 = vpop.f32.mrf.mxu1 }
 0x1db   :  { %v1111_v45 = vpop.f32.mrf.mxu1 }
 0x1dc   :  { %v1255_v52 = vadd.f32 %v1111_v45, %v899_v50 }
 0x1dd   :  { %v6776_v46 = vpop.f32.mrf.mxu1 }
 0x1de   :  { %v1038_v48 = vpop.f32.mrf.mxu0  ;;  %v6200_v56 = vmul.f32 -1.442695, %v1255_v52  ;;  %v8142_v52 = vld [vmem:[%s9129_s16] ss:$0 sm:$0xff] }
 0x1e0   :  { %v6769_v49 = vpop.f32.mrf.mxu0  ;;  %7413 = vpow2.f32 %v6200_v56  ;;  %v8148_v56 = vld [vmem:[%s9128_s15] ss:$0 sm:$0xff] }
 0x1e1   :  { %v1251_v51 = vpop.f32.mrf.mxu1 }
 0x1e3   :  { %v6790_v53 = vpop.f32.mrf.mxu1 }
 0x1e4   :  { %v1181_v54 = vpop.f32.mrf.mxu0 }
 0x1e5   :  { %v1262_v9 = vadd.f32 %v1181_v54, %v969_v38 }
 0x1e6   :  { %v6783_v55 = vpop.f32.mrf.mxu0 }
 0x1e7   :  { %v6201_v45 = vmul.f32 -1.442695, %v1262_v9  ;;  %v1252_v55 = vadd.f32 %v8142_v52, %v1251_v51 }
 0x1ea   :  { %v1412_v57 = vpop.f32.mrf.mxu1 }
 0x1eb   :  { %v1497_v36 = vadd.f32 %v6207_v34, %v1412_v57 }
 0x1ec   :  { %v6812_v60 = vpop.f32.mrf.mxu1 }
 0x1ed   :  { %v1342_v61 = vpop.f32.mrf.mxu0  ;;  %v7414_v40 = vpop.eup %7413  ;;  %v6208_v43 = vmul.f32 -1.442695, %v1497_v36 }
 0x1ee   :  { %v1488_v62 = vadd.f32 %v6205_v58, %v1342_v61  ;;  %v1259_v44 = vadd.f32 1.0, %v7414_v40 }
 0x1ef   :  { %v6801_v63 = vpop.f32.mrf.mxu0 }
 0x1f0   :  { %v6206_v33 = vmul.f32 -1.442695, %v1488_v62  ;;  %v6209_v62 = vld [vmem:[%s9115_s2 + $0x2] sm:$0x3]  ;;  %v1039_v63 = vadd.f32 %v8148_v56, %v1038_v48 }
 0x1f2   :  { %7415 = vpow2.f32 %v6206_v33 }
 0x1f3   :  { %7417 = vpow2.f32 %v6208_v43 }
 0x1f4   :  { %7419 = vrcp.f32 %v1259_v44 }
 0x1f5   :  { %v1482_v37 = vpop.f32.mrf.mxu0  ;;  %7421 = vpow2.f32 %v6201_v45 }
 0x1f6   :  { %v1483_v58 = vadd.f32 %v8016_v59, %v1482_v37 }
 0x1f7   :  { %v6823_v39 = vpop.f32.mrf.mxu0 }
 0x1ff   :  { %v7416_v46 = vpop.eup %7415 }
 0x200   :  { %v1492_v49 = vadd.f32 1.0, %v7416_v46  ;;  %v7418_v50 = vpop.eup %7417 }
 0x201   :  { %v7420_v53 = vpop.eup %7419  ;;  %v1501_v54 = vadd.f32 1.0, %v7418_v50 }
 0x202   :  { %7423 = vrcp.f32 %v1492_v49  ;;  %v7422_v42 = vpop.eup %7421  ;;  %v1269_v57 = vmul.f32 %v7420_v53, %v1252_v55 }
 0x203   :  { %v1266_v61 = vadd.f32 1.0, %v7422_v42  ;;  %7425 = vrcp.f32 %v1501_v54 }
 0x204   :  { %v1270_v51 = vadd.f32 %v1269_v57, %v1039_v63 }
 0x205   :  { %7427 = vrcp.f32 %v1266_v61 }
 0x20f   :  { %v7424_v60 = vpop.eup %7423 }
 0x210   :  { %v1506_v33 = vmul.f32 %v7424_v60, %v1483_v58  ;;  %v7426_v36 = vpop.eup %7425 }
 0x211   :  { %v1509_v39 = vsub.f32 1.0, %v7426_v36  ;;  %v1511_v37 = vmul.f32 %v7426_v36, %v8023_v41 }
 0x212   :  { %v1507_v34 = vadd.f32 %v6209_v62, %v1506_v33  ;;  %v7428_v38 = vpop.eup %7427 }
 0x213   :  { %v1272_v45 = vsub.f32 1.0, %v7428_v38  ;;  %v1274_v41 = vmul.f32 %v7428_v38, %v7810_v12 }
 0x214   :  { %7429 = vtanh.f32 %v1507_v34 }
 0x215   :  { %7431 = vtanh.f32 %v1270_v51  ;;  %v6223_v51 = vld [vmem:[%s9136_s29 + $0x4] sm:$0x3] }
 0x221   :  { %v7430_v40 = vpop.eup %7429 }
 0x222   :  { %v1510_v9 = vmul.f32 %v7430_v40, %v1509_v39  ;;  %v7432_v43 = vpop.eup %7431 }
 0x223   :  { %v1273_v48 = vmul.f32 %v7432_v43, %v1272_v45 }
 0x224   :  { %v8156_v44 = vadd.f32 %v1511_v37, %v1510_v9 }
 0x225   :  { %v8172_v46 = vadd.f32 %v1274_v41, %v1273_v48 }
 0x226   :  { %6833 = vmatmul.mubr.msk.f32.vlgmr.msra.gmra.mxu1 %vm109_vm3, %v8156_v44  ;;  %6844 = vmatmul.mubr.msk.f32.vlgmr.msra.gmra.mxu0 %vm109_vm3, %v8156_v44 }
 0x227   :  { %6847 = vmatpush3.msra.mxu1 %v7843_v16  ;;  %6858 = vmatpush3.msra.mxu0 %v7787_v8 }
 0x228   :  { %6848 = vmatprep.subr.mxu1 %v7638_v1  ;;  %6859 = vmatprep.subr.mxu0 %v7638_v1 }
 0x229   :  { %6849 = vmatpush3.msra.mxu1 %v7859_v18  ;;  %6860 = vmatpush3.msra.mxu0 %v7805_v11 }
 0x22a   :  { %6850 = vmatprep.subr.mxu1 %v7638_v1  ;;  %6861 = vmatprep.mubr.msk.f32.mxu0 %vm7639_vm1, %v7638_v1 }
 0x22b   :  { %6871 = vmatprep.subr.mxu0 %v7638_v1  ;;  %6851 = vmatpush3.msra.mxu1 %v7873_v20 }
 0x22c   :  { %6862 = vmatmul.mubr.msk.f32.vlgmr.msra.gmra.mxu0 %vm335_vm4, %v8172_v46  ;;  %6852 = vmatprep.subr.mxu1 %v7638_v1 }
 0x22d   :  { %6872 = vmatpush3.msra.mxu0 %v7902_v23  ;;  %6853 = vmatpush3.msra.mxu1 %v7889_v22 }
 0x22e   :  { %6873 = vmatprep.subr.mxu0 %v7638_v1  ;;  %6854 = vmatprep.mubr.msk.f32.mxu1 %vm7639_vm1, %v7638_v1 }
 0x22f   :  { %6874 = vmatpush3.msra.mxu0 %v7917_v25  ;;  %6855 = vmatmul.mubr.msk.f32.vlgmr.msra.gmra.mxu1 %vm109_vm3, %v8156_v44 }
 0x230   :  { %6864 = vmatprep.subr.mxu1 %v7638_v1  ;;  %6875 = vmatprep.mubr.msk.f32.mxu0 %vm7639_vm1, %v7638_v1 }
 0x231   :  { %6889 = vmatprep.subr.mxu0 %v7638_v1  ;;  %6865 = vmatpush3.msra.mxu1 %v7816_v13 }
 0x232   :  { %6876 = vmatmul.mubr.msk.f32.vlgmr.msra.gmra.mxu0 %vm335_vm4, %v8172_v46  ;;  %6866 = vmatprep.subr.mxu1 %v7638_v1 }
 0x233   :  { %6890 = vmatpush3.msra.mxu0 %v7927_v26  ;;  %6867 = vmatpush3.msra.mxu1 %v7828_v14 }
 0x234   :  { %6891 = vmatprep.subr.mxu0 %v7638_v1  ;;  %6868 = vmatprep.mubr.msk.f32.mxu1 %vm7639_vm1, %v7638_v1 }
 0x235   :  { %6892 = vmatpush3.msra.mxu0 %v7943_v28  ;;  %6869 = vmatmul.mubr.msk.f32.vlgmr.msra.gmra.mxu1 %vm335_vm4, %v8172_v46 }
 0x236   :  { %6878 = vmatprep.subr.mxu1 %v7638_v1  ;;  %6893 = vmatprep.subr.mxu0 %v7638_v1 }
 0x237   :  { %6879 = vmatpush3.msra.mxu1 %v7837_v15  ;;  %6894 = vmatpush3.msra.mxu0 %v7957_v30 }
 0x238   :  { %6880 = vmatprep.subr.mxu1 %v7638_v1  ;;  %6895 = vmatprep.subr.mxu0 %v7638_v1 }
 0x239   :  { %6881 = vmatpush3.msra.mxu1 %v7854_v17  ;;  %6896 = vmatpush3.msra.mxu0 %v7971_v32 }
 0x23a   :  { %6897 = vmatprep.mubr.msk.f32.mxu0 %vm7639_vm1, %v7638_v1  ;;  %6882 = vmatprep.subr.mxu1 %v7638_v1 }
 0x23b   :  { %6898 = vmatmul.mubr.msk.f32.vlgmr.msra.gmra.mxu0 %vm109_vm3, %v8156_v44  ;;  %6883 = vmatpush3.msra.mxu1 %v7868_v19 }
 0x23c   :  { %6884 = vmatprep.subr.mxu1 %v7638_v1  ;;  %6886 = vmatprep.mubr.msk.f32.mxu1 %vm7639_vm1, %v7638_v1 }
 0x23d   :  { %6885 = vmatpush3.msra.mxu1 %v7882_v21  ;;  %6911 = vmatprep.subr.mxu0 %v7638_v1 }
 0x23e   :  { %6887 = vmatmul.mubr.msk.f32.vlgmr.msra.gmra.mxu1 %vm109_vm3, %v8156_v44  ;;  %6900 = vmatprep.subr.mxu1 %v7638_v1 }
 0x23f   :  { %6901 = vmatpush3.msra.mxu1 %v7910_v24  ;;  %6908 = vmatprep.mubr.msk.f32.mxu1 %vm7639_vm1, %v7638_v1 }
 0x240   :  { %6902 = vmatprep.subr.mxu1 %v7638_v1  ;;  %6912 = vmatpush3.msra.mxu0 %v7749_v3 }
 0x241   :  { %6903 = vmatpush3.msra.mxu1 %v7935_v27  ;;  %6913 = vmatprep.subr.mxu0 %v7638_v1 }
 0x242   :  { %6904 = vmatprep.subr.mxu1 %v7638_v1  ;;  %6914 = vmatpush3.msra.mxu0 %v7758_v4 }
 0x243   :  { %6905 = vmatpush3.msra.mxu1 %v7951_v29  ;;  %6915 = vmatprep.subr.mxu0 %v7638_v1 }
 0x244   :  { %6906 = vmatprep.subr.mxu1 %v7638_v1  ;;  %6916 = vmatpush3.msra.mxu0 %v7772_v6 }
 0x245   :  { %6907 = vmatpush3.msra.mxu1 %v7965_v31  ;;  %6917 = vmatprep.subr.mxu0 %v7638_v1 }
 0x246   :  { %6909 = vmatmul.mubr.msk.f32.vlgmr.msra.gmra.mxu1 %vm109_vm3, %v8156_v44  ;;  %6922 = vmatprep.subr.mxu1 %v7638_v1 }
 0x247   :  { %6923 = vmatpush3.msra.mxu1 %v7734_v0  ;;  %6918 = vmatpush3.msra.mxu0 %v7797_v10 }
 0x248   :  { %6924 = vmatprep.subr.mxu1 %v7638_v1  ;;  %6919 = vmatprep.mubr.msk.f32.mxu0 %vm7639_vm1, %v7638_v1 }
 0x249   :  { %6925 = vmatpush3.msra.mxu1 %v7740_v2  ;;  %6930 = vmatprep.mubr.msk.f32.mxu1 %vm7639_vm1, %v7638_v1 }
 0x24a   :  { %6926 = vmatprep.subr.mxu1 %v7638_v1  ;;  %6933 = vmatprep.subr.mxu0 %v7638_v1 }
 0x24b   :  { %6927 = vmatpush3.msra.mxu1 %v7764_v5 }
 0x24c   :  { %6928 = vmatprep.subr.mxu1 %v7638_v1 }
 0x24d   :  { %6929 = vmatpush3.msra.mxu1 %v7778_v7  ;;  %v6221_v7 = vld [vmem:[%s9135_s26 + $0x4] sm:$0x3] }
 0x24e   :  { %6944 = vmatprep.subr.mxu1 %v7638_v1 }
 0x2e6   :  { %v1595_v0 = vpop.f32.mrf.mxu1  ;;  %v1665_v3 = vpop.f32.mrf.mxu0 }
 0x2e7   :  { %v1596_v50 = vadd.f32 %v8124_v47, %v1595_v0  ;;  %v1666_v38 = vadd.f32 %v8136_v35, %v1665_v3 }
 0x2e8   :  { %v6834_v4 = vpop.f32.mrf.mxu1  ;;  %v6845_v6 = vpop.f32.mrf.mxu0 }
 0x2ec   :  { %v1808_v2 = vpop.f32.mrf.mxu0 }
 0x2ed   :  { %v1952_v42 = vadd.f32 %v1808_v2, %v1596_v50 }
 0x2ee   :  { %v6863_v10 = vpop.f32.mrf.mxu0 }
 0x2ef   :  { %v1735_v12 = vpop.f32.mrf.mxu1  ;;  %v6216_v57 = vmul.f32 -1.442695, %v1952_v42 }
 0x2f1   :  { %v6856_v49 = vpop.f32.mrf.mxu1  ;;  %7433 = vpow2.f32 %v6216_v57 }
 0x2f2   :  { %v1948_v53 = vpop.f32.mrf.mxu0 }
 0x2f3   :  { %v1949_v2 = vadd.f32 %v8142_v52, %v1948_v53 }
 0x2f4   :  { %v6877_v55 = vpop.f32.mrf.mxu0 }
 0x2f5   :  { %v1878_v5 = vpop.f32.mrf.mxu1  ;;  %v6225_v55 = vld [vmem:[%s9115_s2 + $0x4] sm:$0x3] }
 0x2f6   :  { %v1959_v37 = vadd.f32 %v1878_v5, %v1666_v38  ;;  %v1736_v5 = vadd.f32 %v8148_v56, %v1735_v12 }
 0x2f7   :  { %v6870_v54 = vpop.f32.mrf.mxu1 }
 0x2f8   :  { %v6217_v45 = vmul.f32 -1.442695, %v1959_v37 }
 0x2fb   :  { %v2109_v58 = vpop.f32.mrf.mxu0 }
 0x2fc   :  { %v2194_v34 = vadd.f32 %v6223_v51, %v2109_v58 }
 0x2fd   :  { %v6899_v60 = vpop.f32.mrf.mxu0 }
 0x2fe   :  { %v2039_v61 = vpop.f32.mrf.mxu1  ;;  %v7434_v40 = vpop.eup %7433  ;;  %v6224_v9 = vmul.f32 -1.442695, %v2194_v34 }
 0x2ff   :  { %v2185_v62 = vadd.f32 %v6221_v7, %v2039_v61  ;;  %v1956_v43 = vadd.f32 1.0, %v7434_v40 }
 0x300   :  { %v6888_v63 = vpop.f32.mrf.mxu1 }
 0x301   :  { %v6222_v33 = vmul.f32 -1.442695, %v2185_v62 }
 0x303   :  { %7435 = vpow2.f32 %v6222_v33 }
 0x304   :  { %7437 = vpow2.f32 %v6224_v9 }
 0x305   :  { %7439 = vrcp.f32 %v1956_v43 }
 0x306   :  { %v2179_v36 = vpop.f32.mrf.mxu1  ;;  %7441 = vpow2.f32 %v6217_v45 }
 0x307   :  { %v2180_v3 = vadd.f32 %v8016_v59, %v2179_v36 }
 0x308   :  { %v6910_v39 = vpop.f32.mrf.mxu1 }
 0x309   :  { %v6237_v39 = vld [vmem:[%s9135_s26 + $0x6] sm:$0x3] }
 0x310   :  { %v7436_v48 = vpop.eup %7435 }
 0x311   :  { %v2189_v41 = vadd.f32 1.0, %v7436_v48  ;;  %v7438_v0 = vpop.eup %7437  ;;  %v6239_v48 = vld [vmem:[%s9136_s29 + $0x6] sm:$0x3] }
 0x312   :  { %v7440_v4 = vpop.eup %7439  ;;  %v2198_v10 = vadd.f32 1.0, %v7438_v0 }
 0x313   :  { %7443 = vrcp.f32 %v2189_v41  ;;  %v7442_v6 = vpop.eup %7441  ;;  %v1966_v49 = vmul.f32 %v7440_v4, %v1949_v2 }
 0x314   :  { %v1963_v42 = vadd.f32 1.0, %v7442_v6  ;;  %7445 = vrcp.f32 %v2198_v10 }
 0x315   :  { %v1967_v57 = vadd.f32 %v1966_v49, %v1736_v5 }
 0x316   :  { %7447 = vrcp.f32 %v1963_v42 }
 0x320   :  { %v7444_v50 = vpop.eup %7443 }
 0x321   :  { %v2203_v54 = vmul.f32 %v7444_v50, %v2180_v3  ;;  %v7446_v53 = vpop.eup %7445 }
 0x322   :  { %v2206_v60 = vsub.f32 1.0, %v7446_v53  ;;  %v2208_v62 = vmul.f32 %v7446_v53, %v8156_v44 }
 0x323   :  { %v2204_v58 = vadd.f32 %v6225_v55, %v2203_v54  ;;  %v7448_v7 = vpop.eup %7447 }
 0x324   :  { %v1969_v34 = vsub.f32 1.0, %v7448_v7  ;;  %v1971_v44 = vmul.f32 %v7448_v7, %v8172_v46 }
 0x325   :  { %7449 = vtanh.f32 %v2204_v58 }
 0x326   :  { %7451 = vtanh.f32 %v1967_v57 }
 0x332   :  { %v7450_v61 = vpop.eup %7449 }
 0x333   :  { %v2207_v63 = vmul.f32 %v7450_v61, %v2206_v60  ;;  %v7452_v33 = vpop.eup %7451 }
 0x334   :  { %v1970_v12 = vmul.f32 %v7452_v33, %v1969_v34 }
 0x335   :  { %v8272_v51 = vadd.f32 %v2208_v62, %v2207_v63  ;;  %v6241_v63 = vld [vmem:[%s9115_s2 + $0x6] sm:$0x3] }
 0x336   :  { %v8288_v36 = vadd.f32 %v1971_v44, %v1970_v12 }
 0x337   :  { %6920 = vmatmul.mubr.msk.f32.vlgmr.msra.gmra.mxu0 %vm109_vm3, %v8272_v51  ;;  %6931 = vmatmul.mubr.msk.f32.vlgmr.msra.gmra.mxu1 %vm109_vm3, %v8272_v51 }
 0x338   :  { %6934 = vmatpush3.msra.mxu0 %v7843_v16  ;;  %6945 = vmatpush3.msra.mxu1 %v7787_v8  ;;  %v8348_v8 = vld [vmem:[%s9120_s7 + $0x18] sm:$0xff]  ;;  %v8392_v16 = vld [vmem:[%s9121_s8 + $0x10] sm:$0xff] }
 0x339   :  { %6935 = vmatprep.subr.mxu0 %v7638_v1  ;;  %6946 = vmatprep.subr.mxu1 %v7638_v1 }
 0x33a   :  { %6936 = vmatpush3.msra.mxu0 %v7859_v18  ;;  %6947 = vmatpush3.msra.mxu1 %v7805_v11  ;;  %v8357_v11 = vld [vmem:[%s9120_s7 + $0x10] sm:$0xff]  ;;  %v8409_v18 = vld [vmem:[%s9121_s8] sm:$0xff] }
 0x33b   :  { %6937 = vmatprep.subr.mxu0 %v7638_v1  ;;  %6948 = vmatprep.mubr.msk.f32.mxu1 %vm7639_vm1, %v7638_v1 }
 0x33c   :  { %6958 = vmatprep.subr.mxu1 %v7638_v1  ;;  %6938 = vmatpush3.msra.mxu0 %v7873_v20 }
 0x33d   :  { %6949 = vmatmul.mubr.msk.f32.vlgmr.msra.gmra.mxu1 %vm335_vm4, %v8288_v36  ;;  %6939 = vmatprep.subr.mxu0 %v7638_v1 }
 0x33e   :  { %6959 = vmatpush3.msra.mxu1 %v7902_v23  ;;  %6940 = vmatpush3.msra.mxu0 %v7889_v22 }
 0x33f   :  { %6960 = vmatprep.subr.mxu1 %v7638_v1  ;;  %6941 = vmatprep.mubr.msk.f32.mxu0 %vm7639_vm1, %v7638_v1 }
 0x340   :  { %6961 = vmatpush3.msra.mxu1 %v7917_v25  ;;  %6942 = vmatmul.mubr.msk.f32.vlgmr.msra.gmra.mxu0 %vm109_vm3, %v8272_v51 }
 0x341   :  { %6951 = vmatprep.subr.mxu0 %v7638_v1  ;;  %6962 = vmatprep.mubr.msk.f32.mxu1 %vm7639_vm1, %v7638_v1 }
 0x342   :  { %6976 = vmatprep.subr.mxu1 %v7638_v1  ;;  %6952 = vmatpush3.msra.mxu0 %v7816_v13  ;;  %v8366_v13 = vld [vmem:[%s9120_s7 + $0x8] sm:$0xff] }
 0x343   :  { %6963 = vmatmul.mubr.msk.f32.vlgmr.msra.gmra.mxu1 %vm335_vm4, %v8288_v36  ;;  %6953 = vmatprep.subr.mxu0 %v7638_v1 }
 0x344   :  { %6977 = vmatpush3.msra.mxu1 %v7927_v26  ;;  %6954 = vmatpush3.msra.mxu0 %v7828_v14  ;;  %v8377_v14 = vld [vmem:[%s9121_s8 + $0x18] sm:$0xff] }
 0x345   :  { %6978 = vmatprep.subr.mxu1 %v7638_v1  ;;  %6955 = vmatprep.mubr.msk.f32.mxu0 %vm7639_vm1, %v7638_v1 }
 0x346   :  { %6979 = vmatpush3.msra.mxu1 %v7943_v28  ;;  %6956 = vmatmul.mubr.msk.f32.vlgmr.msra.gmra.mxu0 %vm335_vm4, %v8288_v36 }
 0x347   :  { %6965 = vmatprep.subr.mxu0 %v7638_v1  ;;  %6980 = vmatprep.subr.mxu1 %v7638_v1 }
 0x348   :  { %6966 = vmatpush3.msra.mxu0 %v7837_v15  ;;  %6981 = vmatpush3.msra.mxu1 %v7957_v30  ;;  %v8383_v15 = vld [vmem:[%s9120_s7] sm:$0xff] }
 0x349   :  { %6967 = vmatprep.subr.mxu0 %v7638_v1  ;;  %6982 = vmatprep.subr.mxu1 %v7638_v1 }
 0x34a   :  { %6968 = vmatpush3.msra.mxu0 %v7854_v17  ;;  %6983 = vmatpush3.msra.mxu1 %v7971_v32  ;;  %v8402_v17 = vld [vmem:[%s9121_s8 + $0x8] sm:$0xff] }
 0x34b   :  { %6984 = vmatprep.mubr.msk.f32.mxu1 %vm7639_vm1, %v7638_v1  ;;  %6969 = vmatprep.subr.mxu0 %v7638_v1 }
 0x34c   :  { %6985 = vmatmul.mubr.msk.f32.vlgmr.msra.gmra.mxu1 %vm109_vm3, %v8272_v51  ;;  %6970 = vmatpush3.msra.mxu0 %v7868_v19 }
 0x34d   :  { %6971 = vmatprep.subr.mxu0 %v7638_v1  ;;  %6973 = vmatprep.mubr.msk.f32.mxu0 %vm7639_vm1, %v7638_v1 }
 0x34e   :  { %6972 = vmatpush3.msra.mxu0 %v7882_v21  ;;  %6998 = vmatprep.subr.mxu1 %v7638_v1 }
 0x34f   :  { %6974 = vmatmul.mubr.msk.f32.vlgmr.msra.gmra.mxu0 %vm109_vm3, %v8272_v51  ;;  %6987 = vmatprep.subr.mxu0 %v7638_v1 }
 0x350   :  { %6988 = vmatpush3.msra.mxu0 %v7910_v24  ;;  %6995 = vmatprep.mubr.msk.f32.mxu0 %vm7639_vm1, %v7638_v1 }
 0x351   :  { %6989 = vmatprep.subr.mxu0 %v7638_v1  ;;  %6999 = vmatpush3.msra.mxu1 %v8348_v8 }
 0x352   :  { %6990 = vmatpush3.msra.mxu0 %v7935_v27  ;;  %7000 = vmatprep.subr.mxu1 %v7638_v1 }
 0x353   :  { %6991 = vmatprep.subr.mxu0 %v7638_v1  ;;  %7001 = vmatpush3.msra.mxu1 %v8357_v11 }
 0x354   :  { %6992 = vmatpush3.msra.mxu0 %v7951_v29  ;;  %7002 = vmatprep.subr.mxu1 %v7638_v1 }
 0x355   :  { %6993 = vmatprep.subr.mxu0 %v7638_v1  ;;  %7003 = vmatpush3.msra.mxu1 %v8366_v13 }
 0x356   :  { %6994 = vmatpush3.msra.mxu0 %v7965_v31  ;;  %7004 = vmatprep.subr.mxu1 %v7638_v1 }
 0x357   :  { %6996 = vmatmul.mubr.msk.f32.vlgmr.msra.gmra.mxu0 %vm109_vm3, %v8272_v51  ;;  %7009 = vmatprep.subr.mxu0 %v7638_v1 }
 0x358   :  { %7010 = vmatpush3.msra.mxu0 %v8377_v14  ;;  %7005 = vmatpush3.msra.mxu1 %v8383_v15 }
 0x359   :  { %7011 = vmatprep.subr.mxu0 %v7638_v1  ;;  %7006 = vmatprep.mubr.msk.f32.mxu1 %vm7639_vm1, %v7638_v1 }
 0x35a   :  { %7012 = vmatpush3.msra.mxu0 %v8392_v16  ;;  %7017 = vmatprep.mubr.msk.f32.mxu0 %vm7639_vm1, %v7638_v1 }
 0x35b   :  { %7013 = vmatprep.subr.mxu0 %v7638_v1  ;;  %7020 = vmatprep.subr.mxu1 %v7638_v1 }
 0x35c   :  { %7014 = vmatpush3.msra.mxu0 %v8402_v17 }
 0x35d   :  { %7015 = vmatprep.subr.mxu0 %v7638_v1 }
 0x35e   :  { %7016 = vmatpush3.msra.mxu0 %v8409_v18 }
 0x35f   :  { %7031 = vmatprep.subr.mxu0 %v7638_v1 }
 0x3f7   :  { %v2292_v19 = vpop.f32.mrf.mxu0  ;;  %v2362_v20 = vpop.f32.mrf.mxu1 }
 0x3f8   :  { %v2293_v27 = vadd.f32 %v8124_v47, %v2292_v19  ;;  %v2363_v4 = vadd.f32 %v8136_v35, %v2362_v20 }
 0x3f9   :  { %v6921_v21 = vpop.f32.mrf.mxu0  ;;  %v6932_v22 = vpop.f32.mrf.mxu1 }
 0x3fd   :  { %v2505_v23 = vpop.f32.mrf.mxu1 }
 0x3fe   :  { %v2649_v29 = vadd.f32 %v2505_v23, %v2293_v27 }
 0x3ff   :  { %v6950_v24 = vpop.f32.mrf.mxu1 }
 0x400   :  { %v2432_v25 = vpop.f32.mrf.mxu0  ;;  %v6232_v46 = vmul.f32 -1.442695, %v2649_v29 }
 0x401   :  { %v2433_v33 = vadd.f32 %v8148_v56, %v2432_v25 }
 0x402   :  { %v6943_v26 = vpop.f32.mrf.mxu0  ;;  %7453 = vpow2.f32 %v6232_v46  ;;  %v8479_v46 = vld [vmem:[%s9125_s12 + $0x8] sm:$0xff] }
 0x403   :  { %v2645_v28 = vpop.f32.mrf.mxu1 }
 0x404   :  { %v2646_v58 = vadd.f32 %v8142_v52, %v2645_v28  ;;  %v8437_v28 = vld [vmem:[%s9122_s9 + $0x18] sm:$0xff] }
 0x405   :  { %v6964_v30 = vpop.f32.mrf.mxu1 }
 0x406   :  { %v2575_v31 = vpop.f32.mrf.mxu0  ;;  %v8452_v30 = vld [vmem:[%s9122_s9 + $0x10] sm:$0xff] }
 0x407   :  { %v2656_v10 = vadd.f32 %v2575_v31, %v2363_v4  ;;  %v8458_v31 = vld [vmem:[%s9123_s10] sm:$0xff]  ;;  %v8571_v4 = vld [vmem:[%s9116_s3 + $0x8] sm:$0xff] }
 0x408   :  { %v6957_v32 = vpop.f32.mrf.mxu0 }
 0x409   :  { %v6233_v50 = vmul.f32 -1.442695, %v2656_v10  ;;  %v8470_v32 = vld [vmem:[%s9122_s9 + $0x8] sm:$0xff]  ;;  %v8600_v10 = vld [vmem:[%s9118_s5 + $0x10] sm:$0xff] }
 0x40c   :  { %v2806_v38 = vpop.f32.mrf.mxu1 }
 0x40d   :  { %v2891_v41 = vadd.f32 %v6239_v48, %v2806_v38  ;;  %v8485_v38 = vld [vmem:[%s9122_s9] sm:$0xff]  ;;  %v8546_v48 = vld [vmem:[%s9117_s4 + $0x8] sm:$0xff] }
 0x40e   :  { %v6986_v40 = vpop.f32.mrf.mxu1 }
 0x40f   :  { %v2736_v37 = vpop.f32.mrf.mxu0  ;;  %v7454_v2 = vpop.eup %7453  ;;  %v6240_v49 = vmul.f32 -1.442695, %v2891_v41  ;;  %v8506_v40 = vld [vmem:[%s9124_s11 + $0x8] sm:$0xff]  ;;  %v8554_v41 = vld [vmem:[%s9116_s3 + $0x10] sm:$0xff] }
 0x410   :  { %v2882_v9 = vadd.f32 %v6237_v39, %v2736_v37  ;;  %v2653_v3 = vadd.f32 1.0, %v7454_v2  ;;  %v8494_v39 = vld [vmem:[%s9125_s12] sm:$0xff]  ;;  %v8515_v37 = vld [vmem:[%s9117_s4 + $0x18] sm:$0xff] }
 0x411   :  { %v6975_v43 = vpop.f32.mrf.mxu0  ;;  %v8590_v2 = vld [vmem:[%s9118_s5 + $0x18] sm:$0xff] }
 0x412   :  { %v6238_v45 = vmul.f32 -1.442695, %v2882_v9  ;;  %v8521_v9 = vld [vmem:[%s9124_s11] sm:$0xff]  ;;  %v8530_v43 = vld [vmem:[%s9117_s4 + $0x10] sm:$0xff] }
 0x414   :  { %7455 = vpow2.f32 %v6238_v45  ;;  %v8540_v45 = vld [vmem:[%s9116_s3 + $0x18] sm:$0xff] }
 0x415   :  { %7457 = vpow2.f32 %v6240_v49  ;;  %v8609_v49 = vld [vmem:[%s9118_s5 + $0x8] sm:$0xff] }
 0x416   :  { %7459 = vrcp.f32 %v2653_v3  ;;  %v8618_v3 = vld [vmem:[%s9118_s5] sm:$0xff] }
 0x417   :  { %v2876_v0 = vpop.f32.mrf.mxu0  ;;  %7461 = vpow2.f32 %v6233_v50 }
 0x418   :  { %v2877_v60 = vadd.f32 %v8016_v59, %v2876_v0  ;;  %v8560_v0 = vld [vmem:[%s9117_s4] sm:$0xff] }
 0x419   :  { %v6997_v6 = vpop.f32.mrf.mxu0 }
 0x41a   :  { %v8580_v6 = vld [vmem:[%s9116_s3] sm:$0xff] }
 0x421   :  { %v7456_v42 = vpop.eup %7455 }
 0x422   :  { %v2886_v55 = vadd.f32 1.0, %v7456_v42  ;;  %v7458_v5 = vpop.eup %7457 }
 0x423   :  { %v7460_v54 = vpop.eup %7459  ;;  %v2895_v53 = vadd.f32 1.0, %v7458_v5 }
 0x424   :  { %7463 = vrcp.f32 %v2886_v55  ;;  %v7462_v57 = vpop.eup %7461  ;;  %v2663_v7 = vmul.f32 %v7460_v54, %v2646_v58 }
 0x425   :  { %v2660_v62 = vadd.f32 1.0, %v7462_v57  ;;  %7465 = vrcp.f32 %v2895_v53 }
 0x426   :  { %v2664_v12 = vadd.f32 %v2663_v7, %v2433_v33 }
 0x427   :  { %7467 = vrcp.f32 %v2660_v62 }
 0x431   :  { %v7464_v61 = vpop.eup %7463 }
 0x432   :  { %v2900_v34 = vmul.f32 %v7464_v61, %v2877_v60  ;;  %v7466_v19 = vpop.eup %7465 }
 0x433   :  { %v2903_v21 = vsub.f32 1.0, %v7466_v19  ;;  %v2905_v59 = vmul.f32 %v7466_v19, %v8272_v51  ;;  %v8443_v51 = vld [vmem:[%s9123_s10 + $0x8] sm:$0xff] }
 0x434   :  { %v2901_v44 = vadd.f32 %v6241_v63, %v2900_v34  ;;  %v7468_v20 = vpop.eup %7467 }
 0x435   :  { %v2666_v27 = vsub.f32 1.0, %v7468_v20  ;;  %v2668_v29 = vmul.f32 %v7468_v20, %v8288_v36 }
 0x436   :  { %7469 = vtanh.f32 %v2901_v44  ;;  %v6253_v44 = vld [vmem:[%s9135_s26 + $0x8] sm:$0x3] }
 0x437   :  { %7471 = vtanh.f32 %v2664_v12 }
 0x443   :  { %v7470_v22 = vpop.eup %7469 }
 0x444   :  { %v2904_v23 = vmul.f32 %v7470_v22, %v2903_v21  ;;  %v7472_v24 = vpop.eup %7471 }
 0x445   :  { %v2667_v25 = vmul.f32 %v7472_v24, %v2666_v27 }
 0x446   :  { %v8428_v26 = vadd.f32 %v2905_v59, %v2904_v23 }
 0x447   :  { %v8464_v36 = vadd.f32 %v2668_v29, %v2667_v25 }
 0x448   :  { %7007 = vmatmul.mubr.msk.f32.vlgmr.msra.gmra.mxu1 %vm109_vm3, %v8428_v26  ;;  %7018 = vmatmul.mubr.msk.f32.vlgmr.msra.gmra.mxu0 %vm109_vm3, %v8428_v26 }
 0x449   :  { %7021 = vmatpush3.msra.mxu1 %v8437_v28  ;;  %7032 = vmatpush3.msra.mxu0 %v8443_v51 }
 0x44a   :  { %7022 = vmatprep.subr.mxu1 %v7638_v1  ;;  %7033 = vmatprep.subr.mxu0 %v7638_v1 }
 0x44b   :  { %7023 = vmatpush3.msra.mxu1 %v8452_v30  ;;  %7034 = vmatpush3.msra.mxu0 %v8458_v31 }
 0x44c   :  { %7024 = vmatprep.subr.mxu1 %v7638_v1  ;;  %7035 = vmatprep.mubr.msk.f32.mxu0 %vm7639_vm1, %v7638_v1 }
 0x44d   :  { %7045 = vmatprep.subr.mxu0 %v7638_v1  ;;  %7025 = vmatpush3.msra.mxu1 %v8470_v32 }
 0x44e   :  { %7036 = vmatmul.mubr.msk.f32.vlgmr.msra.gmra.mxu0 %vm335_vm4, %v8464_v36  ;;  %7026 = vmatprep.subr.mxu1 %v7638_v1 }
 0x44f   :  { %7046 = vmatpush3.msra.mxu0 %v8479_v46  ;;  %7027 = vmatpush3.msra.mxu1 %v8485_v38 }
 0x450   :  { %7047 = vmatprep.subr.mxu0 %v7638_v1  ;;  %7028 = vmatprep.mubr.msk.f32.mxu1 %vm7639_vm1, %v7638_v1 }
 0x451   :  { %7048 = vmatpush3.msra.mxu0 %v8494_v39  ;;  %7029 = vmatmul.mubr.msk.f32.vlgmr.msra.gmra.mxu1 %vm109_vm3, %v8428_v26 }
 0x452   :  { %7038 = vmatprep.subr.mxu1 %v7638_v1  ;;  %7049 = vmatprep.mubr.msk.f32.mxu0 %vm7639_vm1, %v7638_v1 }
 0x453   :  { %7063 = vmatprep.subr.mxu0 %v7638_v1  ;;  %7039 = vmatpush3.msra.mxu1 %v8506_v40 }
 0x454   :  { %7050 = vmatmul.mubr.msk.f32.vlgmr.msra.gmra.mxu0 %vm335_vm4, %v8464_v36  ;;  %7040 = vmatprep.subr.mxu1 %v7638_v1 }
 0x455   :  { %7064 = vmatpush3.msra.mxu0 %v8515_v37  ;;  %7041 = vmatpush3.msra.mxu1 %v8521_v9 }
 0x456   :  { %7065 = vmatprep.subr.mxu0 %v7638_v1  ;;  %7042 = vmatprep.mubr.msk.f32.mxu1 %vm7639_vm1, %v7638_v1 }
 0x457   :  { %7066 = vmatpush3.msra.mxu0 %v8530_v43  ;;  %7043 = vmatmul.mubr.msk.f32.vlgmr.msra.gmra.mxu1 %vm335_vm4, %v8464_v36 }
 0x458   :  { %7052 = vmatprep.subr.mxu1 %v7638_v1  ;;  %7067 = vmatprep.subr.mxu0 %v7638_v1 }
 0x459   :  { %7053 = vmatpush3.msra.mxu1 %v8540_v45  ;;  %7068 = vmatpush3.msra.mxu0 %v8546_v48 }
 0x45a   :  { %7054 = vmatprep.subr.mxu1 %v7638_v1  ;;  %7069 = vmatprep.subr.mxu0 %v7638_v1 }
 0x45b   :  { %7055 = vmatpush3.msra.mxu1 %v8554_v41  ;;  %7070 = vmatpush3.msra.mxu0 %v8560_v0 }
 0x45c   :  { %7071 = vmatprep.mubr.msk.f32.mxu0 %vm7639_vm1, %v7638_v1  ;;  %7056 = vmatprep.subr.mxu1 %v7638_v1 }
 0x45d   :  { %7072 = vmatmul.mubr.msk.f32.vlgmr.msra.gmra.mxu0 %vm109_vm3, %v8428_v26  ;;  %7057 = vmatpush3.msra.mxu1 %v8571_v4 }
 0x45e   :  { %7058 = vmatprep.subr.mxu1 %v7638_v1  ;;  %7060 = vmatprep.mubr.msk.f32.mxu1 %vm7639_vm1, %v7638_v1 }
 0x45f   :  { %7059 = vmatpush3.msra.mxu1 %v8580_v6  ;;  %7085 = vmatprep.subr.mxu0 %v7638_v1 }
 0x460   :  { %7061 = vmatmul.mubr.msk.f32.vlgmr.msra.gmra.mxu1 %vm109_vm3, %v8428_v26  ;;  %7074 = vmatprep.subr.mxu1 %v7638_v1 }
 0x461   :  { %7075 = vmatpush3.msra.mxu1 %v8590_v2  ;;  %7082 = vmatprep.mubr.msk.f32.mxu1 %vm7639_vm1, %v7638_v1 }
 0x462   :  { %7076 = vmatprep.subr.mxu1 %v7638_v1  ;;  %7086 = vmatpush3.msra.mxu0 %v8348_v8 }
 0x463   :  { %7077 = vmatpush3.msra.mxu1 %v8600_v10  ;;  %7087 = vmatprep.subr.mxu0 %v7638_v1 }
 0x464   :  { %7078 = vmatprep.subr.mxu1 %v7638_v1  ;;  %7088 = vmatpush3.msra.mxu0 %v8357_v11 }
 0x465   :  { %7079 = vmatpush3.msra.mxu1 %v8609_v49  ;;  %7089 = vmatprep.subr.mxu0 %v7638_v1 }
 0x466   :  { %7080 = vmatprep.subr.mxu1 %v7638_v1  ;;  %7090 = vmatpush3.msra.mxu0 %v8366_v13 }
 0x467   :  { %7081 = vmatpush3.msra.mxu1 %v8618_v3  ;;  %7091 = vmatprep.subr.mxu0 %v7638_v1 }
 0x468   :  { %7083 = vmatmul.mubr.msk.f32.vlgmr.msra.gmra.mxu1 %vm109_vm3, %v8428_v26  ;;  %7096 = vmatprep.subr.mxu1 %v7638_v1 }
 0x469   :  { %7097 = vmatpush3.msra.mxu1 %v8377_v14  ;;  %7092 = vmatpush3.msra.mxu0 %v8383_v15 }
 0x46a   :  { %7098 = vmatprep.subr.mxu1 %v7638_v1  ;;  %7093 = vmatprep.mubr.msk.f32.mxu0 %vm7639_vm1, %v7638_v1 }
 0x46b   :  { %7099 = vmatpush3.msra.mxu1 %v8392_v16  ;;  %7104 = vmatprep.mubr.msk.f32.mxu1 %vm7639_vm1, %v7638_v1 }
 0x46c   :  { %7100 = vmatprep.subr.mxu1 %v7638_v1  ;;  %7107 = vmatprep.subr.mxu0 %v7638_v1 }
 0x46d   :  { %7101 = vmatpush3.msra.mxu1 %v8402_v17 }
 0x46e   :  { %7102 = vmatprep.subr.mxu1 %v7638_v1 }
 0x46f   :  { %7103 = vmatpush3.msra.mxu1 %v8409_v18 }
 0x470   :  { %7118 = vmatprep.subr.mxu1 %v7638_v1 }
 0x508   :  { %v2989_v50 = vpop.f32.mrf.mxu1  ;;  %v3059_v42 = vpop.f32.mrf.mxu0 }
 0x509   :  { %v2990_v7 = vadd.f32 %v8124_v47, %v2989_v50  ;;  %v6255_v47 = vld [vmem:[%s9136_s29 + $0x8] sm:$0x3]  ;;  %v3060_v27 = vadd.f32 %v8136_v35, %v3059_v42  ;;  %v8651_v35 = vld [vmem:[%s9119_s6] ss:$0 sm:$0xff] }
 0x50a   :  { %v7008_v55 = vpop.f32.mrf.mxu1  ;;  %v7019_v5 = vpop.f32.mrf.mxu0 }
 0x50e   :  { %v3202_v54 = vpop.f32.mrf.mxu0 }
 0x50f   :  { %v3346_v61 = vadd.f32 %v3202_v54, %v2990_v7 }
 0x510   :  { %v7037_v57 = vpop.f32.mrf.mxu0 }
 0x511   :  { %v3129_v58 = vpop.f32.mrf.mxu1  ;;  %v6248_v34 = vmul.f32 -1.442695, %v3346_v61 }
 0x513   :  { %v7030_v53 = vpop.f32.mrf.mxu1  ;;  %7473 = vpow2.f32 %v6248_v34 }
 0x514   :  { %v3342_v60 = vpop.f32.mrf.mxu0 }
 0x516   :  { %v7051_v62 = vpop.f32.mrf.mxu0 }
 0x517   :  { %v3272_v63 = vpop.f32.mrf.mxu1 }
 0x518   :  { %v3353_v50 = vadd.f32 %v3272_v63, %v3060_v27 }
 0x519   :  { %v7044_v33 = vpop.f32.mrf.mxu1 }
 0x51a   :  { %v6249_v54 = vmul.f32 -1.442695, %v3353_v50  ;;  %v3343_v33 = vadd.f32 %v8142_v52, %v3342_v60 }
 0x51d   :  { %v3503_v12 = vpop.f32.mrf.mxu0 }
 0x51e   :  { %v3588_v23 = vadd.f32 %v6255_v47, %v3503_v12 }
 0x51f   :  { %v7073_v19 = vpop.f32.mrf.mxu0 }
 0x520   :  { %v3433_v20 = vpop.f32.mrf.mxu1  ;;  %v7474_v29 = vpop.eup %7473  ;;  %v6256_v55 = vmul.f32 -1.442695, %v3588_v23  ;;  %v6257_v19 = vld [vmem:[%s9115_s2 + $0x8] sm:$0x3] }
 0x521   :  { %v3579_v21 = vadd.f32 %v6253_v44, %v3433_v20  ;;  %v3350_v5 = vadd.f32 1.0, %v7474_v29  ;;  %v3130_v20 = vadd.f32 %v8148_v56, %v3129_v58 }
 0x522   :  { %v7062_v22 = vpop.f32.mrf.mxu1 }
 0x523   :  { %v6254_v59 = vmul.f32 -1.442695, %v3579_v21 }
 0x525   :  { %7475 = vpow2.f32 %v6254_v59 }
 0x526   :  { %7477 = vpow2.f32 %v6256_v55 }
 0x527   :  { %7479 = vrcp.f32 %v3350_v5 }
 0x528   :  { %v3573_v24 = vpop.f32.mrf.mxu1  ;;  %7481 = vpow2.f32 %v6249_v54 }
 0x529   :  { %v3574_v42 = vadd.f32 %v8651_v35, %v3573_v24 }
 0x52a   :  { %v7084_v25 = vpop.f32.mrf.mxu1 }
 0x532   :  { %v7476_v57 = vpop.eup %7475 }
 0x533   :  { %v3583_v53 = vadd.f32 1.0, %v7476_v57  ;;  %v7478_v7 = vpop.eup %7477 }
 0x534   :  { %v7480_v61 = vpop.eup %7479  ;;  %v3592_v34 = vadd.f32 1.0, %v7478_v7 }
 0x535   :  { %7483 = vrcp.f32 %v3583_v53  ;;  %v7482_v62 = vpop.eup %7481  ;;  %v3360_v12 = vmul.f32 %v7480_v61, %v3343_v33 }
 0x536   :  { %v3357_v44 = vadd.f32 1.0, %v7482_v62  ;;  %7485 = vrcp.f32 %v3592_v34  ;;  %v8763_v62 = vld [vmem:[%s9126_s13] ss:$0 sm:$0xff] }
 0x537   :  { %v3361_v52 = vadd.f32 %v3360_v12, %v3130_v20 }
 0x538   :  { %7487 = vrcp.f32 %v3357_v44 }
 0x542   :  { %v7484_v63 = vpop.eup %7483 }
 0x543   :  { %v3597_v21 = vmul.f32 %v7484_v63, %v3574_v42  ;;  %v7486_v22 = vpop.eup %7485 }
 0x544   :  { %v3600_v47 = vsub.f32 1.0, %v7486_v22  ;;  %v3602_v24 = vmul.f32 %v7486_v22, %v8428_v26 }
 0x545   :  { %v3598_v60 = vadd.f32 %v6257_v19, %v3597_v21  ;;  %v7488_v59 = vpop.eup %7487  ;;  %v6269_v21 = vld [vmem:[%s9135_s26 + $0xa] sm:$0x3] }
 0x546   :  { %v3363_v50 = vsub.f32 1.0, %v7488_v59  ;;  %v3365_v26 = vmul.f32 %v7488_v59, %v8464_v36 }
 0x547   :  { %7489 = vtanh.f32 %v3598_v60 }
 0x548   :  { %7491 = vtanh.f32 %v3361_v52 }
 0x554   :  { %v7490_v23 = vpop.eup %7489 }
 0x555   :  { %v3601_v27 = vmul.f32 %v7490_v23, %v3600_v47  ;;  %v7492_v25 = vpop.eup %7491  ;;  %v6271_v23 = vld [vmem:[%s9136_s29 + $0xa] sm:$0x3] }
 0x556   :  { %v3364_v56 = vmul.f32 %v7492_v25, %v3363_v50  ;;  %v8775_v25 = vld [vmem:[%s9127_s14] ss:$0 sm:$0xff] }
 0x557   :  { %v8659_v29 = vadd.f32 %v3602_v24, %v3601_v27 }
 0x558   :  { %v8675_v58 = vadd.f32 %v3365_v26, %v3364_v56 }
 0x559   :  { %7094 = vmatmul.mubr.msk.f32.vlgmr.msra.gmra.mxu0 %vm109_vm3, %v8659_v29  ;;  %7105 = vmatmul.mubr.msk.f32.vlgmr.msra.gmra.mxu1 %vm109_vm3, %v8659_v29 }
 0x55a   :  { %7108 = vmatpush3.msra.mxu0 %v8437_v28  ;;  %7119 = vmatpush3.msra.mxu1 %v8443_v51 }
 0x55b   :  { %7109 = vmatprep.subr.mxu0 %v7638_v1  ;;  %7120 = vmatprep.subr.mxu1 %v7638_v1 }
 0x55c   :  { %7110 = vmatpush3.msra.mxu0 %v8452_v30  ;;  %7121 = vmatpush3.msra.mxu1 %v8458_v31 }
 0x55d   :  { %7111 = vmatprep.subr.mxu0 %v7638_v1  ;;  %7122 = vmatprep.mubr.msk.f32.mxu1 %vm7639_vm1, %v7638_v1 }
 0x55e   :  { %7132 = vmatprep.subr.mxu1 %v7638_v1  ;;  %7112 = vmatpush3.msra.mxu0 %v8470_v32 }
 0x55f   :  { %7123 = vmatmul.mubr.msk.f32.vlgmr.msra.gmra.mxu1 %vm335_vm4, %v8675_v58  ;;  %7113 = vmatprep.subr.mxu0 %v7638_v1 }
 0x560   :  { %7133 = vmatpush3.msra.mxu1 %v8479_v46  ;;  %7114 = vmatpush3.msra.mxu0 %v8485_v38 }
 0x561   :  { %7134 = vmatprep.subr.mxu1 %v7638_v1  ;;  %7115 = vmatprep.mubr.msk.f32.mxu0 %vm7639_vm1, %v7638_v1 }
 0x562   :  { %7135 = vmatpush3.msra.mxu1 %v8494_v39  ;;  %7116 = vmatmul.mubr.msk.f32.vlgmr.msra.gmra.mxu0 %vm109_vm3, %v8659_v29 }
 0x563   :  { %7125 = vmatprep.subr.mxu0 %v7638_v1  ;;  %7136 = vmatprep.mubr.msk.f32.mxu1 %vm7639_vm1, %v7638_v1 }
 0x564   :  { %7150 = vmatprep.subr.mxu1 %v7638_v1  ;;  %7126 = vmatpush3.msra.mxu0 %v8506_v40 }
 0x565   :  { %7137 = vmatmul.mubr.msk.f32.vlgmr.msra.gmra.mxu1 %vm335_vm4, %v8675_v58  ;;  %7127 = vmatprep.subr.mxu0 %v7638_v1 }
 0x566   :  { %7151 = vmatpush3.msra.mxu1 %v8515_v37  ;;  %7128 = vmatpush3.msra.mxu0 %v8521_v9 }
 0x567   :  { %7152 = vmatprep.subr.mxu1 %v7638_v1  ;;  %7129 = vmatprep.mubr.msk.f32.mxu0 %vm7639_vm1, %v7638_v1 }
 0x568   :  { %7153 = vmatpush3.msra.mxu1 %v8530_v43  ;;  %7130 = vmatmul.mubr.msk.f32.vlgmr.msra.gmra.mxu0 %vm335_vm4, %v8675_v58 }
 0x569   :  { %7139 = vmatprep.subr.mxu0 %v7638_v1  ;;  %7154 = vmatprep.subr.mxu1 %v7638_v1 }
 0x56a   :  { %7140 = vmatpush3.msra.mxu0 %v8540_v45  ;;  %7155 = vmatpush3.msra.mxu1 %v8546_v48 }
 0x56b   :  { %7141 = vmatprep.subr.mxu0 %v7638_v1  ;;  %7156 = vmatprep.subr.mxu1 %v7638_v1 }
 0x56c   :  { %7142 = vmatpush3.msra.mxu0 %v8554_v41  ;;  %7157 = vmatpush3.msra.mxu1 %v8560_v0 }
 0x56d   :  { %7158 = vmatprep.mubr.msk.f32.mxu1 %vm7639_vm1, %v7638_v1  ;;  %7143 = vmatprep.subr.mxu0 %v7638_v1 }
 0x56e   :  { %7159 = vmatmul.mubr.msk.f32.vlgmr.msra.gmra.mxu1 %vm109_vm3, %v8659_v29  ;;  %7144 = vmatpush3.msra.mxu0 %v8571_v4 }
 0x56f   :  { %7145 = vmatprep.subr.mxu0 %v7638_v1  ;;  %7147 = vmatprep.mubr.msk.f32.mxu0 %vm7639_vm1, %v7638_v1 }
 0x570   :  { %7146 = vmatpush3.msra.mxu0 %v8580_v6  ;;  %7172 = vmatprep.subr.mxu1 %v7638_v1 }
 0x571   :  { %7148 = vmatmul.mubr.msk.f32.vlgmr.msra.gmra.mxu0 %vm109_vm3, %v8659_v29  ;;  %7161 = vmatprep.subr.mxu0 %v7638_v1 }
 0x572   :  { %7162 = vmatpush3.msra.mxu0 %v8590_v2  ;;  %7169 = vmatprep.mubr.msk.f32.mxu0 %vm7639_vm1, %v7638_v1 }
 0x573   :  { %7163 = vmatprep.subr.mxu0 %v7638_v1  ;;  %7173 = vmatpush3.msra.mxu1 %v8348_v8 }
 0x574   :  { %7164 = vmatpush3.msra.mxu0 %v8600_v10  ;;  %7174 = vmatprep.subr.mxu1 %v7638_v1 }
 0x575   :  { %7165 = vmatprep.subr.mxu0 %v7638_v1  ;;  %7175 = vmatpush3.msra.mxu1 %v8357_v11 }
 0x576   :  { %7166 = vmatpush3.msra.mxu0 %v8609_v49  ;;  %7176 = vmatprep.subr.mxu1 %v7638_v1 }
 0x577   :  { %7167 = vmatprep.subr.mxu0 %v7638_v1  ;;  %7177 = vmatpush3.msra.mxu1 %v8366_v13 }
 0x578   :  { %7168 = vmatpush3.msra.mxu0 %v8618_v3  ;;  %7178 = vmatprep.subr.mxu1 %v7638_v1 }
 0x579   :  { %7170 = vmatmul.mubr.msk.f32.vlgmr.msra.gmra.mxu0 %vm109_vm3, %v8659_v29  ;;  %7183 = vmatprep.subr.mxu0 %v7638_v1 }
 0x57a   :  { %7184 = vmatpush3.msra.mxu0 %v8377_v14  ;;  %7179 = vmatpush3.msra.mxu1 %v8383_v15 }
 0x57b   :  { %7185 = vmatprep.subr.mxu0 %v7638_v1  ;;  %7180 = vmatprep.mubr.msk.f32.mxu1 %vm7639_vm1, %v7638_v1 }
 0x57c   :  { %7186 = vmatpush3.msra.mxu0 %v8392_v16  ;;  %7191 = vmatprep.mubr.msk.f32.mxu0 %vm7639_vm1, %v7638_v1 }
 0x57d   :  { %7187 = vmatprep.subr.mxu0 %v7638_v1  ;;  %7194 = vmatprep.subr.mxu1 %v7638_v1 }
 0x57e   :  { %7188 = vmatpush3.msra.mxu0 %v8402_v17 }
 0x57f   :  { %7189 = vmatprep.subr.mxu0 %v7638_v1 }
 0x580   :  { %7190 = vmatpush3.msra.mxu0 %v8409_v18 }
 0x581   :  { %7205 = vmatprep.subr.mxu0 %v7638_v1 }
 0x619   :  { %v3686_v36 = vpop.f32.mrf.mxu0  ;;  %v3756_v55 = vpop.f32.mrf.mxu1 }
 0x61a   :  { %v3687_v33 = vadd.f32 %v8763_v62, %v3686_v36  ;;  %v3757_v50 = vadd.f32 %v8775_v25, %v3756_v55 }
 0x61b   :  { %v7095_v5 = vpop.f32.mrf.mxu0  ;;  %v7106_v54 = vpop.f32.mrf.mxu1 }
 0x61f   :  { %v3899_v57 = vpop.f32.mrf.mxu1 }
 0x620   :  { %v4043_v12 = vadd.f32 %v3899_v57, %v3687_v33 }
 0x621   :  { %v7124_v53 = vpop.f32.mrf.mxu1 }
 0x622   :  { %v3826_v7 = vpop.f32.mrf.mxu0  ;;  %v6264_v19 = vmul.f32 -1.442695, %v4043_v12 }
 0x624   :  { %v7117_v61 = vpop.f32.mrf.mxu0  ;;  %7493 = vpow2.f32 %v6264_v19 }
 0x625   :  { %v4039_v34 = vpop.f32.mrf.mxu1 }
 0x627   :  { %v7138_v42 = vpop.f32.mrf.mxu1 }
 0x628   :  { %v3969_v63 = vpop.f32.mrf.mxu0 }
 0x629   :  { %v4050_v36 = vadd.f32 %v3969_v63, %v3757_v50 }
 0x62a   :  { %v7131_v44 = vpop.f32.mrf.mxu0 }
 0x62b   :  { %v6265_v57 = vmul.f32 -1.442695, %v4050_v36  ;;  %v8781_v44 = vld [vmem:[%s9129_s16] ss:$0 sm:$0xff] }
 0x62c   :  { %v4040_v55 = vadd.f32 %v8781_v44, %v4039_v34 }
 0x62e   :  { %v4200_v20 = vpop.f32.mrf.mxu1 }
 0x62f   :  { %v4285_v24 = vadd.f32 %v6271_v23, %v4200_v20 }
 0x630   :  { %v7160_v52 = vpop.f32.mrf.mxu1 }
 0x631   :  { %v4130_v60 = vpop.f32.mrf.mxu0  ;;  %v7494_v26 = vpop.eup %7493  ;;  %v6272_v5 = vmul.f32 -1.442695, %v4285_v24 }
 0x632   :  { %v4276_v22 = vadd.f32 %v6269_v21, %v4130_v60  ;;  %v4047_v54 = vadd.f32 1.0, %v7494_v26  ;;  %v6273_v60 = vld [vmem:[%s9115_s2 + $0xa] sm:$0x3] }
 0x633   :  { %v7149_v59 = vpop.f32.mrf.mxu0 }
 0x634   :  { %v6270_v47 = vmul.f32 -1.442695, %v4276_v22  ;;  %v8791_v22 = vld [vmem:[%s9128_s15] ss:$0 sm:$0xff] }
 0x635   :  { %v3827_v59 = vadd.f32 %v8791_v22, %v3826_v7 }
 0x636   :  { %7495 = vpow2.f32 %v6270_v47 }
 0x637   :  { %7497 = vpow2.f32 %v6272_v5 }
 0x638   :  { %7499 = vrcp.f32 %v4047_v54 }
 0x639   :  { %v4270_v27 = vpop.f32.mrf.mxu0  ;;  %7501 = vpow2.f32 %v6265_v57 }
 0x63a   :  { %v4271_v20 = vadd.f32 %v8651_v35, %v4270_v27 }
 0x63b   :  { %v7171_v56 = vpop.f32.mrf.mxu0 }
 0x643   :  { %v7496_v53 = vpop.eup %7495 }
 0x644   :  { %v4280_v61 = vadd.f32 1.0, %v7496_v53  ;;  %v7498_v33 = vpop.eup %7497 }
 0x645   :  { %v7500_v12 = vpop.eup %7499  ;;  %v4289_v63 = vadd.f32 1.0, %v7498_v33 }
 0x646   :  { %7503 = vrcp.f32 %v4280_v61  ;;  %v7502_v42 = vpop.eup %7501  ;;  %v4057_v19 = vmul.f32 %v7500_v12, %v4040_v55 }
 0x647   :  { %v4054_v52 = vadd.f32 1.0, %v7502_v42  ;;  %7505 = vrcp.f32 %v4289_v63 }
 0x648   :  { %v4058_v34 = vadd.f32 %v4057_v19, %v3827_v59 }
 0x649   :  { %7507 = vrcp.f32 %v4054_v52 }
 0x653   :  { %v7504_v21 = vpop.eup %7503 }
 0x654   :  { %v4294_v47 = vmul.f32 %v7504_v21, %v4271_v20  ;;  %v7506_v24 = vpop.eup %7505 }
 0x655   :  { %v4297_v50 = vsub.f32 1.0, %v7506_v24  ;;  %v4299_v26 = vmul.f32 %v7506_v24, %v8659_v29 }
 0x656   :  { %v4295_v23 = vadd.f32 %v6273_v60, %v4294_v47  ;;  %v7508_v27 = vpop.eup %7507 }
 0x657   :  { %v4060_v57 = vsub.f32 1.0, %v7508_v27  ;;  %v4062_v29 = vmul.f32 %v7508_v27, %v8675_v58 }
 0x658   :  { %7509 = vtanh.f32 %v4295_v23 }
 0x659   :  { %7511 = vtanh.f32 %v4058_v34  ;;  %v6287_v34 = vld [vmem:[%s9136_s29 + $0xc] sm:$0x3] }
 0x665   :  { %v7510_v56 = vpop.eup %7509 }
 0x666   :  { %v4298_v36 = vmul.f32 %v7510_v56, %v4297_v50  ;;  %v7512_v5 = vpop.eup %7511 }
 0x667   :  { %v4061_v7 = vmul.f32 %v7512_v5, %v4060_v57 }
 0x668   :  { %v8795_v54 = vadd.f32 %v4299_v26, %v4298_v36 }
 0x669   :  { %v8811_v53 = vadd.f32 %v4062_v29, %v4061_v7 }
 0x66a   :  { %7181 = vmatmul.mubr.msk.f32.vlgmr.msra.gmra.mxu1 %vm109_vm3, %v8795_v54  ;;  %7192 = vmatmul.mubr.msk.f32.vlgmr.msra.gmra.mxu0 %vm109_vm3, %v8795_v54 }
 0x66b   :  { %7195 = vmatpush3.msra.mxu1 %v8437_v28  ;;  %7206 = vmatpush3.msra.mxu0 %v8443_v51 }
 0x66c   :  { %7196 = vmatprep.subr.mxu1 %v7638_v1  ;;  %7207 = vmatprep.subr.mxu0 %v7638_v1 }
 0x66d   :  { %7197 = vmatpush3.msra.mxu1 %v8452_v30  ;;  %7208 = vmatpush3.msra.mxu0 %v8458_v31 }
 0x66e   :  { %7198 = vmatprep.subr.mxu1 %v7638_v1  ;;  %7209 = vmatprep.mubr.msk.f32.mxu0 %vm7639_vm1, %v7638_v1 }
 0x66f   :  { %7219 = vmatprep.subr.mxu0 %v7638_v1  ;;  %7199 = vmatpush3.msra.mxu1 %v8470_v32 }
 0x670   :  { %7210 = vmatmul.mubr.msk.f32.vlgmr.msra.gmra.mxu0 %vm335_vm4, %v8811_v53  ;;  %7200 = vmatprep.subr.mxu1 %v7638_v1 }
 0x671   :  { %7220 = vmatpush3.msra.mxu0 %v8479_v46  ;;  %7201 = vmatpush3.msra.mxu1 %v8485_v38 }
 0x672   :  { %7221 = vmatprep.subr.mxu0 %v7638_v1  ;;  %7202 = vmatprep.mubr.msk.f32.mxu1 %vm7639_vm1, %v7638_v1 }
 0x673   :  { %7222 = vmatpush3.msra.mxu0 %v8494_v39  ;;  %7203 = vmatmul.mubr.msk.f32.vlgmr.msra.gmra.mxu1 %vm109_vm3, %v8795_v54 }
 0x674   :  { %7212 = vmatprep.subr.mxu1 %v7638_v1  ;;  %7223 = vmatprep.mubr.msk.f32.mxu0 %vm7639_vm1, %v7638_v1 }
 0x675   :  { %7237 = vmatprep.subr.mxu0 %v7638_v1  ;;  %7213 = vmatpush3.msra.mxu1 %v8506_v40 }
 0x676   :  { %7224 = vmatmul.mubr.msk.f32.vlgmr.msra.gmra.mxu0 %vm335_vm4, %v8811_v53  ;;  %7214 = vmatprep.subr.mxu1 %v7638_v1 }
 0x677   :  { %7238 = vmatpush3.msra.mxu0 %v8515_v37  ;;  %7215 = vmatpush3.msra.mxu1 %v8521_v9 }
 0x678   :  { %7239 = vmatprep.subr.mxu0 %v7638_v1  ;;  %7216 = vmatprep.mubr.msk.f32.mxu1 %vm7639_vm1, %v7638_v1 }
 0x679   :  { %7240 = vmatpush3.msra.mxu0 %v8530_v43  ;;  %7217 = vmatmul.mubr.msk.f32.vlgmr.msra.gmra.mxu1 %vm335_vm4, %v8811_v53 }
 0x67a   :  { %7226 = vmatprep.subr.mxu1 %v7638_v1  ;;  %7241 = vmatprep.subr.mxu0 %v7638_v1 }
 0x67b   :  { %7227 = vmatpush3.msra.mxu1 %v8540_v45  ;;  %7242 = vmatpush3.msra.mxu0 %v8546_v48 }
 0x67c   :  { %7228 = vmatprep.subr.mxu1 %v7638_v1  ;;  %7243 = vmatprep.subr.mxu0 %v7638_v1 }
 0x67d   :  { %7229 = vmatpush3.msra.mxu1 %v8554_v41  ;;  %7244 = vmatpush3.msra.mxu0 %v8560_v0 }
 0x67e   :  { %7245 = vmatprep.mubr.msk.f32.mxu0 %vm7639_vm1, %v7638_v1  ;;  %7230 = vmatprep.subr.mxu1 %v7638_v1 }
 0x67f   :  { %7246 = vmatmul.mubr.msk.f32.vlgmr.msra.gmra.mxu0 %vm109_vm3, %v8795_v54  ;;  %7231 = vmatpush3.msra.mxu1 %v8571_v4 }
 0x680   :  { %7232 = vmatprep.subr.mxu1 %v7638_v1  ;;  %7234 = vmatprep.mubr.msk.f32.mxu1 %vm7639_vm1, %v7638_v1 }
 0x681   :  { %7233 = vmatpush3.msra.mxu1 %v8580_v6  ;;  %7259 = vmatprep.subr.mxu0 %v7638_v1 }
 0x682   :  { %7235 = vmatmul.mubr.msk.f32.vlgmr.msra.gmra.mxu1 %vm109_vm3, %v8795_v54  ;;  %7248 = vmatprep.subr.mxu1 %v7638_v1 }
 0x683   :  { %7249 = vmatpush3.msra.mxu1 %v8590_v2  ;;  %7256 = vmatprep.mubr.msk.f32.mxu1 %vm7639_vm1, %v7638_v1 }
 0x684   :  { %7250 = vmatprep.subr.mxu1 %v7638_v1  ;;  %7260 = vmatpush3.msra.mxu0 %v8348_v8 }
 0x685   :  { %7251 = vmatpush3.msra.mxu1 %v8600_v10  ;;  %7261 = vmatprep.subr.mxu0 %v7638_v1 }
 0x686   :  { %7252 = vmatprep.subr.mxu1 %v7638_v1  ;;  %7262 = vmatpush3.msra.mxu0 %v8357_v11 }
 0x687   :  { %7253 = vmatpush3.msra.mxu1 %v8609_v49  ;;  %7263 = vmatprep.subr.mxu0 %v7638_v1 }
 0x688   :  { %7254 = vmatprep.subr.mxu1 %v7638_v1  ;;  %7264 = vmatpush3.msra.mxu0 %v8366_v13 }
 0x689   :  { %7255 = vmatpush3.msra.mxu1 %v8618_v3  ;;  %7265 = vmatprep.subr.mxu0 %v7638_v1 }
 0x68a   :  { %7257 = vmatmul.mubr.msk.f32.vlgmr.msra.gmra.mxu1 %vm109_vm3, %v8795_v54  ;;  %7270 = vmatprep.subr.mxu1 %v7638_v1 }
 0x68b   :  { %7271 = vmatpush3.msra.mxu1 %v8377_v14  ;;  %7266 = vmatpush3.msra.mxu0 %v8383_v15 }
 0x68c   :  { %7272 = vmatprep.subr.mxu1 %v7638_v1  ;;  %7267 = vmatprep.mubr.msk.f32.mxu0 %vm7639_vm1, %v7638_v1 }
 0x68d   :  { %7273 = vmatpush3.msra.mxu1 %v8392_v16  ;;  %7278 = vmatprep.mubr.msk.f32.mxu1 %vm7639_vm1, %v7638_v1 }
 0x68e   :  { %7274 = vmatprep.subr.mxu1 %v7638_v1  ;;  %7281 = vmatprep.subr.mxu0 %v7638_v1 }
 0x68f   :  { %7275 = vmatpush3.msra.mxu1 %v8402_v17 }
 0x690   :  { %7276 = vmatprep.subr.mxu1 %v7638_v1 }
 0x691   :  { %7277 = vmatpush3.msra.mxu1 %v8409_v18  ;;  %v6285_v18 = vld [vmem:[%s9135_s26 + $0xc] sm:$0x3] }
 0x692   :  { %7292 = vmatprep.subr.mxu1 %v7638_v1 }
 0x72a   :  { %v4383_v8 = vpop.f32.mrf.mxu1  ;;  %v4453_v11 = vpop.f32.mrf.mxu0 }
 0x72b   :  { %v4384_v33 = vadd.f32 %v8763_v62, %v4383_v8  ;;  %v4454_v27 = vadd.f32 %v8775_v25, %v4453_v11 }
 0x72c   :  { %v7182_v13 = vpop.f32.mrf.mxu1  ;;  %v7193_v14 = vpop.f32.mrf.mxu0 }
 0x730   :  { %v4596_v15 = vpop.f32.mrf.mxu0 }
 0x731   :  { %v4740_v42 = vadd.f32 %v4596_v15, %v4384_v33 }
 0x732   :  { %v7211_v16 = vpop.f32.mrf.mxu0 }
 0x733   :  { %v4523_v58 = vpop.f32.mrf.mxu1  ;;  %v6280_v19 = vmul.f32 -1.442695, %v4740_v42 }
 0x735   :  { %v7204_v61 = vpop.f32.mrf.mxu1  ;;  %7513 = vpow2.f32 %v6280_v19 }
 0x736   :  { %v4736_v12 = vpop.f32.mrf.mxu0 }
 0x737   :  { %v4737_v15 = vadd.f32 %v8781_v44, %v4736_v12 }
 0x738   :  { %v7225_v55 = vpop.f32.mrf.mxu0 }
 0x739   :  { %v4666_v17 = vpop.f32.mrf.mxu1  ;;  %v6289_v55 = vld [vmem:[%s9115_s2 + $0xc] sm:$0x3] }
 0x73a   :  { %v4747_v26 = vadd.f32 %v4666_v17, %v4454_v27  ;;  %v4524_v17 = vadd.f32 %v8791_v22, %v4523_v58 }
 0x73b   :  { %v7218_v63 = vpop.f32.mrf.mxu1 }
 0x73c   :  { %v6281_v57 = vmul.f32 -1.442695, %v4747_v26 }
 0x73f   :  { %v4897_v20 = vpop.f32.mrf.mxu0 }
 0x740   :  { %v4982_v23 = vadd.f32 %v6287_v34, %v4897_v20 }
 0x741   :  { %v7247_v21 = vpop.f32.mrf.mxu0 }
 0x742   :  { %v4827_v52 = vpop.f32.mrf.mxu1  ;;  %v7514_v56 = vpop.eup %7513  ;;  %v6288_v36 = vmul.f32 -1.442695, %v4982_v23 }
 0x743   :  { %v4973_v60 = vadd.f32 %v6285_v18, %v4827_v52  ;;  %v4744_v5 = vadd.f32 1.0, %v7514_v56 }
 0x744   :  { %v7236_v59 = vpop.f32.mrf.mxu1 }
 0x745   :  { %v6286_v47 = vmul.f32 -1.442695, %v4973_v60 }
 0x747   :  { %7515 = vpow2.f32 %v6286_v47 }
 0x748   :  { %7517 = vpow2.f32 %v6288_v36  ;;  %v6301_v36 = vld [vmem:[%s9135_s26 + $0xe] sm:$0x3] }
 0x749   :  { %7519 = vrcp.f32 %v4744_v5 }
 0x74a   :  { %v4967_v24 = vpop.f32.mrf.mxu1  ;;  %7521 = vpow2.f32 %v6281_v57 }
 0x74b   :  { %v4968_v11 = vadd.f32 %v8651_v35, %v4967_v24 }
 0x74c   :  { %v7258_v50 = vpop.f32.mrf.mxu1 }
 0x754   :  { %v7516_v7 = vpop.eup %7515 }
 0x755   :  { %v4977_v29 = vadd.f32 1.0, %v7516_v7  ;;  %v7518_v8 = vpop.eup %7517 }
 0x756   :  { %v7520_v13 = vpop.eup %7519  ;;  %v4986_v16 = vadd.f32 1.0, %v7518_v8 }
 0x757   :  { %7523 = vrcp.f32 %v4977_v29  ;;  %v7522_v14 = vpop.eup %7521  ;;  %v4754_v61 = vmul.f32 %v7520_v13, %v4737_v15  ;;  %v6303_v15 = vld [vmem:[%s9136_s29 + $0xe] sm:$0x3] }
 0x758   :  { %v4751_v42 = vadd.f32 1.0, %v7522_v14  ;;  %7525 = vrcp.f32 %v4986_v16 }
 0x759   :  { %v4755_v19 = vadd.f32 %v4754_v61, %v4524_v17 }
 0x75a   :  { %7527 = vrcp.f32 %v4751_v42 }
 0x764   :  { %v7524_v33 = vpop.eup %7523 }
 0x765   :  { %v4991_v63 = vmul.f32 %v7524_v33, %v4968_v11  ;;  %v7526_v12 = vpop.eup %7525 }
 0x766   :  { %v4994_v21 = vsub.f32 1.0, %v7526_v12  ;;  %v4996_v60 = vmul.f32 %v7526_v12, %v8795_v54 }
 0x767   :  { %v4992_v20 = vadd.f32 %v6289_v55, %v4991_v63  ;;  %v7528_v18 = vpop.eup %7527 }
 0x768   :  { %v4757_v23 = vsub.f32 1.0, %v7528_v18  ;;  %v4759_v54 = vmul.f32 %v7528_v18, %v8811_v53 }
 0x769   :  { %7529 = vtanh.f32 %v4992_v20 }
 0x76a   :  { %7531 = vtanh.f32 %v4755_v19 }
 0x776   :  { %v7530_v52 = vpop.eup %7529 }
 0x777   :  { %v4995_v59 = vmul.f32 %v7530_v52, %v4994_v21  ;;  %v7532_v47 = vpop.eup %7531 }
 0x778   :  { %v4758_v58 = vmul.f32 %v7532_v47, %v4757_v23 }
 0x779   :  { %v8911_v34 = vadd.f32 %v4996_v60, %v4995_v59 }
 0x77a   :  { %v8927_v24 = vadd.f32 %v4759_v54, %v4758_v58 }
 0x77b   :  { %7268 = vmatmul.mubr.msk.f32.vlgmr.msra.gmra.mxu0 %vm109_vm3, %v8911_v34  ;;  %7279 = vmatmul.mubr.msk.f32.vlgmr.msra.gmra.mxu1 %vm109_vm3, %v8911_v34 }
 0x77c   :  { %7282 = vmatpush3.msra.mxu0 %v8437_v28  ;;  %7293 = vmatpush3.msra.mxu1 %v8443_v51  ;;  %v7598_v28 = vld [vmem:[%s9120_s7 + $0x18] sm:$0xff]  ;;  %v7599_v51 = vld [vmem:[%s9120_s7 + $0x10] sm:$0xff] }
 0x77d   :  { %7283 = vmatprep.subr.mxu0 %v7638_v1  ;;  %7294 = vmatprep.subr.mxu1 %v7638_v1 }
 0x77e   :  { %7284 = vmatpush3.msra.mxu0 %v8452_v30  ;;  %7295 = vmatpush3.msra.mxu1 %v8458_v31  ;;  %v7600_v30 = vld [vmem:[%s9120_s7 + $0x8] sm:$0xff]  ;;  %v7601_v31 = vld [vmem:[%s9121_s8 + $0x18] sm:$0xff] }
 0x77f   :  { %7285 = vmatprep.subr.mxu0 %v7638_v1  ;;  %7296 = vmatprep.mubr.msk.f32.mxu1 %vm7639_vm1, %v7638_v1 }
 0x780   :  { %7306 = vmatprep.subr.mxu1 %v7638_v1  ;;  %7286 = vmatpush3.msra.mxu0 %v8470_v32  ;;  %v7602_v32 = vld [vmem:[%s9120_s7] sm:$0xff] }
 0x781   :  { %7297 = vmatmul.mubr.msk.f32.vlgmr.msra.gmra.mxu1 %vm335_vm4, %v8927_v24  ;;  %7287 = vmatprep.subr.mxu0 %v7638_v1 }
 0x782   :  { %7307 = vmatpush3.msra.mxu1 %v8479_v46  ;;  %7288 = vmatpush3.msra.mxu0 %v8485_v38  ;;  %v7603_v46 = vld [vmem:[%s9121_s8 + $0x10] sm:$0xff]  ;;  %v7604_v38 = vld [vmem:[%s9121_s8 + $0x8] sm:$0xff] }
 0x783   :  { %7308 = vmatprep.subr.mxu1 %v7638_v1  ;;  %7289 = vmatprep.mubr.msk.f32.mxu0 %vm7639_vm1, %v7638_v1 }
 0x784   :  { %7309 = vmatpush3.msra.mxu1 %v8494_v39  ;;  %7290 = vmatmul.mubr.msk.f32.vlgmr.msra.gmra.mxu0 %vm109_vm3, %v8911_v34  ;;  %v7605_v39 = vld [vmem:[%s9121_s8] sm:$0xff] }
 0x785   :  { %7299 = vmatprep.subr.mxu0 %v7638_v1  ;;  %7310 = vmatprep.mubr.msk.f32.mxu1 %vm7639_vm1, %v7638_v1 }
 0x786   :  { %7324 = vmatprep.subr.mxu1 %v7638_v1  ;;  %7300 = vmatpush3.msra.mxu0 %v8506_v40 }
 0x787   :  { %7311 = vmatmul.mubr.msk.f32.vlgmr.msra.gmra.mxu1 %vm335_vm4, %v8927_v24  ;;  %7301 = vmatprep.subr.mxu0 %v7638_v1 }
 0x788   :  { %7325 = vmatpush3.msra.mxu1 %v8515_v37  ;;  %7302 = vmatpush3.msra.mxu0 %v8521_v9 }
 0x789   :  { %7326 = vmatprep.subr.mxu1 %v7638_v1  ;;  %7303 = vmatprep.mubr.msk.f32.mxu0 %vm7639_vm1, %v7638_v1 }
 0x78a   :  { %7327 = vmatpush3.msra.mxu1 %v8530_v43  ;;  %7304 = vmatmul.mubr.msk.f32.vlgmr.msra.gmra.mxu0 %vm335_vm4, %v8927_v24 }
 0x78b   :  { %7313 = vmatprep.subr.mxu0 %v7638_v1  ;;  %7328 = vmatprep.subr.mxu1 %v7638_v1 }
 0x78c   :  { %7314 = vmatpush3.msra.mxu0 %v8540_v45  ;;  %7329 = vmatpush3.msra.mxu1 %v8546_v48 }
 0x78d   :  { %7315 = vmatprep.subr.mxu0 %v7638_v1  ;;  %7330 = vmatprep.subr.mxu1 %v7638_v1 }
 0x78e   :  { %7316 = vmatpush3.msra.mxu0 %v8554_v41  ;;  %7331 = vmatpush3.msra.mxu1 %v8560_v0 }
 0x78f   :  { %7332 = vmatprep.mubr.msk.f32.mxu1 %vm7639_vm1, %v7638_v1  ;;  %7317 = vmatprep.subr.mxu0 %v7638_v1 }
 0x790   :  { %7333 = vmatmul.mubr.msk.f32.vlgmr.msra.gmra.mxu1 %vm109_vm3, %v8911_v34  ;;  %7318 = vmatpush3.msra.mxu0 %v8571_v4 }
 0x791   :  { %7319 = vmatprep.subr.mxu0 %v7638_v1  ;;  %7321 = vmatprep.mubr.msk.f32.mxu0 %vm7639_vm1, %v7638_v1 }
 0x792   :  { %7320 = vmatpush3.msra.mxu0 %v8580_v6  ;;  %7346 = vmatprep.subr.mxu1 %v7638_v1 }
 0x793   :  { %7322 = vmatmul.mubr.msk.f32.vlgmr.msra.gmra.mxu0 %vm109_vm3, %v8911_v34  ;;  %7335 = vmatprep.subr.mxu0 %v7638_v1 }
 0x794   :  { %7336 = vmatpush3.msra.mxu0 %v8590_v2  ;;  %7343 = vmatprep.mubr.msk.f32.mxu0 %vm7639_vm1, %v7638_v1 }
 0x795   :  { %7337 = vmatprep.subr.mxu0 %v7638_v1  ;;  %7347 = vmatpush3.msra.mxu1 %v7598_v28  ;;  %v6305_v28 = vld [vmem:[%s9115_s2 + $0xe] sm:$0x3] }
 0x796   :  { %7338 = vmatpush3.msra.mxu0 %v8600_v10  ;;  %7348 = vmatprep.subr.mxu1 %v7638_v1 }
 0x797   :  { %7339 = vmatprep.subr.mxu0 %v7638_v1  ;;  %7349 = vmatpush3.msra.mxu1 %v7599_v51 }
 0x798   :  { %7340 = vmatpush3.msra.mxu0 %v8609_v49  ;;  %7350 = vmatprep.subr.mxu1 %v7638_v1 }
 0x799   :  { %7341 = vmatprep.subr.mxu0 %v7638_v1  ;;  %7351 = vmatpush3.msra.mxu1 %v7600_v30 }
 0x79a   :  { %7342 = vmatpush3.msra.mxu0 %v8618_v3  ;;  %7352 = vmatprep.subr.mxu1 %v7638_v1 }
 0x79b   :  { %7344 = vmatmul.mubr.msk.f32.vlgmr.msra.gmra.mxu0 %vm109_vm3, %v8911_v34  ;;  %7357 = vmatprep.subr.mxu0 %v7638_v1 }
 0x79c   :  { %7358 = vmatpush3.msra.mxu0 %v7601_v31  ;;  %7353 = vmatpush3.msra.mxu1 %v7602_v32 }
 0x79d   :  { %7359 = vmatprep.subr.mxu0 %v7638_v1  ;;  %7354 = vmatprep.mubr.msk.f32.mxu1 %vm7639_vm1, %v7638_v1 }
 0x79e   :  { %7360 = vmatpush3.msra.mxu0 %v7603_v46  ;;  %7365 = vmatprep.mubr.msk.f32.mxu0 %vm7639_vm1, %v7638_v1 }
 0x79f   :  { %7361 = vmatprep.subr.mxu0 %v7638_v1  ;;  %7368 = vmatprep.subr.mxu1 %v7638_v1 }
 0x7a0   :  { %7362 = vmatpush3.msra.mxu0 %v7604_v38 }
 0x7a1   :  { %7363 = vmatprep.subr.mxu0 %v7638_v1 }
 0x7a2   :  { %7364 = vmatpush3.msra.mxu0 %v7605_v39 }
 0x7a3   :  { %7379 = vmatprep.subr.mxu0 %v7638_v1 }
 0x83b   :  { %v5080_v40 = vpop.f32.mrf.mxu0  ;;  %v5150_v37 = vpop.f32.mrf.mxu1 }
 0x83c   :  { %v5081_v45 = vadd.f32 %v8763_v62, %v5080_v40  ;;  %v5151_v49 = vadd.f32 %v8775_v25, %v5150_v37 }
 0x83d   :  { %v7269_v9 = vpop.f32.mrf.mxu0  ;;  %v7280_v43 = vpop.f32.mrf.mxu1 }
 0x83e   :  { %v7607_v43 = vld [vmem:[%s9123_s10 + $0x8] sm:$0xff] }
 0x841   :  { %v5293_v48 = vpop.f32.mrf.mxu1 }
 0x842   :  { %v5437_v41 = vadd.f32 %v5293_v48, %v5081_v45  ;;  %v7609_v45 = vld [vmem:[%s9123_s10] sm:$0xff]  ;;  %v7610_v48 = vld [vmem:[%s9122_s9 + $0x8] sm:$0xff] }
 0x843   :  { %v7298_v0 = vpop.f32.mrf.mxu1 }
 0x844   :  { %v6296_v4 = vmul.f32 -1.442695, %v5437_v41  ;;  %v5220_v6 = vpop.f32.mrf.mxu0  ;;  %v7611_v41 = vld [vmem:[%s9125_s12 + $0x8] sm:$0xff]  ;;  %v7612_v0 = vld [vmem:[%s9122_s9] sm:$0xff] }
 0x845   :  { %v5221_v19 = vadd.f32 %v8791_v22, %v5220_v6  ;;  %v7614_v6 = vld [vmem:[%s9124_s11 + $0x8] sm:$0xff] }
 0x846   :  { %7533 = vpow2.f32 %v6296_v4  ;;  %v7291_v2 = vpop.f32.mrf.mxu0  ;;  %v7613_v4 = vld [vmem:[%s9125_s12] sm:$0xff] }
 0x847   :  { %v5433_v10 = vpop.f32.mrf.mxu1  ;;  %v7615_v2 = vld [vmem:[%s9124_s11] sm:$0xff]  ;;  %s7640_s11 = smov [#allocation4]  }
 0x848   :  { %v5434_v17 = vadd.f32 %v8781_v44, %v5433_v10  ;;  %s6168_s12 = sshll.u32 %s7640_s11, 4  ;;  %s6169_s12 = int_to_ptr.vmem [resolvable:$true] %s6168_s12 }
 0x849   :  { %v7312_v3 = vpop.f32.mrf.mxu1  ;;  %s7616_s25 = scalar_lea.vmem %s6169_s12, 32  ;;  %p7621_p1 = scmp.lt.s32.totalorder %s6169_s12, %s6169_s12 }
 0x84a   :  { %v5363_v53 = vpop.f32.mrf.mxu0  ;;  %p7617_p0 = scmp.ne.s32.totalorder %s6169_s12, %s7616_s25  ;;  %p7622_p2 = scmp.lt.s32.totalorder %s7616_s25, %s7616_s25 }
 0x84b   :  { %v5444_v27 = vadd.f32 %v5363_v53, %v5151_v49 }
 0x84c   :  { %v7305_v50 = vpop.f32.mrf.mxu0  ;;  %p7623_p3 = por %p7622_p2, %p7621_p1 }
 0x84d   :  { %v6297_v56 = vmul.f32 -1.442695, %v5444_v27 }
 0x84e   :  { %p7624_p4 = pnand %p7623_p3, %p7617_p0 }
 0x84f   :  { %7535 = vpow2.f32 %v6297_v56 }
 0x850   :  { %v5594_v26 = vpop.f32.mrf.mxu1 }
 0x851   :  { %v5679_v16 = vadd.f32 %v6303_v15, %v5594_v26 }
 0x852   :  { %v7334_v5 = vpop.f32.mrf.mxu1 }
 0x853   :  { %v7534_v57 = vpop.eup %7533  ;;  %v5524_v7 = vpop.f32.mrf.mxu0  ;;  %v6304_v42 = vmul.f32 -1.442695, %v5679_v16 }
 0x854   :  { %v5441_v29 = vadd.f32 1.0, %v7534_v57  ;;  %v5670_v8 = vadd.f32 %v6301_v36, %v5524_v7 }
 0x855   :  { %v7323_v13 = vpop.f32.mrf.mxu0 }
 0x856   :  { %7537 = vrcp.f32 %v5441_v29  ;;  %v6302_v14 = vmul.f32 -1.442695, %v5670_v8 }
 0x858   :  { %7539 = vpow2.f32 %v6302_v14 }
 0x859   :  { %7541 = vpow2.f32 %v6304_v42 }
 0x85b   :  { %v5664_v61 = vpop.f32.mrf.mxu0 }
 0x85c   :  { %v7536_v11 = vpop.eup %7535  ;;  %v5665_v58 = vadd.f32 %v8651_v35, %v5664_v61 }
 0x85d   :  { %v7345_v33 = vpop.f32.mrf.mxu0  ;;  %v5448_v55 = vadd.f32 1.0, %v7536_v11 }
 0x85f   :  { %7543 = vrcp.f32 %v5448_v55 }
 0x863   :  { %v7538_v63 = vpop.eup %7537 }
 0x864   :  { %v5451_v20 = vmul.f32 %v7538_v63, %v5434_v17 }
 0x865   :  { %v7540_v12 = vpop.eup %7539 }
 0x866   :  { %v5452_v18 = vadd.f32 %v5451_v20, %v5221_v19  ;;  %v5674_v21 = vadd.f32 1.0, %v7540_v12  ;;  %v7542_v52 = vpop.eup %7541 }
 0x867   :  { %v5683_v59 = vadd.f32 1.0, %v7542_v52 }
 0x868   :  { %7545 = vtanh.f32 %v5452_v18 }
 0x869   :  { %7547 = vrcp.f32 %v5674_v21 }
 0x86a   :  { %7549 = vrcp.f32 %v5683_v59 }
 0x86c   :  { %v7544_v60 = vpop.eup %7543 }
 0x86d   :  { %v5454_v47 = vsub.f32 1.0, %v7544_v60  ;;  %v5456_v30 = vmul.f32 %v7544_v60, %v8927_v24  ;;  %v7606_v24 = vld [vmem:[%s9122_s9 + $0x18] sm:$0xff] }
 0x875   :  { %v7546_v23 = vpop.eup %7545 }
 0x876   :  { %v7548_v54 = vpop.eup %7547  ;;  %v5455_v51 = vmul.f32 %v7546_v23, %v5454_v47 }
 0x877   :  { %v5688_v31 = vmul.f32 %v7548_v54, %v5665_v58  ;;  %v7550_v38 = vpop.eup %7549 }
 0x878   :  { %v9043_v32 = vadd.f32 %v5456_v30, %v5455_v51  ;;  %v5691_v39 = vsub.f32 1.0, %v7550_v38  ;;  %v5693_v37 = vmul.f32 %v7550_v38, %v8911_v34  ;;  %v7608_v34 = vld [vmem:[%s9122_s9 + $0x10] sm:$0xff] }
 0x879   :  { %v5689_v46 = vadd.f32 %v6305_v28, %v5688_v31 }
 0x87a   :  { %5710 = vst.msk [vmem:[#allocation3] sm:$0x3] %vm63_vm2, %v9043_v32 }
 0x87b   :  { %7551 = vtanh.f32 %v5689_v46 }
 0x888   :  { %v7552_v35 = vpop.eup %7551 }
 0x889   :  { %v5692_v40 = vmul.f32 %v7552_v35, %v5691_v39 }
 0x88b   :  { %v5694_v9 = vadd.f32 %v5693_v37, %v5692_v40 }
 0x88d   :  { %5708 = vst.msk [vmem:[#allocation2] sm:$0x3] %vm61_vm0, %v5694_v9  ;;  %7355 = vmatmul.mubr.msk.f32.vlgmr.msra.gmra.mxu1 %vm109_vm3, %v5694_v9  ;;  %7366 = vmatmul.mubr.msk.f32.vlgmr.msra.gmra.mxu0 %vm109_vm3, %v5694_v9 }
 0x88e   :  { %7369 = vmatpush3.msra.mxu1 %v7606_v24  ;;  %7380 = vmatpush3.msra.mxu0 %v7607_v43 }
 0x88f   :  { %7370 = vmatprep.subr.mxu1 %v7638_v1  ;;  %7381 = vmatprep.subr.mxu0 %v7638_v1 }
 0x890   :  { %7371 = vmatpush3.msra.mxu1 %v7608_v34  ;;  %7382 = vmatpush3.msra.mxu0 %v7609_v45 }
 0x891   :  { %7372 = vmatprep.subr.mxu1 %v7638_v1  ;;  %7383 = vmatprep.mubr.msk.f32.mxu0 %vm7639_vm1, %v7638_v1 }
 0x892   :  { %7373 = vmatpush3.msra.mxu1 %v7610_v48  ;;  %7384 = vmatmul.mubr.msk.f32.vlgmr.msra.gmra.mxu0 %vm335_vm4, %v9043_v32 }
 0x893   :  { %7393 = vmatprep.subr.mxu0 %v7638_v1  ;;  %7374 = vmatprep.subr.mxu1 %v7638_v1 }
 0x894   :  { %7394 = vmatpush3.msra.mxu0 %v7611_v41  ;;  %7375 = vmatpush3.msra.mxu1 %v7612_v0 }
 0x895   :  { %7376 = vmatprep.mubr.msk.f32.mxu1 %vm7639_vm1, %v7638_v1  ;;  %7395 = vmatprep.subr.mxu0 %v7638_v1 }
 0x896   :  { %7377 = vmatmul.mubr.msk.f32.vlgmr.msra.gmra.mxu1 %vm109_vm3, %v5694_v9  ;;  %7386 = vmatprep.subr.mxu1 %v7638_v1 }
 0x897   :  { %7396 = vmatpush3.msra.mxu0 %v7613_v4  ;;  %7397 = vmatprep.mubr.msk.f32.mxu0 %vm7639_vm1, %v7638_v1 }
 0x898   :  { %7387 = vmatpush3.msra.mxu1 %v7614_v6  ;;  %7398 = vmatmul.mubr.msk.f32.vlgmr.msra.gmra.mxu0 %vm335_vm4, %v9043_v32 }
 0x899   :  { %7388 = vmatprep.subr.mxu1 %v7638_v1  ;;  %7390 = vmatprep.mubr.msk.f32.mxu1 %vm7639_vm1, %v7638_v1 }
 0x89a   :  { %7389 = vmatpush3.msra.mxu1 %v7615_v2 }
 0x89b   :  { %7391 = vmatmul.mubr.msk.f32.vlgmr.msra.gmra.mxu1 %vm335_vm4, %v9043_v32 }
 0x94d   :  { %v5783_v10 = vpop.f32.mrf.mxu1  ;;  %v5853_v49 = vpop.f32.mrf.mxu0 }
 0x94e   :  { %v5784_v27 = vadd.f32 %v8763_v62, %v5783_v10  ;;  %v5854_v7 = vadd.f32 %v8775_v25, %v5853_v49 }
 0x94f   :  { %v7356_v3 = vpop.f32.mrf.mxu1  ;;  %v7367_v53 = vpop.f32.mrf.mxu0 }
 0x952   :  { %v5996_v50 = vpop.f32.mrf.mxu0 }
 0x953   :  { %v6140_v56 = vadd.f32 %v5996_v50, %v5784_v27 }
 0x954   :  { %v7385_v26 = vpop.f32.mrf.mxu0 }
 0x955   :  { %v6312_v36 = vmul.f32 -1.442695, %v6140_v56 }
 0x956   :  { %v5923_v5 = vpop.f32.mrf.mxu1 }
 0x957   :  { %7553 = vpow2.f32 %v6312_v36  ;;  %v5924_v55 = vadd.f32 %v8791_v22, %v5923_v5 }
 0x958   :  { %v6136_v1 = vpop.f32.mrf.mxu0  ;;  %v7378_v57 = vpop.f32.mrf.mxu1 }
 0x959   :  { %v6137_v33 = vadd.f32 %v8781_v44, %v6136_v1 }
 0x95a   :  { %v7399_v29 = vpop.f32.mrf.mxu0 }
 0x95b   :  { %v6066_v8 = vpop.f32.mrf.mxu1 }
 0x95c   :  { %v6147_v13 = vadd.f32 %v6066_v8, %v5854_v7 }
 0x95d   :  { %v7392_v14 = vpop.f32.mrf.mxu1 }
 0x95e   :  { %v6313_v15 = vmul.f32 -1.442695, %v6147_v13 }
 0x960   :  { %7555 = vpow2.f32 %v6313_v15 }
 0x964   :  { %v7554_v16 = vpop.eup %7553 }
 0x965   :  { %v6144_v61 = vadd.f32 1.0, %v7554_v16 }
 0x967   :  { %7557 = vrcp.f32 %v6144_v61 }
 0x96d   :  { %v7556_v62 = vpop.eup %7555 }
 0x96e   :  { %v6151_v11 = vadd.f32 1.0, %v7556_v62 }
 0x970   :  { %7559 = vrcp.f32 %v6151_v11 }
 0x974   :  { %v7558_v42 = vpop.eup %7557 }
 0x975   :  { %v6154_v17 = vmul.f32 %v7558_v42, %v6137_v33 }
 0x977   :  { %v6155_v63 = vadd.f32 %v6154_v17, %v5924_v55 }
 0x979   :  { %7561 = vtanh.f32 %v6155_v63 }
 0x97d   :  { %v7560_v25 = vpop.eup %7559 }
 0x97e   :  { %v6157_v19 = vsub.f32 1.0, %v7560_v25  ;;  %v6159_v18 = vmul.f32 %v7560_v25, %v9043_v32 }
 0x986   :  { %v7562_v20 = vpop.eup %7561 }
 0x987   :  { %v6158_v12 = vmul.f32 %v7562_v20, %v6157_v19 }
 0x989   :  { %v6160_v21 = vadd.f32 %v6159_v18, %v6158_v12 }
 0x98b   :  { %6161 = vst.msk [vmem:[#allocation4] sm:$0x3] %vm63_vm2, %v6160_v21 }
 0x98c   :  { %7627 = shalt.err (!%p7624_p4)
}
 0x98d   :  { %6171 = dma.vmem_to_hbm [thread:$0]  %s6169_s12, 32, %s9130_s17, [#allocation5]  }
 0x98e   :  { %7636 = dma.done.wait [#allocation5], 32  }
 0x98f   :  { %7637 = vsyncadd [#allocation5], 4294967264 }
 0x990   :  { %6175 = vsyncpa [#allocation5], 1 }

</bundles_post_ra>
